<compile_context>
chip_gen: v7x
topology: tpu7x:2x2x1
jax: 0.10.0
libtpu: 0.0.40
codegen_flags: <defaults>
</compile_context>

<pallas_src>
import numpy as np
import jax
import jax.numpy as jnp
from jax.experimental import pallas as pl
from jax.experimental.pallas import tpu as pltpu

MID_CH = 10
FINAL_CH = 20
FEATURES_LEN = 256
KSIZE = 8
PAD = KSIZE // 2          # conv padding for all three conv layers
STRIDE1 = 4               # conv1 stride; conv2/conv3 use stride 1
B_TILE = 8                # samples per grid step (multiple of 8)


def _conv_out_len(l_in, stride):
    return (l_in + 2 * PAD - KSIZE) // stride + 1


def _pool_out_len(l_in):
    # MaxPool1d(kernel=2, stride=2, padding=1), ceil_mode=False
    return l_in // 2 + 1


def _pool_flatten_matrix(lp3):
    """Constant M (lp3*FINAL_CH, FINAL_CH*FEATURES_LEN) such that
       x_flat = p3_flat @ M  reproduces AdaptiveAvgPool1d(FEATURES_LEN) followed by the
       channel-major flatten, where p3_flat[l*FINAL_CH + c] = p3[l, c]."""
    P = np.zeros((lp3, FEATURES_LEN), np.float32)
    for f in range(FEATURES_LEN):
        s = (f * lp3) // FEATURES_LEN
        e = -((-(f + 1) * lp3) // FEATURES_LEN)   # ceil((f+1)*lp3 / FEATURES_LEN)
        P[s:e, f] = 1.0 / (e - s)
    M = np.zeros((lp3 * FINAL_CH, FINAL_CH * FEATURES_LEN), np.float32)
    for c in range(FINAL_CH):
        M[c::FINAL_CH, c * FEATURES_LEN:(c + 1) * FEATURES_LEN] = P
    return jnp.asarray(M)


# --------------------------------------------------------------------------- #
# Wrapper (builds the fused kernel as a closure over the static length bookkeeping)
# --------------------------------------------------------------------------- #
def cnn1d_forward(x_ncl, params):
    """x_ncl: (N, C_in, L) -> (logits (N, num_classes), x_flat (N, 20*256))."""
    N, c_in, L = x_ncl.shape
    num_classes = params["b_lin"].shape[-1]
    flat_dim = FINAL_CH * FEATURES_LEN
    c2 = 2 * MID_CH

    # Static length arithmetic (mirrors the PyTorch layers).
    l1 = _conv_out_len(L, STRIDE1); lp1 = _pool_out_len(l1)
    l2 = _conv_out_len(lp1, 1);     lp2 = _pool_out_len(l2)
    l3 = _conv_out_len(lp2, 1);     lp3 = _pool_out_len(l3)

    B = B_TILE
    n_pad = pl.cdiv(N, B) * B
    grid = (n_pad // B,)

    # Single layout adaptation of the input: (N, C, L) -> (N, L, C) so the conv stack
    # stays in (length, channels) layout; pad batch to a multiple of the tile.
    x_nlc = jnp.transpose(x_ncl, (0, 2, 1)).astype(jnp.float32)
    if n_pad != N:
        x_nlc = jnp.pad(x_nlc, ((0, n_pad - N), (0, 0), (0, 0)))

    bigm = _pool_flatten_matrix(lp3)              # (120, 5120) f32 constant

    f32 = jnp.float32
    bf16 = jnp.bfloat16

    def kernel(x_ref, w1_ref, w2_ref, w3_ref, bigm_ref, wlin_ref, blin_ref,
               y_ref, xflat_ref,
               s1, a1, m1, s2, a2, m2, s3, a3, m3, feats):
        # ---- halo-only fills (interiors are fully overwritten per sample) ----------
        s1[0:PAD, :] = jnp.zeros((PAD, c_in), f32)
        s1[PAD + L:, :] = jnp.zeros((PAD, c_in), f32)
        s2[0:PAD, :] = jnp.zeros((PAD, MID_CH), f32)
        s2[PAD + lp1:, :] = jnp.zeros((PAD, MID_CH), f32)
        s3[0:PAD, :] = jnp.zeros((PAD, c2), f32)
        s3[PAD + lp2:, :] = jnp.zeros((PAD, c2), f32)
        # 0 is a valid max-pool pad because pool inputs are post-ReLU (>= 0)
        m1[0:1, :] = jnp.zeros((1, MID_CH), f32)
        m1[l1 + 1:, :] = jnp.zeros((1, MID_CH), f32)
        m2[0:1, :] = jnp.zeros((1, c2), f32)
        m2[l2 + 1:, :] = jnp.zeros((1, c2), f32)
        m3[0:1, :] = jnp.zeros((1, FINAL_CH), f32)
        m3[l3 + 1:, :] = jnp.zeros((1, FINAL_CH), f32)

        def conv_block(src, im2col, w_ref, mstage, l_out, lp_out, stride):
            """Conv1d(bias=False) + ReLU + MaxPool1d(2,2,pad=1) via im2col + ONE dot."""
            cin = src.shape[1]
            for k in range(KSIZE):                          # 8 tap slices -> im2col
                if stride == 1:
                    im2col[:, k * cin:(k + 1) * cin] = src[k:k + l_out, :]
                else:
                    im2col[:, k * cin:(k + 1) * cin] = src[pl.ds(k, l_out, stride), :]
            h = jnp.dot(im2col[...].astype(bf16), w_ref[...],
                        preferred_element_type=f32)         # (l_out, c_out)
            mstage[1:1 + l_out, :] = jnp.maximum(h, 0.0)    # ReLU into padded pool buf
            return jnp.maximum(mstage[pl.ds(0, lp_out, 2), :],
                               mstage[pl.ds(1, lp_out, 2), :])

        def sample_body(b, carry):
            # conv_block1: Conv(k=8,s=4,p=4) -> ReLU -> MaxPool -> Dropout(eval: id)
            s1[PAD:PAD + L, :] = x_ref[b]
            p1 = conv_block(s1, a1, w1_ref, m1, l1, lp1, STRIDE1)   # (lp1, 10)
            # conv_block2
            s2[PAD:PAD + lp1, :] = p1
            p2 = conv_block(s2, a2, w2_ref, m2, l2, lp2, 1)         # (lp2, 20)
            # conv_block3
            s3[PAD:PAD + lp2, :] = p2
            p3 = conv_block(s3, a3, w3_ref, m3, l3, lp3, 1)         # (lp3, 20)
            # stash p3 (length-major, channel-minor) as one row of the feature matrix
            for l in range(lp3):
                feats[pl.ds(b, 1), l * FINAL_CH:(l + 1) * FINAL_CH] = p3[l:l + 1, :]
            return carry

        jax.lax.fori_loop(0, B, sample_body, 0)

        # ---- AdaptiveAvgPool1d(256) + channel-major flatten: ONE f32 dot -----------
        xflat = jnp.dot(feats[...], bigm_ref[...],
                        preferred_element_type=f32)          # (B, 5120), lane-dense
        xflat_ref[...] = xflat

        # ---- linear head: single batched MXU dot (M = B) + bias --------------------
        y = jnp.dot(xflat.astype(bf16), wlin_ref[...],
                    preferred_element_type=f32)              # (B, num_classes)
        y_ref[...] = y + blin_ref[...]

    y_pad, xflat_pad = pl.pallas_call(
        kernel,
        out_shape=(
            jax.ShapeDtypeStruct((n_pad, num_classes), jnp.float32),
            jax.ShapeDtypeStruct((n_pad, flat_dim), jnp.float32),
        ),
        grid=grid,
        in_specs=[
            pl.BlockSpec((B, L, c_in), lambda n: (n, 0, 0)),                 # x batch tile
            pl.BlockSpec((KSIZE * c_in, MID_CH), lambda n: (0, 0)),          # w1 (im2col)
            pl.BlockSpec((KSIZE * MID_CH, c2), lambda n: (0, 0)),            # w2
            pl.BlockSpec((KSIZE * c2, FINAL_CH), lambda n: (0, 0)),          # w3
            pl.BlockSpec((lp3 * FINAL_CH, flat_dim), lambda n: (0, 0)),      # pool+flatten M
            pl.BlockSpec((flat_dim, num_classes), lambda n: (0, 0)),         # w_lin^T
            pl.BlockSpec((1, num_classes), lambda n: (0, 0)),                # b_lin
        ],
        out_specs=(
            pl.BlockSpec((B, num_classes), lambda n: (n, 0)),
            pl.BlockSpec((B, flat_dim), lambda n: (n, 0)),
        ),
        scratch_shapes=[
            pltpu.VMEM((L + 2 * PAD, c_in), jnp.float32),        # s1: conv1 padded input
            pltpu.VMEM((l1, KSIZE * c_in), jnp.float32),         # a1: conv1 im2col
            pltpu.VMEM((l1 + 2, MID_CH), jnp.float32),           # m1: pool1 staging
            pltpu.VMEM((lp1 + 2 * PAD, MID_CH), jnp.float32),    # s2
            pltpu.VMEM((l2, KSIZE * MID_CH), jnp.float32),       # a2
            pltpu.VMEM((l2 + 2, c2), jnp.float32),               # m2
            pltpu.VMEM((lp2 + 2 * PAD, c2), jnp.float32),        # s3
            pltpu.VMEM((l3, KSIZE * c2), jnp.float32),           # a3
            pltpu.VMEM((l3 + 2, FINAL_CH), jnp.float32),         # m3
            pltpu.VMEM((B, lp3 * FINAL_CH), jnp.float32),        # feats: p3 rows, all B samples
        ],
        compiler_params=pltpu.CompilerParams(
            dimension_semantics=("parallel",),   # batch-tile axis -> megacore sharding
        ),
    )(x_nlc, params["w1_im2col"], params["w2_im2col"], params["w3_im2col"],
      bigm, params["w_lin_t"], params["b_lin"])

    return y_pad[:N], xflat_pad[:N]


# --------------------------------------------------------------------------- #
# Parameter init (PyTorch-style uniform), stored in the layouts the kernel reads.
# --------------------------------------------------------------------------- #
def init_params(key, input_channels, num_classes):
    def uniform(k, shape, fan_in):
        bound = 1.0 / np.sqrt(fan_in)
        return jax.random.uniform(k, shape, jnp.float32, -bound, bound)

    k1, k2, k3, k4, k5 = jax.random.split(key, 5)
    w1 = uniform(k1, (MID_CH, input_channels, KSIZE), input_channels * KSIZE)
    w2 = uniform(k2, (2 * MID_CH, MID_CH, KSIZE), MID_CH * KSIZE)
    w3 = uniform(k3, (FINAL_CH, 2 * MID_CH, KSIZE), 2 * MID_CH * KSIZE)
    w_lin = uniform(k4, (num_classes, FEATURES_LEN * FINAL_CH), FEATURES_LEN * FINAL_CH)
    b_lin = uniform(k5, (num_classes,), FEATURES_LEN * FINAL_CH)

    def im2col_weight(w):
        # (C_out, C_in, K) -> (K*C_in, C_out), row q = k*C_in + c ; pre-cast to bf16
        o, c, k = w.shape
        return jnp.transpose(w, (2, 1, 0)).reshape(k * c, o).astype(jnp.bfloat16)

    return {
        "w1_im2col": im2col_weight(w1),
        "w2_im2col": im2col_weight(w2),
        "w3_im2col": im2col_weight(w3),
        "w_lin_t": jnp.transpose(w_lin).astype(jnp.bfloat16),     # (5120, num_classes)
        "b_lin": b_lin.reshape(1, num_classes).astype(jnp.float32),
    }


# --------------------------------------------------------------------------- #
if __name__ == "__main__":
    key = jax.random.PRNGKey(0)
    k_x, k_p = jax.random.split(key)

    batch, input_channels, length, num_classes = 6, 4, 128, 5
    x = jax.random.normal(k_x, (batch, input_channels, length), jnp.float32)   # NCL
    params = init_params(k_p, input_channels, num_classes)

    fwd = jax.jit(cnn1d_forward)
    y, x_flat = fwd(x, params)
    jax.block_until_ready((y, x_flat))

    assert y.shape == (batch, num_classes)
    assert x_flat.shape == (batch, FEATURES_LEN * FINAL_CH)
    assert bool(jnp.all(jnp.isfinite(y))) and bool(jnp.all(jnp.isfinite(x_flat)))
    print("KERNEL_OK")
</pallas_src>

<mosaic_0001>
module attributes {stable_mosaic.version = 11 : i64} {
  func.func @kernel(%arg0: i32, %arg1: memref<8x128x4xf32, #tpu.memory_space<vmem>>, %arg2: memref<32x10xbf16, #tpu.memory_space<vmem>>, %arg3: memref<80x20xbf16, #tpu.memory_space<vmem>>, %arg4: memref<160x20xbf16, #tpu.memory_space<vmem>>, %arg5: memref<120x5120xf32, #tpu.memory_space<vmem>>, %arg6: memref<5120x5xbf16, #tpu.memory_space<vmem>>, %arg7: memref<1x5xf32, #tpu.memory_space<vmem>>, %arg8: memref<8x5xf32, #tpu.memory_space<vmem>>, %arg9: memref<8x5120xf32, #tpu.memory_space<vmem>>, %arg10: memref<136x4xf32, #tpu.memory_space<vmem>>, %arg11: memref<33x32xf32, #tpu.memory_space<vmem>>, %arg12: memref<35x10xf32, #tpu.memory_space<vmem>>, %arg13: memref<25x10xf32, #tpu.memory_space<vmem>>, %arg14: memref<18x80xf32, #tpu.memory_space<vmem>>, %arg15: memref<20x20xf32, #tpu.memory_space<vmem>>, %arg16: memref<18x20xf32, #tpu.memory_space<vmem>>, %arg17: memref<11x160xf32, #tpu.memory_space<vmem>>, %arg18: memref<13x20xf32, #tpu.memory_space<vmem>>, %arg19: memref<8x120xf32, #tpu.memory_space<vmem>>) attributes {dimension_semantics = [#tpu.dimension_semantics<parallel>], iteration_bounds = array<i64: 1>, scalar_prefetch = 0 : i64, scratch_operands = 10 : i64, tpu.core_type = #tpu.core_type<tc>, window_params = [{transform_indices = @transform_0, window_bounds = array<i64: 8, 128, 4>}, {pipeline_mode = #tpu.pipeline_mode<synchronous>, transform_indices = @transform_1, window_bounds = array<i64: 32, 10>}, {pipeline_mode = #tpu.pipeline_mode<synchronous>, transform_indices = @transform_2, window_bounds = array<i64: 80, 20>}, {pipeline_mode = #tpu.pipeline_mode<synchronous>, transform_indices = @transform_3, window_bounds = array<i64: 160, 20>}, {pipeline_mode = #tpu.pipeline_mode<synchronous>, transform_indices = @transform_4, window_bounds = array<i64: 120, 5120>}, {pipeline_mode = #tpu.pipeline_mode<synchronous>, transform_indices = @transform_5, window_bounds = array<i64: 5120, 5>}, {pipeline_mode = #tpu.pipeline_mode<synchronous>, transform_indices = @transform_6, window_bounds = array<i64: 1, 5>}, {transform_indices = @transform_7, window_bounds = array<i64: 8, 5>}, {transform_indices = @transform_8, window_bounds = array<i64: 8, 5120>}]} {
    %cst = arith.constant 0.000000e+00 : f32
    %0 = vector.broadcast %cst : f32 to vector<4x4xf32>
    %c0 = arith.constant 0 : index
    %c0_0 = arith.constant 0 : index
    %1 = vector.load %arg10[%c0, %c0_0] : memref<136x4xf32, #tpu.memory_space<vmem>>, vector<4x4xf32>
    tpu.vector_store %arg10[%c0, %c0_0], %0 {strides = array<i32>} : memref<136x4xf32, #tpu.memory_space<vmem>>, vector<4x4xf32>,
    %cst_1 = arith.constant 0.000000e+00 : f32
    %2 = vector.broadcast %cst_1 : f32 to vector<4x4xf32>
    %c132 = arith.constant 132 : index
    %c0_2 = arith.constant 0 : index
    %3 = vector.load %arg10[%c132, %c0_2] : memref<136x4xf32, #tpu.memory_space<vmem>>, vector<4x4xf32>
    tpu.vector_store %arg10[%c132, %c0_2], %2 {strides = array<i32>} : memref<136x4xf32, #tpu.memory_space<vmem>>, vector<4x4xf32>,
    %cst_3 = arith.constant 0.000000e+00 : f32
    %4 = vector.broadcast %cst_3 : f32 to vector<4x10xf32>
    %c0_4 = arith.constant 0 : index
    %c0_5 = arith.constant 0 : index
    %5 = vector.load %arg13[%c0_4, %c0_5] : memref<25x10xf32, #tpu.memory_space<vmem>>, vector<4x10xf32>
    tpu.vector_store %arg13[%c0_4, %c0_5], %4 {strides = array<i32>} : memref<25x10xf32, #tpu.memory_space<vmem>>, vector<4x10xf32>,
    %cst_6 = arith.constant 0.000000e+00 : f32
    %6 = vector.broadcast %cst_6 : f32 to vector<4x10xf32>
    %c21 = arith.constant 21 : index
    %c0_7 = arith.constant 0 : index
    %7 = vector.load %arg13[%c21, %c0_7] : memref<25x10xf32, #tpu.memory_space<vmem>>, vector<4x10xf32>
    tpu.vector_store %arg13[%c21, %c0_7], %6 {strides = array<i32>} : memref<25x10xf32, #tpu.memory_space<vmem>>, vector<4x10xf32>,
    %cst_8 = arith.constant 0.000000e+00 : f32
    %8 = vector.broadcast %cst_8 : f32 to vector<4x20xf32>
    %c0_9 = arith.constant 0 : index
    %c0_10 = arith.constant 0 : index
    %9 = vector.load %arg16[%c0_9, %c0_10] : memref<18x20xf32, #tpu.memory_space<vmem>>, vector<4x20xf32>
    tpu.vector_store %arg16[%c0_9, %c0_10], %8 {strides = array<i32>} : memref<18x20xf32, #tpu.memory_space<vmem>>, vector<4x20xf32>,
    %cst_11 = arith.constant 0.000000e+00 : f32
    %10 = vector.broadcast %cst_11 : f32 to vector<4x20xf32>
    %c14 = arith.constant 14 : index
    %c0_12 = arith.constant 0 : index
    %11 = vector.load %arg16[%c14, %c0_12] : memref<18x20xf32, #tpu.memory_space<vmem>>, vector<4x20xf32>
    tpu.vector_store %arg16[%c14, %c0_12], %10 {strides = array<i32>} : memref<18x20xf32, #tpu.memory_space<vmem>>, vector<4x20xf32>,
    %cst_13 = arith.constant 0.000000e+00 : f32
    %12 = vector.broadcast %cst_13 : f32 to vector<1x10xf32>
    %c0_14 = arith.constant 0 : index
    %c0_15 = arith.constant 0 : index
    %13 = vector.load %arg12[%c0_14, %c0_15] : memref<35x10xf32, #tpu.memory_space<vmem>>, vector<1x10xf32>
    tpu.vector_store %arg12[%c0_14, %c0_15], %12 {strides = array<i32>} : memref<35x10xf32, #tpu.memory_space<vmem>>, vector<1x10xf32>,
    %cst_16 = arith.constant 0.000000e+00 : f32
    %14 = vector.broadcast %cst_16 : f32 to vector<1x10xf32>
    %c34 = arith.constant 34 : index
    %c0_17 = arith.constant 0 : index
    %15 = vector.load %arg12[%c34, %c0_17] : memref<35x10xf32, #tpu.memory_space<vmem>>, vector<1x10xf32>
    tpu.vector_store %arg12[%c34, %c0_17], %14 {strides = array<i32>} : memref<35x10xf32, #tpu.memory_space<vmem>>, vector<1x10xf32>,
    %cst_18 = arith.constant 0.000000e+00 : f32
    %16 = vector.broadcast %cst_18 : f32 to vector<1x20xf32>
    %c0_19 = arith.constant 0 : index
    %c0_20 = arith.constant 0 : index
    %17 = vector.load %arg15[%c0_19, %c0_20] : memref<20x20xf32, #tpu.memory_space<vmem>>, vector<1x20xf32>
    tpu.vector_store %arg15[%c0_19, %c0_20], %16 {strides = array<i32>} : memref<20x20xf32, #tpu.memory_space<vmem>>, vector<1x20xf32>,
    %cst_21 = arith.constant 0.000000e+00 : f32
    %18 = vector.broadcast %cst_21 : f32 to vector<1x20xf32>
    %c19 = arith.constant 19 : index
    %c0_22 = arith.constant 0 : index
    %19 = vector.load %arg15[%c19, %c0_22] : memref<20x20xf32, #tpu.memory_space<vmem>>, vector<1x20xf32>
    tpu.vector_store %arg15[%c19, %c0_22], %18 {strides = array<i32>} : memref<20x20xf32, #tpu.memory_space<vmem>>, vector<1x20xf32>,
    %cst_23 = arith.constant 0.000000e+00 : f32
    %20 = vector.broadcast %cst_23 : f32 to vector<1x20xf32>
    %c0_24 = arith.constant 0 : index
    %c0_25 = arith.constant 0 : index
    %21 = vector.load %arg18[%c0_24, %c0_25] : memref<13x20xf32, #tpu.memory_space<vmem>>, vector<1x20xf32>
    tpu.vector_store %arg18[%c0_24, %c0_25], %20 {strides = array<i32>} : memref<13x20xf32, #tpu.memory_space<vmem>>, vector<1x20xf32>,
    %cst_26 = arith.constant 0.000000e+00 : f32
    %22 = vector.broadcast %cst_26 : f32 to vector<1x20xf32>
    %c12 = arith.constant 12 : index
    %c0_27 = arith.constant 0 : index
    %23 = vector.load %arg18[%c12, %c0_27] : memref<13x20xf32, #tpu.memory_space<vmem>>, vector<1x20xf32>
    tpu.vector_store %arg18[%c12, %c0_27], %22 {strides = array<i32>} : memref<13x20xf32, #tpu.memory_space<vmem>>, vector<1x20xf32>,
    %c0_i32 = arith.constant 0 : i32
    %c8_i32 = arith.constant 8 : i32
    %24 = arith.addi %c0_i32, %c8_i32 : i32
    %c1_i32 = arith.constant 1 : i32
    scf.for %arg20 = %c0_i32 to %24 step %c1_i32  : i32 {
      %36 = arith.index_cast %arg20 : i32 to index
      %c0_43 = arith.constant 0 : index
      %c0_44 = arith.constant 0 : index
      %37 = vector.load %arg1[%36, %c0_43, %c0_44] : memref<8x128x4xf32, #tpu.memory_space<vmem>>, vector<1x128x4xf32>
      %38 = vector.shape_cast %37 : vector<1x128x4xf32> to vector<128x4xf32>
      %c4 = arith.constant 4 : index
      %c0_45 = arith.constant 0 : index
      %39 = vector.load %arg10[%c4, %c0_45] : memref<136x4xf32, #tpu.memory_space<vmem>>, vector<128x4xf32>
      tpu.vector_store %arg10[%c4, %c0_45], %38 {strides = array<i32>} : memref<136x4xf32, #tpu.memory_space<vmem>>, vector<128x4xf32>,
      %c0_46 = arith.constant 0 : index
      %c0_47 = arith.constant 0 : index
      %40 = tpu.strided_load %arg10[%c0_46, %c0_47] {strides = array<i32: 4, 1>} : memref<136x4xf32, #tpu.memory_space<vmem>>, vector<33x4xf32>
      %c0_48 = arith.constant 0 : index
      %c0_49 = arith.constant 0 : index
      %41 = vector.load %arg11[%c0_48, %c0_49] : memref<33x32xf32, #tpu.memory_space<vmem>>, vector<33x4xf32>
      tpu.vector_store %arg11[%c0_48, %c0_49], %40 {strides = array<i32>} : memref<33x32xf32, #tpu.memory_space<vmem>>, vector<33x4xf32>,
      %c1 = arith.constant 1 : index
      %c0_50 = arith.constant 0 : index
      %42 = tpu.strided_load %arg10[%c1, %c0_50] {strides = array<i32: 4, 1>} : memref<136x4xf32, #tpu.memory_space<vmem>>, vector<33x4xf32>
      %c0_51 = arith.constant 0 : index
      %c4_52 = arith.constant 4 : index
      %43 = vector.load %arg11[%c0_51, %c4_52] : memref<33x32xf32, #tpu.memory_space<vmem>>, vector<33x4xf32>
      tpu.vector_store %arg11[%c0_51, %c4_52], %42 {strides = array<i32>} : memref<33x32xf32, #tpu.memory_space<vmem>>, vector<33x4xf32>,
      %c2 = arith.constant 2 : index
      %c0_53 = arith.constant 0 : index
      %44 = tpu.strided_load %arg10[%c2, %c0_53] {strides = array<i32: 4, 1>} : memref<136x4xf32, #tpu.memory_space<vmem>>, vector<33x4xf32>
      %c0_54 = arith.constant 0 : index
      %c8 = arith.constant 8 : index
      %45 = vector.load %arg11[%c0_54, %c8] : memref<33x32xf32, #tpu.memory_space<vmem>>, vector<33x4xf32>
      tpu.vector_store %arg11[%c0_54, %c8], %44 {strides = array<i32>} : memref<33x32xf32, #tpu.memory_space<vmem>>, vector<33x4xf32>,
      %c3 = arith.constant 3 : index
      %c0_55 = arith.constant 0 : index
      %46 = tpu.strided_load %arg10[%c3, %c0_55] {strides = array<i32: 4, 1>} : memref<136x4xf32, #tpu.memory_space<vmem>>, vector<33x4xf32>
      %c0_56 = arith.constant 0 : index
      %c12_57 = arith.constant 12 : index
      %47 = vector.load %arg11[%c0_56, %c12_57] : memref<33x32xf32, #tpu.memory_space<vmem>>, vector<33x4xf32>
      tpu.vector_store %arg11[%c0_56, %c12_57], %46 {strides = array<i32>} : memref<33x32xf32, #tpu.memory_space<vmem>>, vector<33x4xf32>,
      %c4_58 = arith.constant 4 : index
      %c0_59 = arith.constant 0 : index
      %48 = tpu.strided_load %arg10[%c4_58, %c0_59] {strides = array<i32: 4, 1>} : memref<136x4xf32, #tpu.memory_space<vmem>>, vector<33x4xf32>
      %c0_60 = arith.constant 0 : index
      %c16 = arith.constant 16 : index
      %49 = vector.load %arg11[%c0_60, %c16] : memref<33x32xf32, #tpu.memory_space<vmem>>, vector<33x4xf32>
      tpu.vector_store %arg11[%c0_60, %c16], %48 {strides = array<i32>} : memref<33x32xf32, #tpu.memory_space<vmem>>, vector<33x4xf32>,
      %c5 = arith.constant 5 : index
      %c0_61 = arith.constant 0 : index
      %50 = tpu.strided_load %arg10[%c5, %c0_61] {strides = array<i32: 4, 1>} : memref<136x4xf32, #tpu.memory_space<vmem>>, vector<33x4xf32>
      %c0_62 = arith.constant 0 : index
      %c20 = arith.constant 20 : index
      %51 = vector.load %arg11[%c0_62, %c20] : memref<33x32xf32, #tpu.memory_space<vmem>>, vector<33x4xf32>
      tpu.vector_store %arg11[%c0_62, %c20], %50 {strides = array<i32>} : memref<33x32xf32, #tpu.memory_space<vmem>>, vector<33x4xf32>,
      %c6 = arith.constant 6 : index
      %c0_63 = arith.constant 0 : index
      %52 = tpu.strided_load %arg10[%c6, %c0_63] {strides = array<i32: 4, 1>} : memref<136x4xf32, #tpu.memory_space<vmem>>, vector<33x4xf32>
      %c0_64 = arith.constant 0 : index
      %c24 = arith.constant 24 : index
      %53 = vector.load %arg11[%c0_64, %c24] : memref<33x32xf32, #tpu.memory_space<vmem>>, vector<33x4xf32>
      tpu.vector_store %arg11[%c0_64, %c24], %52 {strides = array<i32>} : memref<33x32xf32, #tpu.memory_space<vmem>>, vector<33x4xf32>,
      %c7 = arith.constant 7 : index
      %c0_65 = arith.constant 0 : index
      %54 = tpu.strided_load %arg10[%c7, %c0_65] {strides = array<i32: 4, 1>} : memref<136x4xf32, #tpu.memory_space<vmem>>, vector<33x4xf32>
      %c0_66 = arith.constant 0 : index
      %c28 = arith.constant 28 : index
      %55 = vector.load %arg11[%c0_66, %c28] : memref<33x32xf32, #tpu.memory_space<vmem>>, vector<33x4xf32>
      tpu.vector_store %arg11[%c0_66, %c28], %54 {strides = array<i32>} : memref<33x32xf32, #tpu.memory_space<vmem>>, vector<33x4xf32>,
      %c0_67 = arith.constant 0 : index
      %c0_68 = arith.constant 0 : index
      %56 = vector.load %arg11[%c0_67, %c0_68] : memref<33x32xf32, #tpu.memory_space<vmem>>, vector<33x32xf32>
      %57 = arith.truncf %56 : vector<33x32xf32> to vector<33x32xbf16>
      %c0_69 = arith.constant 0 : index
      %c0_70 = arith.constant 0 : index
      %58 = vector.load %arg2[%c0_69, %c0_70] : memref<32x10xbf16, #tpu.memory_space<vmem>>, vector<32x10xbf16>
      %cst_71 = arith.constant dense<0.000000e+00> : vector<33x10xf32>
      %59 = tpu.matmul %57, %58, %cst_71 {dimension_numbers = #tpu.dot_dimension_numbers<[1], [0], [0], [1], [0, 0, 1, 1], [], []>} : vector<33x32xbf16>, vector<32x10xbf16>, vector<33x10xf32> -> vector<33x10xf32>
      %cst_72 = arith.constant 0.000000e+00 : f32
      %60 = vector.broadcast %cst_72 : f32 to vector<33x10xf32>
      %61 = arith.maximumf %59, %60 : vector<33x10xf32>
      %c1_73 = arith.constant 1 : index
      %c0_74 = arith.constant 0 : index
      %62 = vector.load %arg12[%c1_73, %c0_74] : memref<35x10xf32, #tpu.memory_space<vmem>>, vector<33x10xf32>
      tpu.vector_store %arg12[%c1_73, %c0_74], %61 {strides = array<i32>} : memref<35x10xf32, #tpu.memory_space<vmem>>, vector<33x10xf32>,
      %c0_75 = arith.constant 0 : index
      %c0_76 = arith.constant 0 : index
      %63 = tpu.strided_load %arg12[%c0_75, %c0_76] {strides = array<i32: 2, 1>} : memref<35x10xf32, #tpu.memory_space<vmem>>, vector<17x10xf32>
      %c1_77 = arith.constant 1 : index
      %c0_78 = arith.constant 0 : index
      %64 = tpu.strided_load %arg12[%c1_77, %c0_78] {strides = array<i32: 2, 1>} : memref<35x10xf32, #tpu.memory_space<vmem>>, vector<17x10xf32>
      %65 = arith.maximumf %63, %64 : vector<17x10xf32>
      %c4_79 = arith.constant 4 : index
      %c0_80 = arith.constant 0 : index
      %66 = vector.load %arg13[%c4_79, %c0_80] : memref<25x10xf32, #tpu.memory_space<vmem>>, vector<17x10xf32>
      tpu.vector_store %arg13[%c4_79, %c0_80], %65 {strides = array<i32>} : memref<25x10xf32, #tpu.memory_space<vmem>>, vector<17x10xf32>,
      %c0_81 = arith.constant 0 : index
      %c0_82 = arith.constant 0 : index
      %67 = vector.load %arg13[%c0_81, %c0_82] : memref<25x10xf32, #tpu.memory_space<vmem>>, vector<18x10xf32>
      %c0_83 = arith.constant 0 : index
      %c0_84 = arith.constant 0 : index
      %68 = vector.load %arg14[%c0_83, %c0_84] : memref<18x80xf32, #tpu.memory_space<vmem>>, vector<18x10xf32>
      tpu.vector_store %arg14[%c0_83, %c0_84], %67 {strides = array<i32>} : memref<18x80xf32, #tpu.memory_space<vmem>>, vector<18x10xf32>,
      %c1_85 = arith.constant 1 : index
      %c0_86 = arith.constant 0 : index
      %69 = vector.load %arg13[%c1_85, %c0_86] : memref<25x10xf32, #tpu.memory_space<vmem>>, vector<18x10xf32>
      %c0_87 = arith.constant 0 : index
      %c10 = arith.constant 10 : index
      %70 = vector.load %arg14[%c0_87, %c10] : memref<18x80xf32, #tpu.memory_space<vmem>>, vector<18x10xf32>
      tpu.vector_store %arg14[%c0_87, %c10], %69 {strides = array<i32>} : memref<18x80xf32, #tpu.memory_space<vmem>>, vector<18x10xf32>,
      %c2_88 = arith.constant 2 : index
      %c0_89 = arith.constant 0 : index
      %71 = vector.load %arg13[%c2_88, %c0_89] : memref<25x10xf32, #tpu.memory_space<vmem>>, vector<18x10xf32>
      %c0_90 = arith.constant 0 : index
      %c20_91 = arith.constant 20 : index
      %72 = vector.load %arg14[%c0_90, %c20_91] : memref<18x80xf32, #tpu.memory_space<vmem>>, vector<18x10xf32>
      tpu.vector_store %arg14[%c0_90, %c20_91], %71 {strides = array<i32>} : memref<18x80xf32, #tpu.memory_space<vmem>>, vector<18x10xf32>,
      %c3_92 = arith.constant 3 : index
      %c0_93 = arith.constant 0 : index
      %73 = vector.load %arg13[%c3_92, %c0_93] : memref<25x10xf32, #tpu.memory_space<vmem>>, vector<18x10xf32>
      %c0_94 = arith.constant 0 : index
      %c30 = arith.constant 30 : index
      %74 = vector.load %arg14[%c0_94, %c30] : memref<18x80xf32, #tpu.memory_space<vmem>>, vector<18x10xf32>
      tpu.vector_store %arg14[%c0_94, %c30], %73 {strides = array<i32>} : memref<18x80xf32, #tpu.memory_space<vmem>>, vector<18x10xf32>,
      %c4_95 = arith.constant 4 : index
      %c0_96 = arith.constant 0 : index
      %75 = vector.load %arg13[%c4_95, %c0_96] : memref<25x10xf32, #tpu.memory_space<vmem>>, vector<18x10xf32>
      %c0_97 = arith.constant 0 : index
      %c40 = arith.constant 40 : index
      %76 = vector.load %arg14[%c0_97, %c40] : memref<18x80xf32, #tpu.memory_space<vmem>>, vector<18x10xf32>
      tpu.vector_store %arg14[%c0_97, %c40], %75 {strides = array<i32>} : memref<18x80xf32, #tpu.memory_space<vmem>>, vector<18x10xf32>,
      %c5_98 = arith.constant 5 : index
      %c0_99 = arith.constant 0 : index
      %77 = vector.load %arg13[%c5_98, %c0_99] : memref<25x10xf32, #tpu.memory_space<vmem>>, vector<18x10xf32>
      %c0_100 = arith.constant 0 : index
      %c50 = arith.constant 50 : index
      %78 = vector.load %arg14[%c0_100, %c50] : memref<18x80xf32, #tpu.memory_space<vmem>>, vector<18x10xf32>
      tpu.vector_store %arg14[%c0_100, %c50], %77 {strides = array<i32>} : memref<18x80xf32, #tpu.memory_space<vmem>>, vector<18x10xf32>,
      %c6_101 = arith.constant 6 : index
      %c0_102 = arith.constant 0 : index
      %79 = vector.load %arg13[%c6_101, %c0_102] : memref<25x10xf32, #tpu.memory_space<vmem>>, vector<18x10xf32>
      %c0_103 = arith.constant 0 : index
      %c60 = arith.constant 60 : index
      %80 = vector.load %arg14[%c0_103, %c60] : memref<18x80xf32, #tpu.memory_space<vmem>>, vector<18x10xf32>
      tpu.vector_store %arg14[%c0_103, %c60], %79 {strides = array<i32>} : memref<18x80xf32, #tpu.memory_space<vmem>>, vector<18x10xf32>,
      %c7_104 = arith.constant 7 : index
      %c0_105 = arith.constant 0 : index
      %81 = vector.load %arg13[%c7_104, %c0_105] : memref<25x10xf32, #tpu.memory_space<vmem>>, vector<18x10xf32>
      %c0_106 = arith.constant 0 : index
      %c70 = arith.constant 70 : index
      %82 = vector.load %arg14[%c0_106, %c70] : memref<18x80xf32, #tpu.memory_space<vmem>>, vector<18x10xf32>
      tpu.vector_store %arg14[%c0_106, %c70], %81 {strides = array<i32>} : memref<18x80xf32, #tpu.memory_space<vmem>>, vector<18x10xf32>,
      %c0_107 = arith.constant 0 : index
      %c0_108 = arith.constant 0 : index
      %83 = vector.load %arg14[%c0_107, %c0_108] : memref<18x80xf32, #tpu.memory_space<vmem>>, vector<18x80xf32>
      %84 = arith.truncf %83 : vector<18x80xf32> to vector<18x80xbf16>
      %c0_109 = arith.constant 0 : index
      %c0_110 = arith.constant 0 : index
      %85 = vector.load %arg3[%c0_109, %c0_110] : memref<80x20xbf16, #tpu.memory_space<vmem>>, vector<80x20xbf16>
      %cst_111 = arith.constant dense<0.000000e+00> : vector<18x20xf32>
      %86 = tpu.matmul %84, %85, %cst_111 {dimension_numbers = #tpu.dot_dimension_numbers<[1], [0], [0], [1], [0, 0, 1, 1], [], []>} : vector<18x80xbf16>, vector<80x20xbf16>, vector<18x20xf32> -> vector<18x20xf32>
      %cst_112 = arith.constant 0.000000e+00 : f32
      %87 = vector.broadcast %cst_112 : f32 to vector<18x20xf32>
      %88 = arith.maximumf %86, %87 : vector<18x20xf32>
      %c1_113 = arith.constant 1 : index
      %c0_114 = arith.constant 0 : index
      %89 = vector.load %arg15[%c1_113, %c0_114] : memref<20x20xf32, #tpu.memory_space<vmem>>, vector<18x20xf32>
      tpu.vector_store %arg15[%c1_113, %c0_114], %88 {strides = array<i32>} : memref<20x20xf32, #tpu.memory_space<vmem>>, vector<18x20xf32>,
      %c0_115 = arith.constant 0 : index
      %c0_116 = arith.constant 0 : index
      %90 = tpu.strided_load %arg15[%c0_115, %c0_116] {strides = array<i32: 2, 1>} : memref<20x20xf32, #tpu.memory_space<vmem>>, vector<10x20xf32>
      %c1_117 = arith.constant 1 : index
      %c0_118 = arith.constant 0 : index
      %91 = tpu.strided_load %arg15[%c1_117, %c0_118] {strides = array<i32: 2, 1>} : memref<20x20xf32, #tpu.memory_space<vmem>>, vector<10x20xf32>
      %92 = arith.maximumf %90, %91 : vector<10x20xf32>
      %c4_119 = arith.constant 4 : index
      %c0_120 = arith.constant 0 : index
      %93 = vector.load %arg16[%c4_119, %c0_120] : memref<18x20xf32, #tpu.memory_space<vmem>>, vector<10x20xf32>
      tpu.vector_store %arg16[%c4_119, %c0_120], %92 {strides = array<i32>} : memref<18x20xf32, #tpu.memory_space<vmem>>, vector<10x20xf32>,
      %c0_121 = arith.constant 0 : index
      %c0_122 = arith.constant 0 : index
      %94 = vector.load %arg16[%c0_121, %c0_122] : memref<18x20xf32, #tpu.memory_space<vmem>>, vector<11x20xf32>
      %c0_123 = arith.constant 0 : index
      %c0_124 = arith.constant 0 : index
      %95 = vector.load %arg17[%c0_123, %c0_124] : memref<11x160xf32, #tpu.memory_space<vmem>>, vector<11x20xf32>
      tpu.vector_store %arg17[%c0_123, %c0_124], %94 {strides = array<i32>} : memref<11x160xf32, #tpu.memory_space<vmem>>, vector<11x20xf32>,
      %c1_125 = arith.constant 1 : index
      %c0_126 = arith.constant 0 : index
      %96 = vector.load %arg16[%c1_125, %c0_126] : memref<18x20xf32, #tpu.memory_space<vmem>>, vector<11x20xf32>
      %c0_127 = arith.constant 0 : index
      %c20_128 = arith.constant 20 : index
      %97 = vector.load %arg17[%c0_127, %c20_128] : memref<11x160xf32, #tpu.memory_space<vmem>>, vector<11x20xf32>
      tpu.vector_store %arg17[%c0_127, %c20_128], %96 {strides = array<i32>} : memref<11x160xf32, #tpu.memory_space<vmem>>, vector<11x20xf32>,
      %c2_129 = arith.constant 2 : index
      %c0_130 = arith.constant 0 : index
      %98 = vector.load %arg16[%c2_129, %c0_130] : memref<18x20xf32, #tpu.memory_space<vmem>>, vector<11x20xf32>
      %c0_131 = arith.constant 0 : index
      %c40_132 = arith.constant 40 : index
      %99 = vector.load %arg17[%c0_131, %c40_132] : memref<11x160xf32, #tpu.memory_space<vmem>>, vector<11x20xf32>
      tpu.vector_store %arg17[%c0_131, %c40_132], %98 {strides = array<i32>} : memref<11x160xf32, #tpu.memory_space<vmem>>, vector<11x20xf32>,
      %c3_133 = arith.constant 3 : index
      %c0_134 = arith.constant 0 : index
      %100 = vector.load %arg16[%c3_133, %c0_134] : memref<18x20xf32, #tpu.memory_space<vmem>>, vector<11x20xf32>
      %c0_135 = arith.constant 0 : index
      %c60_136 = arith.constant 60 : index
      %101 = vector.load %arg17[%c0_135, %c60_136] : memref<11x160xf32, #tpu.memory_space<vmem>>, vector<11x20xf32>
      tpu.vector_store %arg17[%c0_135, %c60_136], %100 {strides = array<i32>} : memref<11x160xf32, #tpu.memory_space<vmem>>, vector<11x20xf32>,
      %c4_137 = arith.constant 4 : index
      %c0_138 = arith.constant 0 : index
      %102 = vector.load %arg16[%c4_137, %c0_138] : memref<18x20xf32, #tpu.memory_space<vmem>>, vector<11x20xf32>
      %c0_139 = arith.constant 0 : index
      %c80 = arith.constant 80 : index
      %103 = vector.load %arg17[%c0_139, %c80] : memref<11x160xf32, #tpu.memory_space<vmem>>, vector<11x20xf32>
      tpu.vector_store %arg17[%c0_139, %c80], %102 {strides = array<i32>} : memref<11x160xf32, #tpu.memory_space<vmem>>, vector<11x20xf32>,
      %c5_140 = arith.constant 5 : index
      %c0_141 = arith.constant 0 : index
      %104 = vector.load %arg16[%c5_140, %c0_141] : memref<18x20xf32, #tpu.memory_space<vmem>>, vector<11x20xf32>
      %c0_142 = arith.constant 0 : index
      %c100 = arith.constant 100 : index
      %105 = vector.load %arg17[%c0_142, %c100] : memref<11x160xf32, #tpu.memory_space<vmem>>, vector<11x20xf32>
      tpu.vector_store %arg17[%c0_142, %c100], %104 {strides = array<i32>} : memref<11x160xf32, #tpu.memory_space<vmem>>, vector<11x20xf32>,
      %c6_143 = arith.constant 6 : index
      %c0_144 = arith.constant 0 : index
      %106 = vector.load %arg16[%c6_143, %c0_144] : memref<18x20xf32, #tpu.memory_space<vmem>>, vector<11x20xf32>
      %c0_145 = arith.constant 0 : index
      %c120 = arith.constant 120 : index
      %107 = vector.load %arg17[%c0_145, %c120] : memref<11x160xf32, #tpu.memory_space<vmem>>, vector<11x20xf32>
      tpu.vector_store %arg17[%c0_145, %c120], %106 {strides = array<i32>} : memref<11x160xf32, #tpu.memory_space<vmem>>, vector<11x20xf32>,
      %c7_146 = arith.constant 7 : index
      %c0_147 = arith.constant 0 : index
      %108 = vector.load %arg16[%c7_146, %c0_147] : memref<18x20xf32, #tpu.memory_space<vmem>>, vector<11x20xf32>
      %c0_148 = arith.constant 0 : index
      %c140 = arith.constant 140 : index
      %109 = vector.load %arg17[%c0_148, %c140] : memref<11x160xf32, #tpu.memory_space<vmem>>, vector<11x20xf32>
      tpu.vector_store %arg17[%c0_148, %c140], %108 {strides = array<i32>} : memref<11x160xf32, #tpu.memory_space<vmem>>, vector<11x20xf32>,
      %c0_149 = arith.constant 0 : index
      %c0_150 = arith.constant 0 : index
      %110 = vector.load %arg17[%c0_149, %c0_150] : memref<11x160xf32, #tpu.memory_space<vmem>>, vector<11x160xf32>
      %111 = arith.truncf %110 : vector<11x160xf32> to vector<11x160xbf16>
      %c0_151 = arith.constant 0 : index
      %c0_152 = arith.constant 0 : index
      %112 = vector.load %arg4[%c0_151, %c0_152] : memref<160x20xbf16, #tpu.memory_space<vmem>>, vector<160x20xbf16>
      %cst_153 = arith.constant dense<0.000000e+00> : vector<11x20xf32>
      %113 = tpu.matmul %111, %112, %cst_153 {dimension_numbers = #tpu.dot_dimension_numbers<[1], [0], [0], [1], [0, 0, 1, 1], [], []>} : vector<11x160xbf16>, vector<160x20xbf16>, vector<11x20xf32> -> vector<11x20xf32>
      %cst_154 = arith.constant 0.000000e+00 : f32
      %114 = vector.broadcast %cst_154 : f32 to vector<11x20xf32>
      %115 = arith.maximumf %113, %114 : vector<11x20xf32>
      %c1_155 = arith.constant 1 : index
      %c0_156 = arith.constant 0 : index
      %116 = vector.load %arg18[%c1_155, %c0_156] : memref<13x20xf32, #tpu.memory_space<vmem>>, vector<11x20xf32>
      tpu.vector_store %arg18[%c1_155, %c0_156], %115 {strides = array<i32>} : memref<13x20xf32, #tpu.memory_space<vmem>>, vector<11x20xf32>,
      %c0_157 = arith.constant 0 : index
      %c0_158 = arith.constant 0 : index
      %117 = tpu.strided_load %arg18[%c0_157, %c0_158] {strides = array<i32: 2, 1>} : memref<13x20xf32, #tpu.memory_space<vmem>>, vector<6x20xf32>
      %c1_159 = arith.constant 1 : index
      %c0_160 = arith.constant 0 : index
      %118 = tpu.strided_load %arg18[%c1_159, %c0_160] {strides = array<i32: 2, 1>} : memref<13x20xf32, #tpu.memory_space<vmem>>, vector<6x20xf32>
      %119 = arith.maximumf %117, %118 : vector<6x20xf32>
      %120 = vector.extract_strided_slice %119 {offsets = [0, 0], sizes = [1, 20], strides = [1, 1]} : vector<6x20xf32> to vector<1x20xf32>
      %121 = arith.index_cast %arg20 : i32 to index
      %c0_161 = arith.constant 0 : index
      %122 = vector.load %arg19[%121, %c0_161] : memref<8x120xf32, #tpu.memory_space<vmem>>, vector<1x20xf32>
      tpu.vector_store %arg19[%121, %c0_161], %120 {strides = array<i32>} : memref<8x120xf32, #tpu.memory_space<vmem>>, vector<1x20xf32>,
      %123 = vector.extract_strided_slice %119 {offsets = [1, 0], sizes = [1, 20], strides = [1, 1]} : vector<6x20xf32> to vector<1x20xf32>
      %124 = arith.index_cast %arg20 : i32 to index
      %c20_162 = arith.constant 20 : index
      %125 = vector.load %arg19[%124, %c20_162] : memref<8x120xf32, #tpu.memory_space<vmem>>, vector<1x20xf32>
      tpu.vector_store %arg19[%124, %c20_162], %123 {strides = array<i32>} : memref<8x120xf32, #tpu.memory_space<vmem>>, vector<1x20xf32>,
      %126 = vector.extract_strided_slice %119 {offsets = [2, 0], sizes = [1, 20], strides = [1, 1]} : vector<6x20xf32> to vector<1x20xf32>
      %127 = arith.index_cast %arg20 : i32 to index
      %c40_163 = arith.constant 40 : index
      %128 = vector.load %arg19[%127, %c40_163] : memref<8x120xf32, #tpu.memory_space<vmem>>, vector<1x20xf32>
      tpu.vector_store %arg19[%127, %c40_163], %126 {strides = array<i32>} : memref<8x120xf32, #tpu.memory_space<vmem>>, vector<1x20xf32>,
      %129 = vector.extract_strided_slice %119 {offsets = [3, 0], sizes = [1, 20], strides = [1, 1]} : vector<6x20xf32> to vector<1x20xf32>
      %130 = arith.index_cast %arg20 : i32 to index
      %c60_164 = arith.constant 60 : index
      %131 = vector.load %arg19[%130, %c60_164] : memref<8x120xf32, #tpu.memory_space<vmem>>, vector<1x20xf32>
      tpu.vector_store %arg19[%130, %c60_164], %129 {strides = array<i32>} : memref<8x120xf32, #tpu.memory_space<vmem>>, vector<1x20xf32>,
      %132 = vector.extract_strided_slice %119 {offsets = [4, 0], sizes = [1, 20], strides = [1, 1]} : vector<6x20xf32> to vector<1x20xf32>
      %133 = arith.index_cast %arg20 : i32 to index
      %c80_165 = arith.constant 80 : index
      %134 = vector.load %arg19[%133, %c80_165] : memref<8x120xf32, #tpu.memory_space<vmem>>, vector<1x20xf32>
      tpu.vector_store %arg19[%133, %c80_165], %132 {strides = array<i32>} : memref<8x120xf32, #tpu.memory_space<vmem>>, vector<1x20xf32>,
      %135 = vector.extract_strided_slice %119 {offsets = [5, 0], sizes = [1, 20], strides = [1, 1]} : vector<6x20xf32> to vector<1x20xf32>
      %136 = arith.index_cast %arg20 : i32 to index
      %c100_166 = arith.constant 100 : index
      %137 = vector.load %arg19[%136, %c100_166] : memref<8x120xf32, #tpu.memory_space<vmem>>, vector<1x20xf32>
      tpu.vector_store %arg19[%136, %c100_166], %135 {strides = array<i32>} : memref<8x120xf32, #tpu.memory_space<vmem>>, vector<1x20xf32>,
    }
    %c8_i32_28 = arith.constant 8 : i32
    %c0_29 = arith.constant 0 : index
    %c0_30 = arith.constant 0 : index
    %25 = vector.load %arg19[%c0_29, %c0_30] : memref<8x120xf32, #tpu.memory_space<vmem>>, vector<8x120xf32>
    %c0_31 = arith.constant 0 : index
    %c0_32 = arith.constant 0 : index
    %26 = vector.load %arg5[%c0_31, %c0_32] : memref<120x5120xf32, #tpu.memory_space<vmem>>, vector<120x5120xf32>
    %cst_33 = arith.constant dense<0.000000e+00> : vector<8x5120xf32>
    %27 = tpu.matmul %25, %26, %cst_33 {dimension_numbers = #tpu.dot_dimension_numbers<[1], [0], [0], [1], [0, 0, 1, 1], [], []>} : vector<8x120xf32>, vector<120x5120xf32>, vector<8x5120xf32> -> vector<8x5120xf32>
    %c0_34 = arith.constant 0 : index
    %c0_35 = arith.constant 0 : index
    %28 = vector.load %arg9[%c0_34, %c0_35] : memref<8x5120xf32, #tpu.memory_space<vmem>>, vector<8x5120xf32>
    tpu.vector_store %arg9[%c0_34, %c0_35], %27 {strides = array<i32>} : memref<8x5120xf32, #tpu.memory_space<vmem>>, vector<8x5120xf32>,
    %29 = arith.truncf %27 : vector<8x5120xf32> to vector<8x5120xbf16>
    %c0_36 = arith.constant 0 : index
    %c0_37 = arith.constant 0 : index
    %30 = vector.load %arg6[%c0_36, %c0_37] : memref<5120x5xbf16, #tpu.memory_space<vmem>>, vector<5120x5xbf16>
    %cst_38 = arith.constant dense<0.000000e+00> : vector<8x5xf32>
    %31 = tpu.matmul %29, %30, %cst_38 {dimension_numbers = #tpu.dot_dimension_numbers<[1], [0], [0], [1], [0, 0, 1, 1], [], []>} : vector<8x5120xbf16>, vector<5120x5xbf16>, vector<8x5xf32> -> vector<8x5xf32>
    %c0_39 = arith.constant 0 : index
    %c0_40 = arith.constant 0 : index
    %32 = vector.load %arg7[%c0_39, %c0_40] : memref<1x5xf32, #tpu.memory_space<vmem>>, vector<1x5xf32>
    %33 = vector.broadcast %32 : vector<1x5xf32> to vector<8x5xf32>
    %34 = arith.addf %31, %33 : vector<8x5xf32>
    %c0_41 = arith.constant 0 : index
    %c0_42 = arith.constant 0 : index
    %35 = vector.load %arg8[%c0_41, %c0_42] : memref<8x5xf32, #tpu.memory_space<vmem>>, vector<8x5xf32>
    tpu.vector_store %arg8[%c0_41, %c0_42], %34 {strides = array<i32>} : memref<8x5xf32, #tpu.memory_space<vmem>>, vector<8x5xf32>,
    return
  }
  func.func @transform_0(%arg0: i32) -> (i32, i32, i32) {
    %c0_i32 = arith.constant 0 : i32
    %c0_i32_0 = arith.constant 0 : i32
    %c0_i32_1 = arith.constant 0 : i32
    return %arg0, %c0_i32, %c0_i32_0 : i32, i32, i32
  }
  func.func @transform_1(%arg0: i32) -> (i32, i32) {
    %c0_i32 = arith.constant 0 : i32
    %c0_i32_0 = arith.constant 0 : i32
    %c0_i32_1 = arith.constant 0 : i32
    return %c0_i32, %c0_i32_0 : i32, i32
  }
  func.func @transform_2(%arg0: i32) -> (i32, i32) {
    %c0_i32 = arith.constant 0 : i32
    %c0_i32_0 = arith.constant 0 : i32
    %c0_i32_1 = arith.constant 0 : i32
    return %c0_i32, %c0_i32_0 : i32, i32
  }
  func.func @transform_3(%arg0: i32) -> (i32, i32) {
    %c0_i32 = arith.constant 0 : i32
    %c0_i32_0 = arith.constant 0 : i32
    %c0_i32_1 = arith.constant 0 : i32
    return %c0_i32, %c0_i32_0 : i32, i32
  }
  func.func @transform_4(%arg0: i32) -> (i32, i32) {
    %c0_i32 = arith.constant 0 : i32
    %c0_i32_0 = arith.constant 0 : i32
    %c0_i32_1 = arith.constant 0 : i32
    return %c0_i32, %c0_i32_0 : i32, i32
  }
  func.func @transform_5(%arg0: i32) -> (i32, i32) {
    %c0_i32 = arith.constant 0 : i32
    %c0_i32_0 = arith.constant 0 : i32
    %c0_i32_1 = arith.constant 0 : i32
    return %c0_i32, %c0_i32_0 : i32, i32
  }
  func.func @transform_6(%arg0: i32) -> (i32, i32) {
    %c0_i32 = arith.constant 0 : i32
    %c0_i32_0 = arith.constant 0 : i32
    %c0_i32_1 = arith.constant 0 : i32
    return %c0_i32, %c0_i32_0 : i32, i32
  }
  func.func @transform_7(%arg0: i32) -> (i32, i32) {
    %c0_i32 = arith.constant 0 : i32
    %c0_i32_0 = arith.constant 0 : i32
    return %arg0, %c0_i32 : i32, i32
  }
  func.func @transform_8(%arg0: i32) -> (i32, i32) {
    %c0_i32 = arith.constant 0 : i32
    %c0_i32_0 = arith.constant 0 : i32
    return %arg0, %c0_i32 : i32, i32
  }
}

</mosaic_0001>

<bundles_post_ra>
// kernel: cnn1d_forward.1
= control target key start
LH: loop header
LB: loop body
LE: loop exit
PB: predicated region body
PF: predicated region fallthrough
CT: control target
= control target key end

     0   :  { %14 = vsyncpa [#allocation13], 0  ;;  %s11738_s0 = inlined_call_operand.vmem [shape: f32[8,128,4], index: 0, kind: input, shape index: {}]   ;;  %s11739_s1 = inlined_call_operand.vmem [shape: bf16[32,10], index: 1, kind: input, shape index: {}]   ;;  %s11740_s2 = inlined_call_operand.vmem [shape: bf16[80,20], index: 2, kind: input, shape index: {}]   ;;  %s11741_s3 = inlined_call_operand.vmem [shape: bf16[160,20], index: 3, kind: input, shape index: {}]   ;;  %s11742_s4 = inlined_call_operand.vmem [shape: f32[120,5120], index: 4, kind: input, shape index: {}]   ;;  %s11743_s5 = inlined_call_operand.vmem [shape: bf16[5120,5], index: 5, kind: input, shape index: {}]   ;;  %s11744_s6 = inlined_call_operand.vmem [shape: f32[1,5], index: 6, kind: input, shape index: {}]   ;;  %s11745_s7 = inlined_call_operand.hbm [shape: f32[8,5], index: 7, kind: output, shape index: {0}]   ;;  %s11746_s8 = inlined_call_operand.hbm [shape: f32[8,5120], index: 8, kind: output, shape index: {1}]  }
   0x1   :  { %15 = vsyncpa [#allocation15], 0  ;;  %vm31_vm0 = vcmask 27648   ;;  %vm34_vm1 = vcmask 76800   ;;  %vm37_vm2 = vcmask 158720   ;;  %v8364_v0 = vmov 0.0  }
   0x2   :  { %32 = vst.msk [vmem:[#allocation2] sm:$0xf] %vm31_vm0, %v8364_v0  ;;  %33 = vst.msk [vmem:[#allocation2 + $0x84] sm:$0xf] %vm31_vm0, %v8364_v0  ;;  %vm40_vm3 = vcmask 73728   ;;  %vm43_vm4 = vcmask 155648  }
   0x3   :  { %35 = vst.msk [vmem:[#allocation5] sm:$0xf] %vm34_vm1, %v8364_v0  ;;  %36 = vst.msk [vmem:[#allocation5 + $0x15] sm:$0xf] %vm34_vm1, %v8364_v0  ;;  %s8445_s27 = smov 0  }
   0x4   :  { %38 = vst.msk [vmem:[#allocation8] sm:$0xf] %vm37_vm2, %v8364_v0  ;;  %39 = vst.msk [vmem:[#allocation8 + $0xe] sm:$0xf] %vm37_vm2, %v8364_v0 }
   0x5   :  { %41 = vst.msk [vmem:[#allocation4] sm:$0x1] %vm40_vm3, %v8364_v0 }
   0x6   :  { %44 = vst.msk [vmem:[#allocation7] sm:$0x1] %vm43_vm4, %v8364_v0  ;;  %45 = vst.msk [vmem:[#allocation7 + $0x13] sm:$0x1] %vm43_vm4, %v8364_v0 }
   0x7   :  { %46 = vst.msk [vmem:[#allocation10] sm:$0x1] %vm43_vm4, %v8364_v0 }
   0x8 LB: > { %s6530_s28 = sshll.u32 %s8362_s27, 7  ;;  %vm72_vm5 = vcmask 31744   ;;  %s8365_s10 = smov 8   ;;  %v7967_v28 = vld [vmem:[%s11739_s1] sm:$0xff]   ;;  %v8369_v31 = vmov 0.0   ;;  %v7968_v34 = vld [vmem:[%s11739_s1 + $0x8] sm:$0xff]   ;;  %s8362_s27 = sphi %s8445_s27, %s53_s27  }
   0x9   : > { %s55_s9 = scalar_lea.vmem %s11738_s0, %s6530_s28  ;;  %s8366_s11 = smov 4   ;;  %7347 = vmatprep.subr.bf16.mxu1 %v8369_v31  ;;  %vm8372_vm6 = vmmov 0   ;;  %vm102_vm7 = vcmask 24576   ;;  %v224_v56 = vld [vmem:[#allocation2 + $0x84] ss:$4 sm:$0x1] }
   0xa   : > { %v56_v1 = vld [vmem:[%s55_s9] sm:$0xff]  ;;  %v57_v2 = vld [vmem:[%s55_s9 + $0x8] sm:$0xff]  ;;  %v58_v3 = vld [vmem:[%s55_s9 + $0x10] sm:$0xff]  ;;  %s8367_s12 = smov 12   ;;  %s8368_s15 = smov 16   ;;  %7348 = vmatpush3.bf16.msra.mxu1 %v7967_v28  ;;  %7351 = vmatprep.mubr.msk.bf16.mxu1 %vm8372_vm6, %v8369_v31  ;;  %vm134_vm8 = vcmask 64544  }
   0xb   : > { %v59_v4 = vld [vmem:[%s55_s9 + $0x18] sm:$0xff]  ;;  %73 = vst.msk [vmem:[#allocation2 + $0x4] sm:$0xff] %vm72_vm5, %v56_v1  ;;  %74 = vst.msk [vmem:[#allocation2 + $0xc] sm:$0xff] %vm72_vm5, %v57_v2  ;;  %v60_v5 = vld [vmem:[%s55_s9 + $0x20] sm:$0xff]  ;;  %7349 = vmatprep.subr.bf16.mxu1 %v8369_v31  ;;  %s8370_s18 = smov 20   ;;  %s8371_s19 = smov 24  }
   0xc   : > { %75 = vst.msk [vmem:[#allocation2 + $0x14] sm:$0xff] %vm72_vm5, %v58_v3  ;;  %v61_v6 = vld [vmem:[%s55_s9 + $0x28] sm:$0xff]  ;;  %76 = vst.msk [vmem:[#allocation2 + $0x1c] sm:$0xff] %vm72_vm5, %v59_v4  ;;  %v62_v7 = vld [vmem:[%s55_s9 + $0x30] sm:$0xff]  ;;  %s8373_s20 = smov 28   ;;  %vm171_vm9 = vcmask 97344  }
   0xd   : > { %v63_v8 = vld [vmem:[%s55_s9 + $0x38] sm:$0xff]  ;;  %77 = vst.msk [vmem:[#allocation2 + $0x24] sm:$0xff] %vm72_vm5, %v60_v5  ;;  %78 = vst.msk [vmem:[#allocation2 + $0x2c] sm:$0xff] %vm72_vm5, %v61_v6  ;;  %v68_v10 = vld [vmem:[%s55_s9 + $0x60] sm:$0xff]  ;;  %vm208_vm10 = vcmask 130144   ;;  %vm245_vm11 = vcmask 162944  }
   0xe   : > { %v67_v9 = vld [vmem:[%s55_s9 + $0x58] sm:$0xff]  ;;  %79 = vst.msk [vmem:[#allocation2 + $0x34] sm:$0xff] %vm72_vm5, %v62_v7  ;;  %80 = vst.msk [vmem:[#allocation2 + $0x3c] sm:$0xff] %vm72_vm5, %v63_v8  ;;  %v69_v11 = vld [vmem:[%s55_s9 + $0x68] sm:$0xff]  ;;  %7350 = vmatpush3.bf16.msra.mxu1 %v7968_v34  ;;  %vm282_vm12 = vcmask 195744   ;;  %vm319_vm13 = vcmask 228544  }
   0xf   : > { %v70_v12 = vld [vmem:[%s55_s9 + $0x70] sm:$0xff]  ;;  %84 = vst.msk [vmem:[#allocation2 + $0x5c] sm:$0xff] %vm72_vm5, %v67_v9  ;;  %v71_v13 = vld [vmem:[%s55_s9 + $0x78] sm:$0xff]  ;;  %85 = vst.msk [vmem:[#allocation2 + $0x64] sm:$0xff] %vm72_vm5, %v68_v10  ;;  %vm356_vm14 = vcmask 261344   ;;  %vm387_vm15 = vcmask 261120  }
  0x10   : > { %86 = vst.msk [vmem:[#allocation2 + $0x6c] sm:$0xff] %vm72_vm5, %v69_v11  ;;  %87 = vst.msk [vmem:[#allocation2 + $0x74] sm:$0xff] %vm72_vm5, %v70_v12  ;;  %v64_v14 = vld [vmem:[%s55_s9 + $0x40] sm:$0xff]  ;;  %v65_v15 = vld [vmem:[%s55_s9 + $0x48] sm:$0xff]  ;;  %vm139_vm0 = vcmask 57376   ;;  %vm176_vm1 = vcmask 90176  }
  0x11   : > { %88 = vst.msk [vmem:[#allocation2 + $0x7c] sm:$0xff] %vm72_vm5, %v71_v13  ;;  %v66_v16 = vld [vmem:[%s55_s9 + $0x50] sm:$0xff]  ;;  %81 = vst.msk [vmem:[#allocation2 + $0x44] sm:$0xff] %vm72_vm5, %v64_v14  ;;  %v261_v57 = vld [vmem:[#allocation2 + $0x85] ss:$4 sm:$0x1] }
  0x12   : > { %82 = vst.msk [vmem:[#allocation2 + $0x4c] sm:$0xff] %vm72_vm5, %v65_v15  ;;  %83 = vst.msk [vmem:[#allocation2 + $0x54] sm:$0xff] %vm72_vm5, %v66_v16  ;;  %v298_v58 = vld [vmem:[#allocation2 + $0x86] ss:$4 sm:$0x1]  ;;  %vm213_vm2 = vcmask 122976  }
  0x13   : > { %v142_v17 = vld [vmem:[#allocation2 + $0x2] ss:$4 sm:$0xff]  ;;  %v105_v18 = vld [vmem:[#allocation2 + $0x1] ss:$4 sm:$0xff]  ;;  %v179_v22 = vld [vmem:[#allocation2 + $0x3] ss:$4 sm:$0xff] }
  0x14   : > { %156 = vrot.lane.b32.xlu1 %v142_v17, %s8365_s10  ;;  %119 = vrot.lane.b32.xlu0 %v105_v18, %s8366_s11  ;;  %v216_v24 = vld [vmem:[#allocation2 + $0x4] ss:$4 sm:$0xff]  ;;  %v253_v30 = vld [vmem:[#allocation2 + $0x5] ss:$4 sm:$0xff]  ;;  %v290_v35 = vld [vmem:[#allocation2 + $0x6] ss:$4 sm:$0xff] }
  0x15   : > { %v144_v19 = vld [vmem:[#allocation2 + $0x22] ss:$4 sm:$0xff]  ;;  %v107_v20 = vld [vmem:[#allocation2 + $0x21] ss:$4 sm:$0xff]  ;;  %v181_v21 = vld [vmem:[#allocation2 + $0x23] ss:$4 sm:$0xff] }
  0x16   : > { %v218_v23 = vld [vmem:[#allocation2 + $0x24] ss:$4 sm:$0xff]  ;;  %v255_v27 = vld [vmem:[#allocation2 + $0x25] ss:$4 sm:$0xff]  ;;  %v292_v33 = vld [vmem:[#allocation2 + $0x26] ss:$4 sm:$0xff] }
  0x17   : > { %v89_v25 = vld [vmem:[#allocation2] ss:$4 sm:$0xff]  ;;  %v329_v36 = vld [vmem:[#allocation2 + $0x27] ss:$4 sm:$0xff]  ;;  %s8374_s21 = smov 50   ;;  %s8375_s22 = smov 60  }
  0x18   : > { %158 = vrot.lane.b32.xlu1 %v144_v19, %s8365_s10  ;;  %121 = vrot.lane.b32.xlu0 %v107_v20, %s8366_s11  ;;  %v91_v26 = vld [vmem:[#allocation2 + $0x20] ss:$4 sm:$0xff]  ;;  %98 = vst.msk [vmem:[#allocation3] sm:$0xff] %vm72_vm5, %v89_v25  ;;  %v327_v37 = vld [vmem:[#allocation2 + $0x7] ss:$4 sm:$0xff]  ;;  %s8376_s23 = smov 10  }
  0x19   : > { %99 = vst.msk [vmem:[#allocation3 + $0x8] sm:$0xff] %vm72_vm5, %v91_v26  ;;  %v95_v29 = vld [vmem:[#allocation2 + $0x60] ss:$4 sm:$0xff]  ;;  %v111_v38 = vld [vmem:[#allocation2 + $0x61] ss:$4 sm:$0xff]  ;;  %s8377_s24 = smov 40  }
  0x1a   : > { %101 = vst.msk [vmem:[#allocation3 + $0x18] sm:$0xff] %vm72_vm5, %v95_v29  ;;  %v93_v32 = vld [vmem:[#allocation2 + $0x40] ss:$4 sm:$0xff]  ;;  %v109_v39 = vld [vmem:[#allocation2 + $0x41] ss:$4 sm:$0xff]  ;;  %s8378_s25 = smov 30  }
  0x1b   : > { %100 = vst.msk [vmem:[#allocation3 + $0x10] sm:$0xff] %vm72_vm5, %v93_v32  ;;  %v148_v40 = vld [vmem:[#allocation2 + $0x62] ss:$4 sm:$0xff]  ;;  %v185_v42 = vld [vmem:[#allocation2 + $0x63] ss:$4 sm:$0xff]  ;;  %vm250_vm5 = vcmask 155776  }
  0x1c   : > { %195 = vrot.lane.b32.xlu1 %v181_v21, %s8367_s12  ;;  %193 = vrot.lane.b32.xlu0 %v179_v22, %s8367_s12  ;;  %v146_v41 = vld [vmem:[#allocation2 + $0x42] ss:$4 sm:$0xff]  ;;  %v183_v43 = vld [vmem:[#allocation2 + $0x43] ss:$4 sm:$0xff]  ;;  %v222_v44 = vld [vmem:[#allocation2 + $0x64] ss:$4 sm:$0xff] }
  0x1d   : > { %v220_v45 = vld [vmem:[#allocation2 + $0x44] ss:$4 sm:$0xff]  ;;  %v259_v47 = vld [vmem:[#allocation2 + $0x65] ss:$4 sm:$0xff]  ;;  %v296_v49 = vld [vmem:[#allocation2 + $0x66] ss:$4 sm:$0xff] }
  0x1e   : > { %v97_v46 = vld [vmem:[#allocation2 + $0x80] ss:$4 sm:$0x1]  ;;  %v257_v48 = vld [vmem:[#allocation2 + $0x45] ss:$4 sm:$0xff]  ;;  %s8379_s16 = smov 70  }
  0x1f   : > { %103 = vst.msk [vmem:[#allocation3 + $0x20] sm:$0x1] %vm102_vm7, %v97_v46  ;;  %v294_v50 = vld [vmem:[#allocation2 + $0x46] ss:$4 sm:$0xff]  ;;  %v333_v51 = vld [vmem:[#allocation2 + $0x67] ss:$4 sm:$0xff] }
  0x20   : > { %232 = vrot.lane.b32.xlu1 %v218_v23, %s8368_s15  ;;  %230 = vrot.lane.b32.xlu0 %v216_v24, %s8368_s15  ;;  %v331_v52 = vld [vmem:[#allocation2 + $0x47] ss:$4 sm:$0xff]  ;;  %v113_v53 = vld [vmem:[#allocation2 + $0x81] ss:$4 sm:$0x1]  ;;  %vm287_vm7 = vcmask 188576  }
  0x21   : > { %v150_v54 = vld [vmem:[#allocation2 + $0x82] ss:$4 sm:$0x1]  ;;  %v187_v55 = vld [vmem:[#allocation2 + $0x83] ss:$4 sm:$0x1] }
  0x22   : > { %v335_v59 = vld [vmem:[#allocation2 + $0x87] ss:$4 sm:$0x1]  ;;  %s8380_s17 = smov 120  }
  0x24   : > { %269 = vrot.lane.b32.xlu1 %v255_v27, %s8370_s18  ;;  %267 = vrot.lane.b32.xlu0 %v253_v30, %s8370_s18 }
  0x28   : > { %306 = vrot.lane.b32.xlu1 %v292_v33, %s8371_s19  ;;  %304 = vrot.lane.b32.xlu0 %v290_v35, %s8371_s19 }
  0x2c   : > { %343 = vrot.lane.b32.xlu1 %v329_v36, %s8373_s20  ;;  %341 = vrot.lane.b32.xlu0 %v327_v37, %s8373_s20 }
  0x30   : > { %125 = vrot.lane.b32.xlu1 %v111_v38, %s8366_s11  ;;  %123 = vrot.lane.b32.xlu0 %v109_v39, %s8366_s11 }
  0x34   : > { %162 = vrot.lane.b32.xlu1 %v148_v40, %s8365_s10  ;;  %160 = vrot.lane.b32.xlu0 %v146_v41, %s8365_s10  ;;  %v570_v41 = vld [vmem:[#allocation5 + $0x15] sm:$0x3] }
  0x38   : > { %199 = vrot.lane.b32.xlu1 %v185_v42, %s8367_s12  ;;  %197 = vrot.lane.b32.xlu0 %v183_v43, %s8367_s12  ;;  %v590_v42 = vld [vmem:[#allocation5 + $0x16] sm:$0x3] }
  0x3c   : > { %236 = vrot.lane.b32.xlu1 %v222_v44, %s8368_s15  ;;  %234 = vrot.lane.b32.xlu0 %v220_v45, %s8368_s15 }
  0x40   : > { %273 = vrot.lane.b32.xlu1 %v259_v47, %s8370_s18  ;;  %271 = vrot.lane.b32.xlu0 %v257_v48, %s8370_s18 }
  0x44   : > { %310 = vrot.lane.b32.xlu1 %v296_v49, %s8371_s19  ;;  %308 = vrot.lane.b32.xlu0 %v294_v50, %s8371_s19 }
  0x48   : > { %347 = vrot.lane.b32.xlu1 %v333_v51, %s8373_s20  ;;  %345 = vrot.lane.b32.xlu0 %v331_v52, %s8373_s20 }
  0x4c   : > { %127 = vrot.lane.b32.xlu0 %v113_v53, %s8366_s11  ;;  %164 = vrot.lane.b32.xlu1 %v150_v54, %s8365_s10 }
  0x50   : > { %201 = vrot.lane.b32.xlu0 %v187_v55, %s8367_s12  ;;  %238 = vrot.lane.b32.xlu1 %v224_v56, %s8368_s15  ;;  %s8382_s15 = smov 80  }
  0x54   : > { %275 = vrot.lane.b32.xlu0 %v261_v57, %s8370_s18  ;;  %312 = vrot.lane.b32.xlu1 %v298_v58, %s8371_s19 }
  0x58   : > { %349 = vrot.lane.b32.xlu0 %v335_v59, %s8373_s20  ;;  %578 = vrot.lane.b32.xlu1 %v570_v41, %s8374_s21  ;;  %s8383_s20 = smov 100  }
  0x5c   : > { %598 = vrot.lane.b32.xlu0 %v590_v42, %s8375_s22 }
  0x86   : > { %v157_v60 = vpop.permute.xlu1 %156  ;;  %v120_v61 = vpop.permute.xlu0 %119 }
  0x87   : > { %135 = vst.msk [vmem:[#allocation3] sm:$0xff] %vm134_vm8, %v120_v61 }
  0x88   : > { %172 = vst.msk [vmem:[#allocation3] sm:$0xff] %vm171_vm9, %v157_v60 }
  0x8a   : > { %v159_v62 = vpop.permute.xlu1 %158  ;;  %v122_v63 = vpop.permute.xlu0 %121 }
  0x8b   : > { %136 = vst.msk [vmem:[#allocation3 + $0x8] sm:$0xff] %vm134_vm8, %v122_v63 }
  0x8c   : > { %173 = vst.msk [vmem:[#allocation3 + $0x8] sm:$0xff] %vm171_vm9, %v159_v62 }
  0x8e   : > { %v196_v1 = vpop.permute.xlu1 %195  ;;  %v194_v2 = vpop.permute.xlu0 %193 }
  0x8f   : > { %210 = vst.msk [vmem:[#allocation3 + $0x8] sm:$0xff] %vm208_vm10, %v196_v1  ;;  %209 = vst.msk [vmem:[#allocation3] sm:$0xff] %vm208_vm10, %v194_v2 }
  0x92   : > { %v233_v3 = vpop.permute.xlu1 %232  ;;  %v231_v4 = vpop.permute.xlu0 %230 }
  0x93   : > { %247 = vst.msk [vmem:[#allocation3 + $0x8] sm:$0xff] %vm245_vm11, %v233_v3  ;;  %246 = vst.msk [vmem:[#allocation3] sm:$0xff] %vm245_vm11, %v231_v4 }
  0x96   : > { %v270_v5 = vpop.permute.xlu1 %269  ;;  %v268_v6 = vpop.permute.xlu0 %267 }
  0x97   : > { %284 = vst.msk [vmem:[#allocation3 + $0x8] sm:$0xff] %vm282_vm12, %v270_v5  ;;  %283 = vst.msk [vmem:[#allocation3] sm:$0xff] %vm282_vm12, %v268_v6 }
  0x9a   : > { %v307_v7 = vpop.permute.xlu1 %306  ;;  %v305_v8 = vpop.permute.xlu0 %304 }
  0x9b   : > { %321 = vst.msk [vmem:[#allocation3 + $0x8] sm:$0xff] %vm319_vm13, %v307_v7  ;;  %320 = vst.msk [vmem:[#allocation3] sm:$0xff] %vm319_vm13, %v305_v8 }
  0x9e   : > { %v344_v9 = vpop.permute.xlu1 %343  ;;  %v342_v10 = vpop.permute.xlu0 %341 }
  0x9f   : > { %358 = vst.msk [vmem:[#allocation3 + $0x8] sm:$0xff] %vm356_vm14, %v344_v9  ;;  %357 = vst.msk [vmem:[#allocation3] sm:$0xff] %vm356_vm14, %v342_v10 }
  0xa2   : > { %v126_v11 = vpop.permute.xlu1 %125  ;;  %v124_v12 = vpop.permute.xlu0 %123 }
  0xa3   : > { %138 = vst.msk [vmem:[#allocation3 + $0x18] sm:$0xff] %vm134_vm8, %v126_v11  ;;  %137 = vst.msk [vmem:[#allocation3 + $0x10] sm:$0xff] %vm134_vm8, %v124_v12  ;;  %vm324_vm8 = vcmask 221376  }
  0xa6   : > { %v163_v13 = vpop.permute.xlu1 %162  ;;  %v161_v14 = vpop.permute.xlu0 %160  ;;  %v363_v15 = vld [vmem:[#allocation3] sm:$0xff]  ;;  %v364_v16 = vld [vmem:[#allocation3 + $0x8] sm:$0xff] }
  0xa7   : > { %175 = vst.msk [vmem:[#allocation3 + $0x18] sm:$0xff] %vm171_vm9, %v163_v13  ;;  %174 = vst.msk [vmem:[#allocation3 + $0x10] sm:$0xff] %vm171_vm9, %v161_v14  ;;  %v368_v17 = vpack.c.bf16 %v364_v16, %v363_v15  ;;  %vm361_vm9 = vcmask 254176   ;;  %v7969_v16 = vld [vmem:[%s11740_s2] sm:$0xff]  }
  0xa8   : > { %7363 = vmatprep.subr.bf16.mxu1 %v7969_v16 }
  0xa9   : > { %7352 = vmatmul.mubr.msk.bf16.vlgmr.msra.gmra.mrb[0].mxu1 %vm387_vm15, %v368_v17  ;;  %v7970_v17 = vld [vmem:[%s11740_s2 + $0x8] sm:$0xff]  }
  0xaa   : > { %v200_v18 = vpop.permute.xlu1 %199  ;;  %v198_v19 = vpop.permute.xlu0 %197  ;;  %7355 = vmatprep.mubr.msk.bf16.mxu1 %vm8372_vm6, %v8369_v31  ;;  %7364 = vmatpush3.bf16.msra.mxu1 %v7969_v16 }
  0xab   : > { %212 = vst.msk [vmem:[#allocation3 + $0x18] sm:$0xff] %vm208_vm10, %v200_v18  ;;  %211 = vst.msk [vmem:[#allocation3 + $0x10] sm:$0xff] %vm208_vm10, %v198_v19  ;;  %vm458_vm10 = vcmask 80896   ;;  %7365 = vmatprep.subr.bf16.mxu1 %v7970_v17 }
  0xae   : > { %v237_v20 = vpop.permute.xlu1 %236  ;;  %v235_v21 = vpop.permute.xlu0 %234  ;;  %7366 = vmatpush3.bf16.msra.mxu1 %v7970_v17 }
  0xaf   : > { %249 = vst.msk [vmem:[#allocation3 + $0x18] sm:$0xff] %vm245_vm11, %v237_v20  ;;  %248 = vst.msk [vmem:[#allocation3 + $0x10] sm:$0xff] %vm245_vm11, %v235_v21  ;;  %v7971_v20 = vld [vmem:[%s11740_s2 + $0x10] sm:$0xff]   ;;  %vm503_vm11 = vcmask 162896  }
  0xb0   : > { %7367 = vmatprep.subr.bf16.mxu1 %v7971_v20 }
  0xb2   : > { %v274_v22 = vpop.permute.xlu1 %273  ;;  %v272_v23 = vpop.permute.xlu0 %271  ;;  %7368 = vmatpush3.bf16.msra.mxu1 %v7971_v20 }
  0xb3   : > { %286 = vst.msk [vmem:[#allocation3 + $0x18] sm:$0xff] %vm282_vm12, %v274_v22  ;;  %285 = vst.msk [vmem:[#allocation3 + $0x10] sm:$0xff] %vm282_vm12, %v272_v23  ;;  %vm523_vm12 = vcmask 244896  }
  0xb6   : > { %v311_v24 = vpop.permute.xlu1 %310  ;;  %v309_v25 = vpop.permute.xlu0 %308 }
  0xb7   : > { %323 = vst.msk [vmem:[#allocation3 + $0x18] sm:$0xff] %vm319_vm13, %v311_v24  ;;  %322 = vst.msk [vmem:[#allocation3 + $0x10] sm:$0xff] %vm319_vm13, %v309_v25  ;;  %v7972_v25 = vld [vmem:[%s11740_s2 + $0x18] sm:$0xff]   ;;  %vm543_vm13 = vcmask 326896  }
  0xb8   : > { %7369 = vmatprep.subr.bf16.mxu1 %v7972_v25 }
  0xb9   : > { %7370 = vmatpush3.bf16.msra.mxu1 %v7972_v25  ;;  %v7980_v25 = vld [vmem:[%s11741_s3 + $0x30] sm:$0xff]  }
  0xba   : > { %v348_v26 = vpop.permute.xlu1 %347  ;;  %v346_v27 = vpop.permute.xlu0 %345 }
  0xbb   : > { %360 = vst.msk [vmem:[#allocation3 + $0x18] sm:$0xff] %vm356_vm14, %v348_v26  ;;  %359 = vst.msk [vmem:[#allocation3 + $0x10] sm:$0xff] %vm356_vm14, %v346_v27  ;;  %v7973_v26 = vld [vmem:[%s11740_s2 + $0x20] sm:$0xff]   ;;  %vm563_vm14 = vcmask 408896  }
  0xbc   : > { %7371 = vmatprep.subr.bf16.mxu1 %v7973_v26 }
  0xbd   : > { %7372 = vmatpush3.bf16.msra.mxu1 %v7973_v26 }
  0xbe   : > { %v128_v28 = vpop.permute.xlu0 %127  ;;  %v165_v29 = vpop.permute.xlu1 %164 }
  0xbf   : > { %140 = vst.msk [vmem:[#allocation3 + $0x20] sm:$0x1] %vm139_vm0, %v128_v28  ;;  %vm506_vm0 = vcmask 156752  }
  0xc0   : > { %177 = vst.msk [vmem:[#allocation3 + $0x20] sm:$0x1] %vm176_vm1, %v165_v29  ;;  %vm526_vm1 = vcmask 238752  }
  0xc2   : > { %v202_v30 = vpop.permute.xlu0 %201  ;;  %v239_v32 = vpop.permute.xlu1 %238  ;;  %v365_v33 = vld [vmem:[#allocation3 + $0x10] sm:$0xff]  ;;  %v366_v34 = vld [vmem:[#allocation3 + $0x18] sm:$0xff] }
  0xc3   : > { %214 = vst.msk [vmem:[#allocation3 + $0x20] sm:$0x1] %vm213_vm2, %v202_v30  ;;  %v369_v35 = vpack.c.bf16 %v366_v34, %v365_v33  ;;  %vm583_vm2 = vcmask 490896  }
  0xc4   : > { %251 = vst.msk [vmem:[#allocation3 + $0x20] sm:$0x1] %vm250_vm5, %v239_v32  ;;  %v610_v32 = vld [vmem:[#allocation5 + $0x17] sm:$0x3]  ;;  %vm603_vm5 = vcmask 572896  }
  0xc5   : > { %7356 = vmatmul.mubr.msk.bf16.gmra.mrb[4].mxu1 %vm387_vm15, %v369_v35 }
  0xc6   : > { %v276_v36 = vpop.permute.xlu0 %275  ;;  %v313_v37 = vpop.permute.xlu1 %312  ;;  %7359 = vmatprep.mubr.msk.bf16.mxu1 %vm8372_vm6, %v8369_v31  ;;  %vm486_vm6 = vcmask 74752  }
  0xc7   : > { %288 = vst.msk [vmem:[#allocation3 + $0x20] sm:$0x1] %vm287_vm7, %v276_v36  ;;  %vm623_vm7 = vcmask 654896  }
  0xc8   : > { %325 = vst.msk [vmem:[#allocation3 + $0x20] sm:$0x1] %vm324_vm8, %v313_v37  ;;  %vm546_vm8 = vcmask 320752  }
  0xca   : > { %v350_v38 = vpop.permute.xlu0 %349  ;;  %v579_v33 = vpop.permute.xlu1 %578 }
  0xcb   : > { %362 = vst.msk [vmem:[#allocation3 + $0x20] sm:$0x1] %vm361_vm9, %v350_v38  ;;  %vm566_vm9 = vcmask 402752  }
  0xce   : > { %v599_v34 = vpop.permute.xlu0 %598 }
  0xd2   : > { %v367_v39 = vld [vmem:[#allocation3 + $0x20] sm:$0x1] }
  0xd3   : > { %v370_v40 = vpack.c.bf16 %v367_v39, %v367_v39 }
  0xd5   : > { %7360 = vmatmul.mubr.msk.bf16.gmra.mrb[8].mxu1 %vm387_vm15, %v370_v40 }
 0x17c   : > { %v431_v43 = vpop.f32.mrb[0].mxu1 }
 0x17d   : > { %v453_v31 = vmax.f32 %v431_v43, 0.0  ;;  %v7353_v44 = vpop.f32.mrb[1].mxu1 }
 0x17e   : > { %v434_v45 = vpop.f32.mrb[2].mxu1 }
 0x17f   : > { %459 = vst.msk [vmem:[#allocation4 + $0x1] sm:$0xff] %vm458_vm10, %v453_v31  ;;  %v454_v46 = vmax.f32 %v434_v45, 0.0  ;;  %v7354_v47 = vpop.f32.mrb[3].mxu1 }
 0x181   : > { %460 = vst.msk [vmem:[#allocation4 + $0x9] sm:$0xff] %vm458_vm10, %v454_v46 }
 0x188   : > { %v464_v48 = vld [vmem:[#allocation4] ss:$2 sm:$0xff]  ;;  %v470_v49 = vld [vmem:[#allocation4 + $0x1] ss:$2 sm:$0xff] }
 0x189   : > { %v475_v50 = vmax.f32 %v464_v48, %v470_v49 }
 0x18b   : > { %478 = vst.msk [vmem:[#allocation5 + $0x4] sm:$0xff] %vm458_vm10, %v475_v50 }
 0x192   : > { %v508_v51 = vld [vmem:[#allocation5 + $0x2] sm:$0xff] }
 0x193   : > { %v488_v52 = vld [vmem:[#allocation5 + $0x1] sm:$0xff]  ;;  %514 = vrot.lane.b32.xlu0 %v508_v51, %s8370_s18 }
 0x194   : > { %494 = vrot.lane.b32.xlu1 %v488_v52, %s8376_s23  ;;  %v481_v53 = vld [vmem:[#allocation5] sm:$0xff] }
 0x195   : > { %484 = vst.msk [vmem:[#allocation6] sm:$0xff] %vm458_vm10, %v481_v53  ;;  %v548_v54 = vld [vmem:[#allocation5 + $0x4] sm:$0xff] }
 0x196   : > { %v528_v55 = vld [vmem:[#allocation5 + $0x3] sm:$0xff] }
 0x197   : > { %554 = vrot.lane.b32.xlu0 %v548_v54, %s8377_s24 }
 0x198   : > { %534 = vrot.lane.b32.xlu1 %v528_v55, %s8378_s25  ;;  %v439_v56 = vpop.f32.mrb[4].mxu1 }
 0x199   : > { %v455_v57 = vmax.f32 %v439_v56, 0.0  ;;  %v7357_v58 = vpop.f32.mrb[5].mxu1 }
 0x19a   : > { %v442_v59 = vpop.f32.mrb[6].mxu1  ;;  %v823_v58 = vld [vmem:[#allocation8 + $0xe] sm:$0x7] }
 0x19b   : > { %461 = vst.msk [vmem:[#allocation4 + $0x11] sm:$0xff] %vm458_vm10, %v455_v57  ;;  %v456_v60 = vmax.f32 %v442_v59, 0.0  ;;  %v7358_v61 = vpop.f32.mrb[7].mxu1  ;;  %v7974_v59 = vld [vmem:[%s11741_s3] sm:$0xff]  }
 0x19d   : > { %462 = vst.msk [vmem:[#allocation4 + $0x19] sm:$0xff] %vm458_vm10, %v456_v60  ;;  %v8381_v60 = vmov 0  }
 0x19e   : > { %943 = vmatprep.subr.bf16.mxu0 %v8381_v60 }
 0x19f   : > { %944 = vmatpush1.bf16.msra.mxu0 %v7974_v59 }
 0x1a0   : > { %945 = vmatprep.subr.bf16.mxu0 %v8381_v60 }
 0x1a4   : > { %v466_v62 = vld [vmem:[#allocation4 + $0x10] ss:$2 sm:$0xff]  ;;  %v472_v63 = vld [vmem:[#allocation4 + $0x11] ss:$2 sm:$0xff] }
 0x1a5   : > { %v476_v1 = vmax.f32 %v466_v62, %v472_v63  ;;  %v468_v9 = vld [vmem:[#allocation4 + $0x20] ss:$2 sm:$0x1] }
 0x1a7   : > { %479 = vst.msk [vmem:[#allocation5 + $0xc] sm:$0xff] %vm458_vm10, %v476_v1 }
 0x1a8   : > { %v447_v2 = vpop.f32.mrb[8].mxu1 }
 0x1a9   : > { %v457_v3 = vmax.f32 %v447_v2, 0.0  ;;  %v7361_v4 = vpop.f32.mrb[9].mxu1 }
 0x1aa   : > { %v450_v5 = vpop.f32.mrb[10].mxu1 }
 0x1ab   : > { %463 = vst.msk [vmem:[#allocation4 + $0x21] sm:$0x1] %vm40_vm3, %v457_v3  ;;  %v7362_v6 = vpop.f32.mrb[11].mxu1 }
 0x1ae   : > { %v490_v7 = vld [vmem:[#allocation5 + $0x11] sm:$0x3]  ;;  %v489_v8 = vld [vmem:[#allocation5 + $0x9] sm:$0xff] }
 0x1af   : > { %498 = vrot.lane.b32.xlu1 %v490_v7, %s8376_s23  ;;  %496 = vrot.lane.b32.xlu0 %v489_v8, %s8376_s23  ;;  %v509_v10 = vld [vmem:[#allocation5 + $0xa] sm:$0xff]  ;;  %v510_v15 = vld [vmem:[#allocation5 + $0x12] sm:$0x3] }
 0x1b0   : > { %v483_v12 = vld [vmem:[#allocation5 + $0x10] sm:$0x3]  ;;  %v482_v13 = vld [vmem:[#allocation5 + $0x8] sm:$0xff] }
 0x1b1   : > { %487 = vst.msk [vmem:[#allocation6 + $0x10] sm:$0x3] %vm486_vm6, %v483_v12  ;;  %v549_v18 = vld [vmem:[#allocation5 + $0xc] sm:$0xff]  ;;  %vm606_vm6 = vcmask 566752  }
 0x1b2   : > { %v474_v11 = vld [vmem:[#allocation4 + $0x21] ss:$2 sm:$0x1]  ;;  %485 = vst.msk [vmem:[#allocation6 + $0x8] sm:$0xff] %vm458_vm10, %v482_v13  ;;  %v529_v19 = vld [vmem:[#allocation5 + $0xb] sm:$0xff]  ;;  %vm586_vm10 = vcmask 484752  }
 0x1b3   : > { %v477_v14 = vmax.f32 %v468_v9, %v474_v11  ;;  %516 = vrot.lane.b32.xlu1 %v509_v10, %s8370_s18  ;;  %518 = vrot.lane.b32.xlu0 %v510_v15, %s8370_s18  ;;  %v568_v21 = vld [vmem:[#allocation5 + $0x5] sm:$0xff]  ;;  %v7975_v7 = vld [vmem:[%s11741_s3 + $0x8] sm:$0xff]   ;;  %v7976_v13 = vld [vmem:[%s11741_s3 + $0x10] sm:$0xff]  }
 0x1b4   : > { %v588_v22 = vld [vmem:[#allocation5 + $0x6] sm:$0xff]  ;;  %946 = vmatpush1.bf16.msra.mxu0 %v7975_v7 }
 0x1b5   : > { %480 = vst.msk [vmem:[#allocation5 + $0x14] sm:$0x1] %vm40_vm3, %v477_v14  ;;  %v608_v23 = vld [vmem:[#allocation5 + $0x7] sm:$0xff]  ;;  %947 = vmatprep.subr.bf16.mxu0 %v8381_v60 }
 0x1b6   : > { %v7977_v14 = vld [vmem:[%s11741_s3 + $0x18] sm:$0xff]  }
 0x1b7   : > { %556 = vrot.lane.b32.xlu1 %v549_v18, %s8377_s24  ;;  %536 = vrot.lane.b32.xlu0 %v529_v19, %s8378_s25 }
 0x1b8   : > { %948 = vmatpush1.bf16.msra.mxu0 %v7976_v13 }
 0x1b9   : > { %949 = vmatprep.subr.bf16.mxu0 %v8381_v60 }
 0x1bb   : > { %574 = vrot.lane.b32.xlu1 %v568_v21, %s8374_s21  ;;  %594 = vrot.lane.b32.xlu0 %v588_v22, %s8375_s22  ;;  %v7978_v21 = vld [vmem:[%s11741_s3 + $0x20] sm:$0xff]   ;;  %v7979_v22 = vld [vmem:[%s11741_s3 + $0x28] sm:$0xff]  }
 0x1bc   : > { %v550_v24 = vld [vmem:[#allocation5 + $0x14] sm:$0x3]  ;;  %950 = vmatpush1.bf16.msra.mxu0 %v7977_v14 }
 0x1bd   : > { %v569_v27 = vld [vmem:[#allocation5 + $0xd] sm:$0xff]  ;;  %951 = vmatprep.subr.bf16.mxu0 %v8381_v60 }
 0x1be   : > { %v530_v28 = vld [vmem:[#allocation5 + $0x13] sm:$0x3] }
 0x1bf   : > { %614 = vrot.lane.b32.xlu1 %v608_v23, %s8379_s16  ;;  %558 = vrot.lane.b32.xlu0 %v550_v24, %s8377_s24  ;;  %v609_v29 = vld [vmem:[#allocation5 + $0xf] sm:$0xff] }
 0x1c0   : > { %v589_v30 = vld [vmem:[#allocation5 + $0xe] sm:$0xff]  ;;  %952 = vmatpush1.bf16.msra.mxu0 %v7978_v21 }
 0x1c1   : > { %953 = vmatprep.subr.bf16.mxu0 %v8381_v60 }
 0x1c3   : > { %576 = vrot.lane.b32.xlu0 %v569_v27, %s8374_s21  ;;  %538 = vrot.lane.b32.xlu1 %v530_v28, %s8378_s25  ;;  %v7981_v28 = vld [vmem:[%s11741_s3 + $0x38] sm:$0xff]  }
 0x1c4   : > { %954 = vmatpush1.bf16.msra.mxu0 %v7979_v22 }
 0x1c5   : > { %955 = vmatprep.subr.bf16.mxu0 %v8381_v60 }
 0x1c7   : > { %616 = vrot.lane.b32.xlu0 %v609_v29, %s8379_s16  ;;  %596 = vrot.lane.b32.xlu1 %v589_v30, %s8375_s22 }
 0x1c8   : > { %956 = vmatpush1.bf16.msra.mxu0 %v7980_v25 }
 0x1c9   : > { %957 = vmatprep.subr.bf16.mxu0 %v8381_v60 }
 0x1cb   : > { %618 = vrot.lane.b32.xlu1 %v610_v32, %s8379_s16  ;;  %v841_v32 = vld [vmem:[#allocation8 + $0xf] sm:$0x7] }
 0x1cc   : > { %958 = vmatpush1.bf16.msra.mxu0 %v7981_v28 }
 0x1cd   : > { %959 = vmatprep.subr.bf16.mxu0 %v8381_v60 }
 0x1cf   : > { %828 = vrot.lane.b32.xlu1 %v823_v58, %s8380_s17 }
 0x205   : > { %v515_v35 = vpop.permute.xlu0 %514 }
 0x206   : > { %v495_v36 = vpop.permute.xlu1 %494 }
 0x207   : > { %504 = vst.msk [vmem:[#allocation6] sm:$0xff] %vm503_vm11, %v495_v36 }
 0x208   : > { %524 = vst.msk [vmem:[#allocation6] sm:$0xff] %vm523_vm12, %v515_v35  ;;  %v7983_v35 = vld [vmem:[%s11741_s3 + $0x48] sm:$0xff]  }
 0x209   : > { %v555_v37 = vpop.permute.xlu0 %554 }
 0x20a   : > { %v535_v38 = vpop.permute.xlu1 %534 }
 0x20b   : > { %544 = vst.msk [vmem:[#allocation6] sm:$0xff] %vm543_vm13, %v535_v38 }
 0x20c   : > { %564 = vst.msk [vmem:[#allocation6] sm:$0xff] %vm563_vm14, %v555_v37 }
 0x221   : > { %v499_v39 = vpop.permute.xlu1 %498  ;;  %v497_v40 = vpop.permute.xlu0 %496 }
 0x222   : > { %507 = vst.msk [vmem:[#allocation6 + $0x10] sm:$0x3] %vm506_vm0, %v499_v39  ;;  %vm838_vm0 = vcmask 92160  }
 0x223   : > { %505 = vst.msk [vmem:[#allocation6 + $0x8] sm:$0xff] %vm503_vm11, %v497_v40  ;;  %vm626_vm11 = vcmask 648752  }
 0x225   : > { %v517_v41 = vpop.permute.xlu1 %516  ;;  %v519_v42 = vpop.permute.xlu0 %518 }
 0x226   : > { %525 = vst.msk [vmem:[#allocation6 + $0x8] sm:$0xff] %vm523_vm12, %v517_v41  ;;  %vm673_vm12 = vcmask 654336  }
 0x227   : > { %527 = vst.msk [vmem:[#allocation6 + $0x10] sm:$0x3] %vm526_vm1, %v519_v42  ;;  %vm750_vm1 = vcmask 157696  }
 0x229   : > { %v557_v43 = vpop.permute.xlu1 %556  ;;  %v537_v31 = vpop.permute.xlu0 %536 }
 0x22a   : > { %545 = vst.msk [vmem:[#allocation6 + $0x8] sm:$0xff] %vm543_vm13, %v537_v31  ;;  %vm734_vm13 = vcmask 156672  }
 0x22b   : > { %565 = vst.msk [vmem:[#allocation6 + $0x8] sm:$0xff] %vm563_vm14, %v557_v43  ;;  %vm731_vm14 = vcmask 162816  }
 0x22d   : > { %v575_v44 = vpop.permute.xlu1 %574  ;;  %v595_v45 = vpop.permute.xlu0 %594 }
 0x22e   : > { %584 = vst.msk [vmem:[#allocation6] sm:$0xff] %vm583_vm2, %v575_v44 }
 0x22f   : > { %604 = vst.msk [vmem:[#allocation6] sm:$0xff] %vm603_vm5, %v595_v45 }
 0x231   : > { %v615_v46 = vpop.permute.xlu1 %614  ;;  %v559_v47 = vpop.permute.xlu0 %558 }
 0x232   : > { %624 = vst.msk [vmem:[#allocation6] sm:$0xff] %vm623_vm7, %v615_v46 }
 0x235   : > { %v577_v48 = vpop.permute.xlu0 %576  ;;  %v539_v49 = vpop.permute.xlu1 %538 }
 0x236   : > { %585 = vst.msk [vmem:[#allocation6 + $0x8] sm:$0xff] %vm583_vm2, %v577_v48  ;;  %vm764_vm2 = vcmask 321696  }
 0x237   : > { %547 = vst.msk [vmem:[#allocation6 + $0x10] sm:$0x3] %vm546_vm8, %v539_v49  ;;  %vm776_vm8 = vcmask 490816  }
 0x238   : > { %567 = vst.msk [vmem:[#allocation6 + $0x10] sm:$0x3] %vm566_vm9, %v559_v47  ;;  %vm792_vm9 = vcmask 649696  }
 0x239   : > { %587 = vst.msk [vmem:[#allocation6 + $0x10] sm:$0x3] %vm586_vm10, %v579_v33  ;;  %v617_v50 = vpop.permute.xlu0 %616  ;;  %v597_v51 = vpop.permute.xlu1 %596  ;;  %v628_v53 = vld [vmem:[#allocation6] sm:$0xff]  ;;  %v7982_v33 = vld [vmem:[%s11741_s3 + $0x40] sm:$0xff]   ;;  %vm790_vm10 = vcmask 654816  }
 0x23a   : > { %607 = vst.msk [vmem:[#allocation6 + $0x10] sm:$0x3] %vm606_vm6, %v599_v34  ;;  %960 = vmatpush1.bf16.msra.mxu0 %v7982_v33  ;;  %vm806_vm6 = vcmask 813696  }
 0x23b   : > { %605 = vst.msk [vmem:[#allocation6 + $0x8] sm:$0xff] %vm603_vm5, %v597_v51  ;;  %961 = vmatprep.subr.bf16.mxu0 %v8381_v60  ;;  %vm762_vm5 = vcmask 326816  }
 0x23c   : > { %625 = vst.msk [vmem:[#allocation6 + $0x8] sm:$0xff] %vm623_vm7, %v617_v50  ;;  %vm778_vm7 = vcmask 485696  }
 0x23d   : > { %v619_v52 = vpop.permute.xlu1 %618 }
 0x23e   : > { %627 = vst.msk [vmem:[#allocation6 + $0x10] sm:$0x3] %vm626_vm11, %v619_v52  ;;  %962 = vmatpush1.bf16.msra.mxu0 %v7983_v35  ;;  %vm804_vm11 = vcmask 818816  }
 0x241   : > { %v8619_v5 = vpop.permute.xlu1 %828 }
 0x242   : > { %839 = vst.msk [vmem:[#allocation9 + $0x18] sm:$0x7] %vm838_vm0, %v8619_v5  ;;  %vm836_vm0 = vcmask 1043392  }
 0x243   : > { %v629_v54 = vld [vmem:[#allocation6 + $0x8] sm:$0xff] }
 0x244   : > { %v631_v55 = vpack.c.bf16 %v629_v54, %v628_v53 }
 0x245   : > { %v630_v56 = vld [vmem:[#allocation6 + $0x10] sm:$0x3] }
 0x246   : > { %7373 = vmatprep.mubr.msk.bf16.mxu1 %vm673_vm12, %v631_v55  ;;  %v632_v57 = vpack.c.bf16 %v630_v56, %v630_v56 }
 0x248   : > { %7374 = vmatmul.mubr.msk.bf16.vlgmr.msra.gmra.mrb[12].mxu1 %vm673_vm12, %v632_v57  ;;  %vm820_vm12 = vcmask 977696  }
 0x31b   : > { %v7375_v61 = vpop.f32.mrb[12].mxu1 }
 0x31c   : > { %v730_v62 = vmax.f32 %v7375_v61, 0.0  ;;  %v714_v63 = vpop.f32.mrb[13].mxu1 }
 0x31d   : > { %v728_v1 = vmax.f32 %v714_v63, 0.0  ;;  %v7376_v2 = vpop.f32.mrb[14].mxu1 }
 0x31e   : > { %735 = vst.msk [vmem:[#allocation7 + $0x11] sm:$0x3] %vm734_vm13, %v730_v62  ;;  %v717_v3 = vpop.f32.mrb[15].mxu1 }
 0x31f   : > { %732 = vst.msk [vmem:[#allocation7 + $0x1] sm:$0xff] %vm731_vm14, %v728_v1  ;;  %v729_v4 = vmax.f32 %v717_v3, 0.0 }
 0x321   : > { %733 = vst.msk [vmem:[#allocation7 + $0x9] sm:$0xff] %vm731_vm14, %v729_v4 }
 0x325   : > { %v742_v6 = vld [vmem:[#allocation7 + $0x11] ss:$2 sm:$0x3] }
 0x328   : > { %v736_v8 = vld [vmem:[#allocation7] ss:$2 sm:$0xff]  ;;  %v738_v9 = vld [vmem:[#allocation7 + $0x10] ss:$2 sm:$0x3] }
 0x329   : > { %v740_v10 = vld [vmem:[#allocation7 + $0x1] ss:$2 sm:$0xff]  ;;  %v744_v11 = vmax.f32 %v738_v9, %v742_v6 }
 0x32a   : > { %v743_v12 = vmax.f32 %v736_v8, %v740_v10 }
 0x32b   : > { %746 = vst.msk [vmem:[#allocation8 + $0xc] sm:$0x3] %vm734_vm13, %v744_v11  ;;  %vm834_vm13 = vcmask 97280  }
 0x32c   : > { %745 = vst.msk [vmem:[#allocation8 + $0x4] sm:$0xff] %vm731_vm14, %v743_v12 }
 0x332   : > { %v795_v26 = vld [vmem:[#allocation8 + $0xc] sm:$0x7] }
 0x333   : > { %v753_v15 = vld [vmem:[#allocation8 + $0x9] sm:$0x7]  ;;  %v752_v16 = vld [vmem:[#allocation8 + $0x1] sm:$0xff]  ;;  %v809_v29 = vld [vmem:[#allocation8 + $0xd] sm:$0x7] }
 0x334   : > { %758 = vrot.lane.b32.xlu1 %v753_v15, %s8370_s18  ;;  %756 = vrot.lane.b32.xlu0 %v752_v16, %s8370_s18  ;;  %v748_v17 = vld [vmem:[#allocation8 + $0x8] sm:$0x7]  ;;  %v747_v18 = vld [vmem:[#allocation8] sm:$0xff]  ;;  %v781_v23 = vld [vmem:[#allocation8 + $0xb] sm:$0x7] }
 0x335   : > { %v767_v19 = vld [vmem:[#allocation8 + $0xa] sm:$0x7]  ;;  %v766_v20 = vld [vmem:[#allocation8 + $0x2] sm:$0xff]  ;;  %751 = vst.msk [vmem:[#allocation9 + $0x10] sm:$0x7] %vm750_vm1, %v748_v17 }
 0x336   : > { %749 = vst.msk [vmem:[#allocation9] sm:$0xff] %vm731_vm14, %v747_v18  ;;  %v780_v24 = vld [vmem:[#allocation8 + $0x3] sm:$0xff] }
 0x337   : > { %v794_v27 = vld [vmem:[#allocation8 + $0x4] sm:$0xff] }
 0x338   : > { %772 = vrot.lane.b32.xlu1 %v767_v19, %s8377_s24  ;;  %770 = vrot.lane.b32.xlu0 %v766_v20, %s8377_s24  ;;  %v822_v30 = vld [vmem:[#allocation8 + $0x6] sm:$0xff] }
 0x339   : > { %v808_v34 = vld [vmem:[#allocation8 + $0x5] sm:$0xff] }
 0x33a   : > { %v840_v36 = vld [vmem:[#allocation8 + $0x7] sm:$0xff] }
 0x33c   : > { %786 = vrot.lane.b32.xlu1 %v781_v23, %s8375_s22  ;;  %784 = vrot.lane.b32.xlu0 %v780_v24, %s8375_s22 }
 0x340   : > { %800 = vrot.lane.b32.xlu1 %v795_v26, %s8382_s15  ;;  %798 = vrot.lane.b32.xlu0 %v794_v27, %s8382_s15 }
 0x344   : > { %814 = vrot.lane.b32.xlu1 %v809_v29, %s8383_s20  ;;  %826 = vrot.lane.b32.xlu0 %v822_v30, %s8380_s17 }
 0x348   : > { %812 = vrot.lane.b32.xlu0 %v808_v34, %s8383_s20  ;;  %846 = vrot.lane.b32.xlu1 %v841_v32, %s8367_s12 }
 0x34c   : > { %844 = vrot.lane.b32.xlu0 %v840_v36, %s8367_s12  ;;  %s992_s12 = scalar_lea.vmem [#allocation11], %s8362_s27  ;;  %s53_s27 = sadd.s32 1, %s8362_s27  }
 0x34d   : > { %p50_p0 = scmp.ge.s32.totalorder %s53_s27, 8  }
 0x34e   :  { %v1022_v6 = vld [vmem:[%s11742_s4 + $0x8] sm:$0xff] (%p50_p0)  ;;  %v1024_v8 = vld [vmem:[%s11742_s4 + $0x18] sm:$0xff] (%p50_p0)  ;;  %1760 = vmatprep.mubr.f32.mxu1 (%p50_p0), %v8364_v0  ;;  %v1021_v11 = vld [vmem:[%s11742_s4] sm:$0xff] (%p50_p0)  ;;  %vm1621_vm3 = vcmask (%p50_p0), 982016  }
 0x34f   :  { %v1062_v7 = vld [vmem:[%s11742_s4 + $0x148] sm:$0xff] (%p50_p0)  ;;  %v1064_v10 = vld [vmem:[%s11742_s4 + $0x158] sm:$0xff] (%p50_p0)  ;;  %v1061_v12 = vld [vmem:[%s11742_s4 + $0x140] sm:$0xff] (%p50_p0) }
 0x350   :  { %v7377_v9 = vpack.c.bf16 (%p50_p0), %v1062_v7, %v1022_v6  ;;  %v7405_v13 = vpack.c.bf16 (%p50_p0), %v1064_v10, %v1024_v8  ;;  %v7379_v14 = vpack.c.bf16 (%p50_p0), %v1061_v12, %v1021_v11  ;;  %v1023_v15 = vld [vmem:[%s11742_s4 + $0x10] sm:$0xff] (%p50_p0)  ;;  %v1102_v17 = vld [vmem:[%s11742_s4 + $0x288] sm:$0xff] (%p50_p0)  ;;  %v1104_v20 = vld [vmem:[%s11742_s4 + $0x298] sm:$0xff] (%p50_p0) }
 0x351   :  { %v1063_v16 = vld [vmem:[%s11742_s4 + $0x150] sm:$0xff] (%p50_p0)  ;;  %v1142_v19 = vld [vmem:[%s11742_s4 + $0x3c8] sm:$0xff] (%p50_p0)  ;;  %v1144_v21 = vld [vmem:[%s11742_s4 + $0x3d8] sm:$0xff] (%p50_p0) }
 0x352   :  { %7378 = vmatprep.subr.bf16.mxu0 (%p50_p0), %v7377_v9  ;;  %v7407_v18 = vpack.c.bf16 (%p50_p0), %v1063_v16, %v1023_v15  ;;  %7406 = vmatprep.subr.bf16.mxu1 (%p50_p0), %v7405_v13  ;;  %v7381_v22 = vpack.c.bf16 (%p50_p0), %v1142_v19, %v1102_v17  ;;  %v7409_v23 = vpack.c.bf16 (%p50_p0), %v1144_v21, %v1104_v20  ;;  %v1101_v24 = vld [vmem:[%s11742_s4 + $0x280] sm:$0xff] (%p50_p0)  ;;  %v1103_v26 = vld [vmem:[%s11742_s4 + $0x290] sm:$0xff] (%p50_p0)  ;;  %v1182_v29 = vld [vmem:[%s11742_s4 + $0x508] sm:$0xff] (%p50_p0) }
 0x353   :  { %v1141_v25 = vld [vmem:[%s11742_s4 + $0x3c0] sm:$0xff] (%p50_p0)  ;;  %v1143_v28 = vld [vmem:[%s11742_s4 + $0x3d0] sm:$0xff] (%p50_p0)  ;;  %v1222_v30 = vld [vmem:[%s11742_s4 + $0x648] sm:$0xff] (%p50_p0) }
 0x354   :  { %7408 = vmatpush1.bf16.msra.mxu1 (%p50_p0), %v7407_v18  ;;  %v7383_v27 = vpack.c.bf16 (%p50_p0), %v1141_v25, %v1101_v24  ;;  %v7411_v32 = vpack.c.bf16 (%p50_p0), %v1143_v28, %v1103_v26  ;;  %v7385_v33 = vpack.c.bf16 (%p50_p0), %v1222_v30, %v1182_v29  ;;  %v1184_v34 = vld [vmem:[%s11742_s4 + $0x518] sm:$0xff] (%p50_p0)  ;;  %v1181_v36 = vld [vmem:[%s11742_s4 + $0x500] sm:$0xff] (%p50_p0)  ;;  %v1423_v10 = vld [vmem:[%s11742_s4 + $0xc90] sm:$0xff] (%p50_p0) }
 0x355   :  { %7410 = vmatprep.subr.bf16.mxu1 (%p50_p0), %v7409_v23  ;;  %v1224_v35 = vld [vmem:[%s11742_s4 + $0x658] sm:$0xff] (%p50_p0)  ;;  %v1421_v8 = vld [vmem:[%s11742_s4 + $0xc80] sm:$0xff] (%p50_p0)  ;;  %v1463_v12 = vld [vmem:[%s11742_s4 + $0xdd0] sm:$0xff] (%p50_p0) }
 0x356   :  { %v1461_v9 = vld [vmem:[%s11742_s4 + $0xdc0] sm:$0xff] (%p50_p0)  ;;  %v1502_v13 = vld [vmem:[%s11742_s4 + $0xf08] sm:$0xff] (%p50_p0)  ;;  %v1504_v15 = vld [vmem:[%s11742_s4 + $0xf18] sm:$0xff] (%p50_p0)  ;;  %v7427_v18 = vpack.c.bf16 (%p50_p0), %v1463_v12, %v1423_v10 }
 0x357   :  { %v1544_v16 = vld [vmem:[%s11742_s4 + $0x1058] sm:$0xff] (%p50_p0)  ;;  %v7399_v17 = vpack.c.bf16 (%p50_p0), %v1461_v9, %v1421_v8  ;;  %v1501_v20 = vld [vmem:[%s11742_s4 + $0xf00] sm:$0xff] (%p50_p0)  ;;  %v1503_v23 = vld [vmem:[%s11742_s4 + $0xf10] sm:$0xff] (%p50_p0) }
 0x358   :  { %7412 = vmatpush1.bf16.msra.mxu1 (%p50_p0), %v7411_v32  ;;  %v1541_v21 = vld [vmem:[%s11742_s4 + $0x1040] sm:$0xff] (%p50_p0)  ;;  %v1543_v24 = vld [vmem:[%s11742_s4 + $0x1050] sm:$0xff] (%p50_p0)  ;;  %v1584_v28 = vld [vmem:[%s11742_s4 + $0x1198] sm:$0xff] (%p50_p0) }
 0x359   :  { %v7403_v25 = vpack.c.bf16 (%p50_p0), %v1541_v21, %v1501_v20  ;;  %v7431_v26 = vpack.c.bf16 (%p50_p0), %v1543_v24, %v1503_v23  ;;  %v1026_v29 = vld [vmem:[%s11742_s4 + $0x28] sm:$0xff] (%p50_p0)  ;;  %v1581_v30 = vld [vmem:[%s11742_s4 + $0x1180] sm:$0xff] (%p50_p0)  ;;  %v1267_v12 = vld [vmem:[%s11742_s4 + $0x7b0] sm:$0xff] (%p50_p0) }
 0x35a   :  { %v1066_v32 = vld [vmem:[%s11742_s4 + $0x168] sm:$0xff] (%p50_p0)  ;;  %v1265_v10 = vld [vmem:[%s11742_s4 + $0x7a0] sm:$0xff] (%p50_p0)  ;;  %v1347_v24 = vld [vmem:[%s11742_s4 + $0xa30] sm:$0xff] (%p50_p0) }
 0x35b   :  { %v1385_v23 = vld [vmem:[%s11742_s4 + $0xb60] sm:$0xff] (%p50_p0) }
 0x3a6   : > { %v759_v37 = vpop.permute.xlu1 %758  ;;  %v757_v38 = vpop.permute.xlu0 %756 }
 0x3a7   : > { %765 = vst.msk [vmem:[#allocation9 + $0x10] sm:$0x7] %vm764_vm2, %v759_v37  ;;  %vm818_vm2 = vcmask 982816   ;;  %v7413_v37 = vpack.c.bf16 (%p50_p0), %v1224_v35, %v1184_v34  ;;  %v1068_v34 = vld [vmem:[%s11742_s4 + $0x178] sm:$0xff] (%p50_p0)  ;;  %v1583_v35 = vld [vmem:[%s11742_s4 + $0x1190] sm:$0xff] (%p50_p0) }
 0x3a8   : > { %763 = vst.msk [vmem:[#allocation9] sm:$0xff] %vm762_vm5, %v757_v38  ;;  %vm852_vm5 = vcmask 256096   ;;  %v1221_v38 = vld [vmem:[%s11742_s4 + $0x640] sm:$0xff] (%p50_p0) }
 0x3a9   :  { %7414 = vmatprep.subr.bf16.mxu1 (%p50_p0), %v7413_v37  ;;  %v1065_v37 = vld [vmem:[%s11742_s4 + $0x160] sm:$0xff] (%p50_p0) }
 0x3aa   : > { %v773_v39 = vpop.permute.xlu1 %772  ;;  %v771_v40 = vpop.permute.xlu0 %770 }
 0x3ab   : > { %779 = vst.msk [vmem:[#allocation9 + $0x10] sm:$0x7] %vm778_vm7, %v773_v39  ;;  %vm832_vm7 = vcmask 1048512   ;;  %v1183_v39 = vld [vmem:[%s11742_s4 + $0x510] sm:$0xff] (%p50_p0) }
 0x3ac   : > { %777 = vst.msk [vmem:[#allocation9] sm:$0xff] %vm776_vm8, %v771_v40  ;;  %vm850_vm8 = vcmask 261216   ;;  %v1223_v40 = vld [vmem:[%s11742_s4 + $0x650] sm:$0xff] (%p50_p0) }
 0x3ae   : > { %v787_v41 = vpop.permute.xlu1 %786  ;;  %v785_v42 = vpop.permute.xlu0 %784 }
 0x3af   : > { %793 = vst.msk [vmem:[#allocation9 + $0x10] sm:$0x7] %vm792_vm9, %v787_v41  ;;  %vm1013_vm9 = vcmask 815748   ;;  %v7387_v41 = vpack.c.bf16 (%p50_p0), %v1221_v38, %v1181_v36  ;;  %v1025_v36 = vld [vmem:[%s11742_s4 + $0x20] sm:$0xff] (%p50_p0)  ;;  %v1027_v38 = vld [vmem:[%s11742_s4 + $0x30] sm:$0xff] (%p50_p0) }
 0x3b0   : > { %791 = vst.msk [vmem:[#allocation9] sm:$0xff] %vm790_vm10, %v785_v42  ;;  %vm1018_vm10 = vcmask 980773   ;;  %v1262_v42 = vld [vmem:[%s11742_s4 + $0x788] sm:$0xff] (%p50_p0) }
 0x3b2   : > { %v801_v43 = vpop.permute.xlu1 %800  ;;  %v799_v31 = vpop.permute.xlu0 %798 }
 0x3b3   : > { %807 = vst.msk [vmem:[#allocation9 + $0x10] sm:$0x7] %vm806_vm6, %v801_v43  ;;  %v1302_v43 = vld [vmem:[%s11742_s4 + $0x8c8] sm:$0xff] (%p50_p0) }
 0x3b4   : > { %805 = vst.msk [vmem:[#allocation9] sm:$0xff] %vm804_vm11, %v799_v31  ;;  %v1264_v31 = vld [vmem:[%s11742_s4 + $0x798] sm:$0xff] (%p50_p0) }
 0x3b6   : > { %v815_v44 = vpop.permute.xlu1 %814  ;;  %v827_v45 = vpop.permute.xlu0 %826 }
 0x3b7   : > { %821 = vst.msk [vmem:[#allocation9 + $0x10] sm:$0x7] %vm820_vm12, %v815_v44  ;;  %v7415_v44 = vpack.c.bf16 (%p50_p0), %v1223_v40, %v1183_v39  ;;  %v1067_v39 = vld [vmem:[%s11742_s4 + $0x170] sm:$0xff] (%p50_p0)  ;;  %v1106_v40 = vld [vmem:[%s11742_s4 + $0x2a8] sm:$0xff] (%p50_p0) }
 0x3b8   : > { %835 = vst.msk [vmem:[#allocation9 + $0x8] sm:$0xff] %vm834_vm13, %v827_v45 }
 0x3b9   : > { %837 = vst.msk [vmem:[#allocation9 + $0x10] sm:$0x7] %vm836_vm0, %v8619_v5  ;;  %7416 = vmatpush1.bf16.msra.mxu1 (%p50_p0), %v7415_v44  ;;  %v1108_v44 = vld [vmem:[%s11742_s4 + $0x2b8] sm:$0xff] (%p50_p0) }
 0x3ba   : > { %v813_v46 = vpop.permute.xlu0 %812  ;;  %v847_v47 = vpop.permute.xlu1 %846 }
 0x3bb   : > { %819 = vst.msk [vmem:[#allocation9] sm:$0xff] %vm818_vm2, %v813_v46  ;;  %v1304_v46 = vld [vmem:[%s11742_s4 + $0x8d8] sm:$0xff] (%p50_p0) }
 0x3bc   : > { %853 = vst.msk [vmem:[#allocation9 + $0x18] sm:$0x7] %vm852_vm5, %v847_v47  ;;  %v1261_v47 = vld [vmem:[%s11742_s4 + $0x780] sm:$0xff] (%p50_p0) }
 0x3bd   : > { %833 = vst.msk [vmem:[#allocation9] sm:$0xff] %vm832_vm7, %v827_v45  ;;  %v7389_v45 = vpack.c.bf16 (%p50_p0), %v1302_v43, %v1262_v42  ;;  %v7433_v43 = vpack.c.bf16 (%p50_p0), %v1066_v32, %v1026_v29  ;;  %v1428_v29 = vld [vmem:[%s11742_s4 + $0xcb8] sm:$0xff] (%p50_p0) }
 0x3be   : > { %v845_v48 = vpop.permute.xlu0 %844 }
 0x3bf   : > { %851 = vst.msk [vmem:[#allocation9 + $0x8] sm:$0xff] %vm850_vm8, %v845_v48  ;;  %v1301_v48 = vld [vmem:[%s11742_s4 + $0x8c0] sm:$0xff] (%p50_p0) }
 0x3c0   : > { %v856_v53 = vld [vmem:[#allocation9 + $0x10] sm:$0x7] }
 0x3c3   : > { %v857_v49 = vld [vmem:[#allocation9 + $0x18] sm:$0x7] }
 0x3c4   : > { %v854_v50 = vld [vmem:[#allocation9] sm:$0xff] }
 0x3c5   : > { %v858_v54 = vpack.c.bf16 %v856_v53, %v854_v50  ;;  %v1263_v50 = vld [vmem:[%s11742_s4 + $0x790] sm:$0xff] (%p50_p0)  ;;  %v1382_v53 = vld [vmem:[%s11742_s4 + $0xb48] sm:$0xff] (%p50_p0) }
 0x3c6   : > { %v855_v51 = vld [vmem:[#allocation9 + $0x8] sm:$0xff] }
 0x3c7   : > { %v859_v52 = vpack.c.bf16 %v857_v49, %v855_v51  ;;  %v7417_v49 = vpack.c.bf16 (%p50_p0), %v1304_v46, %v1264_v31  ;;  %v1303_v51 = vld [vmem:[%s11742_s4 + $0x8d0] sm:$0xff] (%p50_p0)  ;;  %v7435_v46 = vpack.c.bf16 (%p50_p0), %v1065_v37, %v1025_v36  ;;  %v1465_v36 = vld [vmem:[%s11742_s4 + $0xde0] sm:$0xff] (%p50_p0) }
 0x3c8   :  { %v1427_v37 = vld [vmem:[%s11742_s4 + $0xcb0] sm:$0xff] (%p50_p0) }
 0x3c9   : > { %6553 = vmatprep.mubr.msk.bf16.mxu0 %vm387_vm15, %v859_v52  ;;  %vm998_vm15 = vcmask 320673   ;;  %v1342_v52 = vld [vmem:[%s11742_s4 + $0xa08] sm:$0xff] (%p50_p0)  ;;  %7418 = vmatprep.subr.bf16.mxu1 (%p50_p0), %v7417_v49  ;;  %v1105_v49 = vld [vmem:[%s11742_s4 + $0x2a0] sm:$0xff] (%p50_p0) }
 0x3ca   : > { %976 = vmatmul.mubr.bf16.vlgmr.msra.gmra.mrb[0].mxu0 %v858_v54  ;;  %v1344_v54 = vld [vmem:[%s11742_s4 + $0xa18] sm:$0xff] (%p50_p0) }
 0x3cb   :  { %1689 = vmatprep.mubr.f32.mxu0 (%p50_p0), %v8364_v0  ;;  %7380 = vmatpush1.bf16.msra.mxu0 (%p50_p0), %v7379_v14  ;;  %v1542_v14 = vld [vmem:[%s11742_s4 + $0x1048] sm:$0xff] (%p50_p0) }
 0x3cc   :  { %7382 = vmatprep.subr.bf16.mxu0 (%p50_p0), %v7381_v22  ;;  %v7401_v19 = vpack.c.bf16 (%p50_p0), %v1542_v14, %v1502_v13  ;;  %v7429_v22 = vpack.c.bf16 (%p50_p0), %v1544_v16, %v1504_v15  ;;  %v1307_v14 = vld [vmem:[%s11742_s4 + $0x8f0] sm:$0xff] (%p50_p0)  ;;  %v1346_v15 = vld [vmem:[%s11742_s4 + $0xa28] sm:$0xff] (%p50_p0) }
 0x3cd   :  { %v1386_v16 = vld [vmem:[%s11742_s4 + $0xb68] sm:$0xff] (%p50_p0)  ;;  %v7475_v20 = vpack.c.bf16 (%p50_p0), %v1307_v14, %v1267_v12  ;;  %v1109_v12 = vld [vmem:[%s11742_s4 + $0x2c0] sm:$0xff] (%p50_p0)  ;;  %v1111_v14 = vld [vmem:[%s11742_s4 + $0x2d0] sm:$0xff] (%p50_p0) }
 0x3ce   :  { %v7449_v21 = vpack.c.bf16 (%p50_p0), %v1386_v16, %v1346_v15  ;;  %v1151_v16 = vld [vmem:[%s11742_s4 + $0x410] sm:$0xff] (%p50_p0) }
 0x3cf   :  { %7384 = vmatpush1.bf16.msra.mxu0 (%p50_p0), %v7383_v27  ;;  %v1582_v27 = vld [vmem:[%s11742_s4 + $0x1188] sm:$0xff] (%p50_p0) }
 0x3d0   :  { %7386 = vmatprep.subr.bf16.mxu0 (%p50_p0), %v7385_v33  ;;  %v1028_v33 = vld [vmem:[%s11742_s4 + $0x38] sm:$0xff] (%p50_p0) }
 0x3d1   :  { %v7461_v31 = vpack.c.bf16 (%p50_p0), %v1068_v34, %v1028_v33 }
 0x3d3   :  { %7388 = vmatpush1.bf16.msra.mxu0 (%p50_p0), %v7387_v41  ;;  %v1146_v41 = vld [vmem:[%s11742_s4 + $0x3e8] sm:$0xff] (%p50_p0) }
 0x3d4   :  { %7390 = vmatprep.subr.bf16.mxu0 (%p50_p0), %v7389_v45  ;;  %v1148_v45 = vld [vmem:[%s11742_s4 + $0x3f8] sm:$0xff] (%p50_p0) }
 0x49d   : > { %v977_v55 = vpop.f32.mrb[0].mxu0 }
 0x49e   : > { %v984_v56 = vmax.f32 %v977_v55, 0.0  ;;  %v979_v57 = vpop.f32.mrb[1].mxu0  ;;  %v1384_v55 = vld [vmem:[%s11742_s4 + $0xb58] sm:$0xff] (%p50_p0) }
 0x49f   : > { %v980_v58 = vpop.f32.mrb[2].mxu0  ;;  %v7419_v57 = vpack.c.bf16 (%p50_p0), %v1303_v51, %v1263_v50  ;;  %v1145_v50 = vld [vmem:[%s11742_s4 + $0x3e0] sm:$0xff] (%p50_p0)  ;;  %v1107_v51 = vld [vmem:[%s11742_s4 + $0x2b0] sm:$0xff] (%p50_p0) }
 0x4a0   : > { %986 = vst.msk [vmem:[#allocation10 + $0x1] sm:$0xff] %vm731_vm14, %v984_v56  ;;  %v985_v59 = vmax.f32 %v980_v58, 0.0  ;;  %v982_v60 = vpop.f32.mrb[3].mxu0  ;;  %vm1003_vm14 = vcmask 485698   ;;  %v7391_v56 = vpack.c.bf16 (%p50_p0), %v1301_v48, %v1261_v47  ;;  %v7393_v58 = vpack.c.bf16 (%p50_p0), %v1382_v53, %v1342_v52  ;;  %v1147_v53 = vld [vmem:[%s11742_s4 + $0x3f0] sm:$0xff] (%p50_p0) }
 0x4a1   :  { %v1381_v60 = vld [vmem:[%s11742_s4 + $0xb40] sm:$0xff] (%p50_p0)  ;;  %7420 = vmatpush1.bf16.msra.mxu1 (%p50_p0), %v7419_v57  ;;  %v7463_v47 = vpack.c.bf16 (%p50_p0), %v1067_v39, %v1027_v38  ;;  %v7437_v48 = vpack.c.bf16 (%p50_p0), %v1146_v41, %v1106_v40  ;;  %v7465_v52 = vpack.c.bf16 (%p50_p0), %v1148_v45, %v1108_v44  ;;  %v1228_v57 = vld [vmem:[%s11742_s4 + $0x678] sm:$0xff] (%p50_p0)  ;;  %v1467_v39 = vld [vmem:[%s11742_s4 + $0xdf0] sm:$0xff] (%p50_p0) }
 0x4a2   : > { %987 = vst.msk [vmem:[#allocation10 + $0x9] sm:$0x7] %vm750_vm1, %v985_v59  ;;  %vm1008_vm1 = vcmask 650723   ;;  %v1341_v59 = vld [vmem:[%s11742_s4 + $0xa00] sm:$0xff] (%p50_p0)  ;;  %7392 = vmatpush1.bf16.msra.mxu0 (%p50_p0), %v7391_v56  ;;  %v1188_v56 = vld [vmem:[%s11742_s4 + $0x538] sm:$0xff] (%p50_p0)  ;;  %v1506_v40 = vld [vmem:[%s11742_s4 + $0xf28] sm:$0xff] (%p50_p0)  ;;  %v7483_v45 = vpack.c.bf16 (%p50_p0), %v1467_v39, %v1427_v37 }
 0x4a3   :  { %7394 = vmatprep.subr.bf16.mxu0 (%p50_p0), %v7393_v58  ;;  %v7439_v58 = vpack.c.bf16 (%p50_p0), %v1145_v50, %v1105_v49  ;;  %v1546_v41 = vld [vmem:[%s11742_s4 + $0x1068] sm:$0xff] (%p50_p0)  ;;  %v1507_v50 = vld [vmem:[%s11742_s4 + $0xf30] sm:$0xff] (%p50_p0)  ;;  %v1269_v37 = vld [vmem:[%s11742_s4 + $0x7c0] sm:$0xff] (%p50_p0) }
 0x4a4   :  { %v1271_v39 = vld [vmem:[%s11742_s4 + $0x7d0] sm:$0xff] (%p50_p0) }
 0x4a9   : > { %v988_v61 = vld [vmem:[#allocation10] ss:$2 sm:$0x3f]  ;;  %v990_v62 = vld [vmem:[#allocation10 + $0x1] ss:$2 sm:$0x3f] }
 0x4aa   : > { %v991_v63 = vmax.f32 %v988_v61, %v990_v62  ;;  %v1343_v61 = vld [vmem:[%s11742_s4 + $0xa10] sm:$0xff] (%p50_p0)  ;;  %v7421_v62 = vpack.c.bf16 (%p50_p0), %v1384_v55, %v1344_v54  ;;  %v1186_v54 = vld [vmem:[%s11742_s4 + $0x528] sm:$0xff] (%p50_p0) }
 0x4ab   :  { %v1226_v55 = vld [vmem:[%s11742_s4 + $0x668] sm:$0xff] (%p50_p0) }
 0x4ac   : > { %1000 = vrot.lane.b32.xlu1 %v991_v63, %s8377_s24  ;;  %995 = vrot.lane.b32.xlu0 %v991_v63, %s8370_s18  ;;  %993 = vst.msk [vmem:[%s992_s12] sm:$0x1] %vm43_vm4, %v991_v63 }
 0x4ad   :  { %7422 = vmatprep.subr.bf16.mxu1 (%p50_p0), %v7421_v62  ;;  %v1225_v62 = vld [vmem:[%s11742_s4 + $0x660] sm:$0xff] (%p50_p0) }
 0x4b0   : > { %1010 = vrot.lane.b32.xlu1 %v991_v63, %s8382_s15  ;;  %1005 = vrot.lane.b32.xlu0 %v991_v63, %s8375_s22 }
 0x4b4   : > { %1015 = vrot.lane.b32.xlu0 %v991_v63, %s8383_s20  ;;  %v1383_v63 = vld [vmem:[%s11742_s4 + $0xb50] sm:$0xff] (%p50_p0) }
 0x4b5   :  { %v7423_v6 = vpack.c.bf16 (%p50_p0), %v1383_v63, %v1343_v61  ;;  %v1185_v61 = vld [vmem:[%s11742_s4 + $0x520] sm:$0xff] (%p50_p0)  ;;  %v1187_v63 = vld [vmem:[%s11742_s4 + $0x530] sm:$0xff] (%p50_p0) }
 0x4b7   :  { %7424 = vmatpush1.bf16.msra.mxu1 (%p50_p0), %v7423_v6  ;;  %v1308_v6 = vld [vmem:[%s11742_s4 + $0x8f8] sm:$0xff] (%p50_p0) }
 0x51e   : > { %v1001_v1 = vpop.permute.xlu1 %1000  ;;  %v996_v2 = vpop.permute.xlu0 %995 }
 0x51f   : > { %999 = vst.msk [vmem:[%s992_s12 - $0x1] sm:$0x2] %vm998_vm15, %v996_v2  ;;  %v1462_v2 = vld [vmem:[%s11742_s4 + $0xdc8] sm:$0xff] (%p50_p0) }
 0x520   : > { %1004 = vst.msk [vmem:[%s992_s12 - $0x2] sm:$0x4] %vm1003_vm14, %v1001_v1  ;;  %v1422_v1 = vld [vmem:[%s11742_s4 + $0xc88] sm:$0xff] (%p50_p0) }
 0x521   :  { %52 = sbr.rel (!%p50_p0) target bundleno = 8 (0x8), region = 113  ;;  %v7397_v7 = vpack.c.bf16 (%p50_p0), %v1462_v2, %v1422_v1  ;;  %v7469_v1 = vpack.c.bf16 (%p50_p0), %v1228_v57, %v1188_v56  ;;  %v1227_v2 = vld [vmem:[%s11742_s4 + $0x670] sm:$0xff] (%p50_p0)  ;;  %v1030_v56 = vld [vmem:[%s11742_s4 + $0x48] sm:$0xff] (%p50_p0)  ;;  %v1585_v57 = vld [vmem:[%s11742_s4 + $0x11a0] sm:$0xff] (%p50_p0) }
 0x522   : > { %v1011_v3 = vpop.permute.xlu1 %1010  ;;  %v1006_v4 = vpop.permute.xlu0 %1005  ;;  %v7471_v8 = vpack.c.bf16 (%p50_p0), %v1227_v2, %v1187_v63  ;;  %v1031_v63 = vld [vmem:[%s11742_s4 + $0x50] sm:$0xff] (%p50_p0)  ;;  %v1110_v2 = vld [vmem:[%s11742_s4 + $0x2c8] sm:$0xff] (%p50_p0) }
 0x523   : > { %1009 = vst.msk [vmem:[%s992_s12 - $0x3] sm:$0x8] %vm1008_vm1, %v1006_v4  ;;  %v1464_v4 = vld [vmem:[%s11742_s4 + $0xdd8] sm:$0xff] (%p50_p0) }
 0x524   : > { %1014 = vst.msk [vmem:[%s992_s12 - $0x4] sm:$0x10] %vm1013_vm9, %v1011_v3  ;;  %v1424_v3 = vld [vmem:[%s11742_s4 + $0xc98] sm:$0xff] (%p50_p0) }
 0x525   :  { %v7425_v11 = vpack.c.bf16 (%p50_p0), %v1464_v4, %v1424_v3  ;;  %v1266_v3 = vld [vmem:[%s11742_s4 + $0x7a8] sm:$0xff] (%p50_p0) }
 0x526   : > { %v1016_v5 = vpop.permute.xlu0 %1015  ;;  %v1306_v4 = vld [vmem:[%s11742_s4 + $0x8e8] sm:$0xff] (%p50_p0) }
 0x527   : > { %1019 = vst.msk [vmem:[%s992_s12 - $0x5] sm:$0x20] %vm1018_vm10, %v1016_v5  ;;  %v7395_v5 = vpack.c.bf16 (%p50_p0), %v1381_v60, %v1341_v59  ;;  %7426 = vmatprep.subr.bf16.mxu1 (%p50_p0), %v7425_v11  ;;  %v7467_v59 = vpack.c.bf16 (%p50_p0), %v1147_v53, %v1107_v51  ;;  %v7441_v60 = vpack.c.bf16 (%p50_p0), %v1226_v55, %v1186_v54  ;;  %v1305_v11 = vld [vmem:[%s11742_s4 + $0x8e0] sm:$0xff] (%p50_p0)  ;;  %v1547_v51 = vld [vmem:[%s11742_s4 + $0x1070] sm:$0xff] (%p50_p0)  ;;  %v1586_v54 = vld [vmem:[%s11742_s4 + $0x11a8] sm:$0xff] (%p50_p0) }
 0x528   :  { %7428 = vmatpush1.bf16.msra.mxu1 %v7427_v18  ;;  %v7445_v9 = vpack.c.bf16 %v1306_v4, %v1266_v3  ;;  %v1388_v18 = vld [vmem:[%s11742_s4 + $0xb78] sm:$0xff]  ;;  %v7487_v53 = vpack.c.bf16 %v1547_v51, %v1507_v50  ;;  %v1150_v3 = vld [vmem:[%s11742_s4 + $0x408] sm:$0xff]  ;;  %v1587_v4 = vld [vmem:[%s11742_s4 + $0x11b0] sm:$0xff] }
 0x529   :  { %7396 = vmatpush1.bf16.msra.mxu0 %v7395_v5  ;;  %7430 = vmatprep.subr.bf16.mxu1 %v7429_v22  ;;  %v1268_v5 = vld [vmem:[%s11742_s4 + $0x7b8] sm:$0xff]  ;;  %v1345_v22 = vld [vmem:[%s11742_s4 + $0xa20] sm:$0xff]  ;;  %v1351_v51 = vld [vmem:[%s11742_s4 + $0xa50] sm:$0xff] }
 0x52a   :  { %7398 = vmatprep.subr.bf16.mxu0 %v7397_v7  ;;  %v7443_v7 = vpack.c.bf16 %v1225_v62, %v1185_v61  ;;  %v7473_v13 = vpack.c.bf16 %v1308_v6, %v1268_v5  ;;  %v7451_v32 = vpack.c.bf16 %v1385_v23, %v1345_v22  ;;  %v1588_v55 = vld [vmem:[%s11742_s4 + $0x11b8] sm:$0xff]  ;;  %v1029_v61 = vld [vmem:[%s11742_s4 + $0x40] sm:$0xff]  ;;  %v7523_v22 = vpack.c.bf16 %v1151_v16, %v1111_v14  ;;  %v1551_v14 = vld [vmem:[%s11742_s4 + $0x1090] sm:$0xff] }
 0x52b   :  { %v1069_v62 = vld [vmem:[%s11742_s4 + $0x180] sm:$0xff] }
 0x52c   :  { %7432 = vmatpush1.bf16.msra.mxu1 %v7431_v26  ;;  %v1387_v26 = vld [vmem:[%s11742_s4 + $0xb70] sm:$0xff]  ;;  %v1389_v50 = vld [vmem:[%s11742_s4 + $0xb80] sm:$0xff] }
 0x52d   :  { %7400 = vmatpush1.bf16.msra.mxu0 %v7399_v17  ;;  %1724 = vmatprep.subr.mxu1 %v1584_v28  ;;  %v1348_v17 = vld [vmem:[%s11742_s4 + $0xa38] sm:$0xff]  ;;  %v1466_v28 = vld [vmem:[%s11742_s4 + $0xde8] sm:$0xff]  ;;  %v7479_v33 = vpack.c.bf16 %v1387_v26, %v1347_v24  ;;  %v1189_v24 = vld [vmem:[%s11742_s4 + $0x540] sm:$0xff] }
 0x52e   :  { %7402 = vmatprep.subr.bf16.mxu0 %v7401_v19  ;;  %v8901_v42 = vld [vmem:[#allocation11] sm:$0xff]  ;;  %v7447_v19 = vpack.c.bf16 %v1305_v11, %v1265_v10  ;;  %v7493_v11 = vpack.c.bf16 %v1150_v3, %v1110_v2  ;;  %v1510_v3 = vld [vmem:[%s11742_s4 + $0xf48] sm:$0xff] }
 0x52f   :  { %v1191_v26 = vld [vmem:[%s11742_s4 + $0x550] sm:$0xff] }
 0x530   :  { %1725 = vmatpush1.msra.mxu1 %v1583_v35  ;;  %v1425_v35 = vld [vmem:[%s11742_s4 + $0xca0] sm:$0xff]  ;;  %v1471_v2 = vld [vmem:[%s11742_s4 + $0xe10] sm:$0xff] }
 0x531   :  { %7404 = vmatpush1.bf16.msra.mxu0 %v7403_v25  ;;  %7462 = vmatprep.subr.bf16.mxu1 %v7461_v31  ;;  %v7477_v25 = vpack.c.bf16 %v1388_v18, %v1348_v17  ;;  %v1548_v31 = vld [vmem:[%s11742_s4 + $0x1078] sm:$0xff]  ;;  %v7455_v44 = vpack.c.bf16 %v1465_v36, %v1425_v35  ;;  %v1190_v17 = vld [vmem:[%s11742_s4 + $0x548] sm:$0xff] }
 0x532   :  { %1653 = vmatprep.subr.mxu0 %v1582_v27  ;;  %6555 = vmatmul.mubr.msk.f32.vlgmr.msra.gmra.mrb[0].mxu1 %vm1621_vm3, %v8901_v42  ;;  %v1426_v27 = vld [vmem:[%s11742_s4 + $0xca8] sm:$0xff] }
 0x533   :  { %7464 = vmatpush1.bf16.msra.mxu1 %v7463_v47  ;;  %1902 = vmatprep.mubr.f32.mxu1 %v8364_v0  ;;  %v7453_v34 = vpack.c.bf16 %v1466_v28, %v1426_v27  ;;  %v1505_v47 = vld [vmem:[%s11742_s4 + $0xf20] sm:$0xff]  ;;  %v1230_v18 = vld [vmem:[%s11742_s4 + $0x688] sm:$0xff]  ;;  %v1231_v28 = vld [vmem:[%s11742_s4 + $0x690] sm:$0xff] }
 0x534   :  { %7466 = vmatprep.subr.bf16.mxu1 %v7465_v52  ;;  %v7497_v23 = vpack.c.bf16 %v1230_v18, %v1190_v17  ;;  %v7527_v35 = vpack.c.bf16 %v1231_v28, %v1191_v26  ;;  %v1590_v17 = vld [vmem:[%s11742_s4 + $0x11c8] sm:$0xff]  ;;  %v1592_v18 = vld [vmem:[%s11742_s4 + $0x11d8] sm:$0xff]  ;;  %v1035_v26 = vld [vmem:[%s11742_s4 + $0x70] sm:$0xff] }
 0x535   :  { %1654 = vmatpush1.msra.mxu0 %v1581_v30  ;;  %v1468_v30 = vld [vmem:[%s11742_s4 + $0xdf8] sm:$0xff]  ;;  %v1114_v28 = vld [vmem:[%s11742_s4 + $0x2e8] sm:$0xff] }
 0x536   :  { %6554 = vmatmul.mubr.msk.f32.vlgmr.msra.gmra.mrb[0].mxu0 %vm1621_vm3, %v8901_v42  ;;  %7434 = vmatprep.subr.bf16.mxu0 %v7433_v43  ;;  %v7481_v38 = vpack.c.bf16 %v1468_v30, %v1428_v29  ;;  %v1508_v43 = vld [vmem:[%s11742_s4 + $0xf38] sm:$0xff]  ;;  %v1270_v29 = vld [vmem:[%s11742_s4 + $0x7c8] sm:$0xff] }
 0x537   :  { %7436 = vmatpush1.bf16.msra.mxu0 %v7435_v46  ;;  %1831 = vmatprep.mubr.f32.mxu0 %v8364_v0  ;;  %v7457_v46 = vpack.c.bf16 %v1546_v41, %v1506_v40  ;;  %v7485_v49 = vpack.c.bf16 %v1548_v31, %v1508_v43  ;;  %v1310_v30 = vld [vmem:[%s11742_s4 + $0x908] sm:$0xff]  ;;  %v1311_v41 = vld [vmem:[%s11742_s4 + $0x910] sm:$0xff] }
 0x538   :  { %7438 = vmatprep.subr.bf16.mxu0 %v7437_v48  ;;  %7468 = vmatpush1.bf16.msra.mxu1 %v7467_v59  ;;  %v1545_v48 = vld [vmem:[%s11742_s4 + $0x1060] sm:$0xff]  ;;  %v1032_v59 = vld [vmem:[%s11742_s4 + $0x58] sm:$0xff]  ;;  %v7501_v36 = vpack.c.bf16 %v1310_v30, %v1270_v29  ;;  %v1350_v43 = vld [vmem:[%s11742_s4 + $0xa48] sm:$0xff] }
 0x539   :  { %7470 = vmatprep.subr.bf16.mxu1 %v7469_v1  ;;  %v7459_v52 = vpack.c.bf16 %v1545_v48, %v1505_v47  ;;  %v1071_v1 = vld [vmem:[%s11742_s4 + $0x190] sm:$0xff]  ;;  %v1390_v31 = vld [vmem:[%s11742_s4 + $0xb88] sm:$0xff]  ;;  %v7531_v47 = vpack.c.bf16 %v1311_v41, %v1271_v39  ;;  %v1113_v39 = vld [vmem:[%s11742_s4 + $0x2e0] sm:$0xff] }
 0x53a   :  { %v7519_v10 = vpack.c.bf16 %v1071_v1, %v1031_v63  ;;  %v7505_v48 = vpack.c.bf16 %v1390_v31, %v1350_v43  ;;  %v1431_v63 = vld [vmem:[%s11742_s4 + $0xcd0] sm:$0xff]  ;;  %v1154_v29 = vld [vmem:[%s11742_s4 + $0x428] sm:$0xff] }
 0x53b   :  { %7440 = vmatpush1.bf16.msra.mxu0 %v7439_v58  ;;  %v1070_v58 = vld [vmem:[%s11742_s4 + $0x188] sm:$0xff]  ;;  %v1591_v30 = vld [vmem:[%s11742_s4 + $0x11d0] sm:$0xff] }
 0x53c   :  { %7442 = vmatprep.subr.bf16.mxu0 %v7441_v60  ;;  %7472 = vmatpush1.bf16.msra.mxu1 %v7471_v8  ;;  %v1072_v60 = vld [vmem:[%s11742_s4 + $0x198] sm:$0xff]  ;;  %v7489_v5 = vpack.c.bf16 %v1070_v58, %v1030_v56  ;;  %v1115_v41 = vld [vmem:[%s11742_s4 + $0x2f0] sm:$0xff] }
 0x53d   :  { %7474 = vmatprep.subr.bf16.mxu1 %v7473_v13  ;;  %v7517_v6 = vpack.c.bf16 %v1072_v60, %v1032_v59  ;;  %v1152_v8 = vld [vmem:[%s11742_s4 + $0x418] sm:$0xff]  ;;  %v1149_v13 = vld [vmem:[%s11742_s4 + $0x400] sm:$0xff]  ;;  %v1155_v31 = vld [vmem:[%s11742_s4 + $0x430] sm:$0xff] }
 0x53e   :  { %v1432_v56 = vld [vmem:[%s11742_s4 + $0xcd8] sm:$0xff] }
 0x53f   :  { %7444 = vmatpush1.bf16.msra.mxu0 %v7443_v7  ;;  %v1112_v7 = vld [vmem:[%s11742_s4 + $0x2d8] sm:$0xff] }
 0x540   :  { %7446 = vmatprep.subr.bf16.mxu0 %v7445_v9  ;;  %7476 = vmatpush1.bf16.msra.mxu1 %v7475_v20  ;;  %v7491_v9 = vpack.c.bf16 %v1069_v62, %v1029_v61  ;;  %v7521_v15 = vpack.c.bf16 %v1152_v8, %v1112_v7  ;;  %v1232_v20 = vld [vmem:[%s11742_s4 + $0x698] sm:$0xff]  ;;  %v1429_v61 = vld [vmem:[%s11742_s4 + $0xcc0] sm:$0xff]  ;;  %v7539_v8 = vpack.c.bf16 %v1471_v2, %v1431_v63  ;;  %v1275_v2 = vld [vmem:[%s11742_s4 + $0x7f0] sm:$0xff] }
 0x541   :  { %7478 = vmatprep.subr.bf16.mxu1 %v7477_v25  ;;  %v1229_v25 = vld [vmem:[%s11742_s4 + $0x680] sm:$0xff] }
 0x542   :  { %v1469_v62 = vld [vmem:[%s11742_s4 + $0xe00] sm:$0xff] }
 0x543   :  { %7448 = vmatpush1.bf16.msra.mxu0 %v7447_v19  ;;  %v1192_v19 = vld [vmem:[%s11742_s4 + $0x558] sm:$0xff]  ;;  %v7511_v7 = vpack.c.bf16 %v1469_v62, %v1429_v61  ;;  %v1273_v63 = vld [vmem:[%s11742_s4 + $0x7e0] sm:$0xff] }
 0x544   :  { %7450 = vmatprep.subr.bf16.mxu0 %v7449_v21  ;;  %7480 = vmatpush1.bf16.msra.mxu1 %v7479_v33  ;;  %v7495_v21 = vpack.c.bf16 %v1149_v13, %v1109_v12  ;;  %v7525_v27 = vpack.c.bf16 %v1232_v20, %v1192_v19  ;;  %v1312_v33 = vld [vmem:[%s11742_s4 + $0x918] sm:$0xff]  ;;  %v1511_v13 = vld [vmem:[%s11742_s4 + $0xf50] sm:$0xff]  ;;  %v1034_v19 = vld [vmem:[%s11742_s4 + $0x68] sm:$0xff] }
 0x545   :  { %7482 = vmatprep.subr.bf16.mxu1 %v7481_v38  ;;  %v1309_v38 = vld [vmem:[%s11742_s4 + $0x900] sm:$0xff]  ;;  %v7543_v16 = vpack.c.bf16 %v1551_v14, %v1511_v13  ;;  %v1355_v14 = vld [vmem:[%s11742_s4 + $0xa70] sm:$0xff] }
 0x546   :  { %v1589_v20 = vld [vmem:[%s11742_s4 + $0x11c0] sm:$0xff] }
 0x547   :  { %7452 = vmatpush1.bf16.msra.mxu0 %v7451_v32  ;;  %v1272_v32 = vld [vmem:[%s11742_s4 + $0x7d8] sm:$0xff]  ;;  %v1393_v13 = vld [vmem:[%s11742_s4 + $0xba0] sm:$0xff] }
 0x548   :  { %7454 = vmatprep.subr.bf16.mxu0 %v7453_v34  ;;  %7484 = vmatpush1.bf16.msra.mxu1 %v7483_v45  ;;  %v7499_v34 = vpack.c.bf16 %v1229_v25, %v1189_v24  ;;  %v7529_v40 = vpack.c.bf16 %v1312_v33, %v1272_v32  ;;  %v1392_v45 = vld [vmem:[%s11742_s4 + $0xb98] sm:$0xff]  ;;  %v1033_v24 = vld [vmem:[%s11742_s4 + $0x60] sm:$0xff] }
 0x549   :  { %7486 = vmatprep.subr.bf16.mxu1 %v7485_v49  ;;  %v1349_v49 = vld [vmem:[%s11742_s4 + $0xa40] sm:$0xff] }
 0x54a   :  { %v7507_v58 = vpack.c.bf16 %v1389_v50, %v1349_v49  ;;  %v1073_v25 = vld [vmem:[%s11742_s4 + $0x1a0] sm:$0xff]  ;;  %v7579_v49 = vpack.c.bf16 %v1155_v31, %v1115_v41  ;;  %v1555_v41 = vld [vmem:[%s11742_s4 + $0x10b0] sm:$0xff] }
 0x54b   :  { %7456 = vmatpush1.bf16.msra.mxu0 %v7455_v44  ;;  %v1352_v44 = vld [vmem:[%s11742_s4 + $0xa58] sm:$0xff] }
 0x54c   :  { %7458 = vmatprep.subr.bf16.mxu0 %v7457_v46  ;;  %7488 = vmatpush1.bf16.msra.mxu1 %v7487_v53  ;;  %v7503_v46 = vpack.c.bf16 %v1309_v38, %v1269_v37  ;;  %v1391_v53 = vld [vmem:[%s11742_s4 + $0xb90] sm:$0xff]  ;;  %v7549_v38 = vpack.c.bf16 %v1154_v29, %v1114_v28  ;;  %v1514_v29 = vld [vmem:[%s11742_s4 + $0xf68] sm:$0xff] }
 0x54d   :  { %1866 = vmatprep.subr.mxu1 %v1588_v55  ;;  %v1470_v55 = vld [vmem:[%s11742_s4 + $0xe08] sm:$0xff]  ;;  %v7535_v59 = vpack.c.bf16 %v1391_v53, %v1351_v51  ;;  %v1193_v51 = vld [vmem:[%s11742_s4 + $0x560] sm:$0xff]  ;;  %v1195_v53 = vld [vmem:[%s11742_s4 + $0x570] sm:$0xff] }
 0x54e   :  { %v1475_v28 = vld [vmem:[%s11742_s4 + $0xe30] sm:$0xff] }
 0x54f   :  { %7460 = vmatpush1.bf16.msra.mxu0 %v7459_v52  ;;  %v7533_v52 = vpack.c.bf16 %v1392_v45, %v1352_v44  ;;  %v1194_v44 = vld [vmem:[%s11742_s4 + $0x568] sm:$0xff] }
 0x550   :  { %1795 = vmatprep.subr.mxu0 %v1586_v54  ;;  %1867 = vmatpush1.msra.mxu1 %v1587_v4  ;;  %v1430_v54 = vld [vmem:[%s11742_s4 + $0xcc8] sm:$0xff] }
 0x551   :  { %7518 = vmatprep.subr.bf16.mxu1 %v7517_v6  ;;  %6557 = vmatmul.mubr.msk.f32.vlgmr.msra.gmra.mrb[2].mxu1 %vm1621_vm3, %v8901_v42  ;;  %v7509_v60 = vpack.c.bf16 %v1470_v55, %v1430_v54  ;;  %v1550_v4 = vld [vmem:[%s11742_s4 + $0x1088] sm:$0xff]  ;;  %v1552_v6 = vld [vmem:[%s11742_s4 + $0x1098] sm:$0xff]  ;;  %v1235_v55 = vld [vmem:[%s11742_s4 + $0x6b0] sm:$0xff] }
 0x552   :  { %7520 = vmatpush1.bf16.msra.mxu1 %v7519_v10  ;;  %2044 = vmatprep.mubr.f32.mxu1 %v8364_v0  ;;  %v1509_v10 = vld [vmem:[%s11742_s4 + $0xf40] sm:$0xff]  ;;  %v1234_v45 = vld [vmem:[%s11742_s4 + $0x6a8] sm:$0xff]  ;;  %v7583_v61 = vpack.c.bf16 %v1235_v55, %v1195_v53  ;;  %v1039_v53 = vld [vmem:[%s11742_s4 + $0x90] sm:$0xff] }
 0x553   :  { %1796 = vmatpush1.msra.mxu0 %v1585_v57  ;;  %7522 = vmatprep.subr.bf16.mxu1 %v7521_v15  ;;  %v1472_v57 = vld [vmem:[%s11742_s4 + $0xe18] sm:$0xff]  ;;  %v7553_v50 = vpack.c.bf16 %v1234_v45, %v1194_v44  ;;  %v1594_v44 = vld [vmem:[%s11742_s4 + $0x11e8] sm:$0xff] }
 0x554   :  { %6556 = vmatmul.mubr.msk.f32.vlgmr.msra.gmra.mrb[2].mxu0 %vm1621_vm3, %v8901_v42  ;;  %7490 = vmatprep.subr.bf16.mxu0 %v7489_v5  ;;  %v7537_v1 = vpack.c.bf16 %v1472_v57, %v1432_v56  ;;  %v1512_v5 = vld [vmem:[%s11742_s4 + $0xf58] sm:$0xff]  ;;  %v1274_v56 = vld [vmem:[%s11742_s4 + $0x7e8] sm:$0xff] }
 0x555   :  { %7492 = vmatpush1.bf16.msra.mxu0 %v7491_v9  ;;  %1973 = vmatprep.mubr.f32.mxu0 %v8364_v0  ;;  %v7513_v9 = vpack.c.bf16 %v1550_v4, %v1510_v3  ;;  %v7541_v12 = vpack.c.bf16 %v1552_v6, %v1512_v5  ;;  %v1314_v57 = vld [vmem:[%s11742_s4 + $0x928] sm:$0xff]  ;;  %v1315_v4 = vld [vmem:[%s11742_s4 + $0x930] sm:$0xff]  ;;  %v1596_v45 = vld [vmem:[%s11742_s4 + $0x11f8] sm:$0xff] }
 0x556   :  { %7494 = vmatprep.subr.bf16.mxu0 %v7493_v11  ;;  %7524 = vmatpush1.bf16.msra.mxu1 %v7523_v22  ;;  %v1549_v11 = vld [vmem:[%s11742_s4 + $0x1080] sm:$0xff]  ;;  %v1036_v22 = vld [vmem:[%s11742_s4 + $0x78] sm:$0xff]  ;;  %v7557_v62 = vpack.c.bf16 %v1314_v57, %v1274_v56  ;;  %v1354_v5 = vld [vmem:[%s11742_s4 + $0xa68] sm:$0xff] }
 0x557   :  { %7526 = vmatprep.subr.bf16.mxu1 %v7525_v27  ;;  %v7515_v15 = vpack.c.bf16 %v1549_v11, %v1509_v10  ;;  %v1075_v27 = vld [vmem:[%s11742_s4 + $0x1b0] sm:$0xff]  ;;  %v1394_v6 = vld [vmem:[%s11742_s4 + $0xba8] sm:$0xff]  ;;  %v7587_v10 = vpack.c.bf16 %v1315_v4, %v1275_v2  ;;  %v1117_v2 = vld [vmem:[%s11742_s4 + $0x300] sm:$0xff] }
 0x558   :  { %v7575_v37 = vpack.c.bf16 %v1075_v27, %v1035_v26  ;;  %v7561_v11 = vpack.c.bf16 %v1394_v6, %v1354_v5  ;;  %v1435_v26 = vld [vmem:[%s11742_s4 + $0xcf0] sm:$0xff]  ;;  %v1118_v55 = vld [vmem:[%s11742_s4 + $0x308] sm:$0xff] }
 0x559   :  { %7496 = vmatpush1.bf16.msra.mxu0 %v7495_v21  ;;  %v1074_v21 = vld [vmem:[%s11742_s4 + $0x1a8] sm:$0xff]  ;;  %v1595_v57 = vld [vmem:[%s11742_s4 + $0x11f0] sm:$0xff] }
 0x55a   :  { %7498 = vmatprep.subr.bf16.mxu0 %v7497_v23  ;;  %7528 = vmatpush1.bf16.msra.mxu1 %v7527_v35  ;;  %v1076_v23 = vld [vmem:[%s11742_s4 + $0x1b8] sm:$0xff]  ;;  %v7545_v32 = vpack.c.bf16 %v1074_v21, %v1034_v19  ;;  %v1158_v56 = vld [vmem:[%s11742_s4 + $0x448] sm:$0xff]  ;;  %v1119_v4 = vld [vmem:[%s11742_s4 + $0x310] sm:$0xff] }
 0x55b   :  { %7530 = vmatprep.subr.bf16.mxu1 %v7529_v40  ;;  %v7573_v33 = vpack.c.bf16 %v1076_v23, %v1036_v22  ;;  %v1156_v35 = vld [vmem:[%s11742_s4 + $0x438] sm:$0xff]  ;;  %v1153_v40 = vld [vmem:[%s11742_s4 + $0x420] sm:$0xff]  ;;  %v1159_v6 = vld [vmem:[%s11742_s4 + $0x450] sm:$0xff] }
 0x55c   :  { %v1436_v19 = vld [vmem:[%s11742_s4 + $0xcf8] sm:$0xff] }
 0x55d   :  { %7500 = vmatpush1.bf16.msra.mxu0 %v7499_v34  ;;  %v1116_v34 = vld [vmem:[%s11742_s4 + $0x2f8] sm:$0xff] }
 0x55e   :  { %7502 = vmatprep.subr.bf16.mxu0 %v7501_v36  ;;  %7532 = vmatpush1.bf16.msra.mxu1 %v7531_v47  ;;  %v7547_v36 = vpack.c.bf16 %v1073_v25, %v1033_v24  ;;  %v7577_v43 = vpack.c.bf16 %v1156_v35, %v1116_v34  ;;  %v1236_v47 = vld [vmem:[%s11742_s4 + $0x6b8] sm:$0xff]  ;;  %v1433_v24 = vld [vmem:[%s11742_s4 + $0xce0] sm:$0xff]  ;;  %v7595_v35 = vpack.c.bf16 %v1475_v28, %v1435_v26  ;;  %v1279_v28 = vld [vmem:[%s11742_s4 + $0x810] sm:$0xff] }
 0x55f   :  { %7534 = vmatprep.subr.bf16.mxu1 %v7533_v52  ;;  %v1233_v52 = vld [vmem:[%s11742_s4 + $0x6a0] sm:$0xff] }
 0x560   :  { %v1473_v25 = vld [vmem:[%s11742_s4 + $0xe20] sm:$0xff] }
 0x561   :  { %7504 = vmatpush1.bf16.msra.mxu0 %v7503_v46  ;;  %v1196_v46 = vld [vmem:[%s11742_s4 + $0x578] sm:$0xff]  ;;  %v7567_v34 = vpack.c.bf16 %v1473_v25, %v1433_v24  ;;  %v1277_v26 = vld [vmem:[%s11742_s4 + $0x800] sm:$0xff] }
 0x562   :  { %7506 = vmatprep.subr.bf16.mxu0 %v7505_v48  ;;  %7536 = vmatpush1.bf16.msra.mxu1 %v7535_v59  ;;  %v7551_v48 = vpack.c.bf16 %v1153_v40, %v1113_v39  ;;  %v7581_v54 = vpack.c.bf16 %v1236_v47, %v1196_v46  ;;  %v1316_v59 = vld [vmem:[%s11742_s4 + $0x938] sm:$0xff]  ;;  %v1515_v40 = vld [vmem:[%s11742_s4 + $0xf70] sm:$0xff]  ;;  %v1038_v46 = vld [vmem:[%s11742_s4 + $0x88] sm:$0xff] }
 0x563   :  { %7538 = vmatprep.subr.bf16.mxu1 %v7537_v1  ;;  %v1313_v1 = vld [vmem:[%s11742_s4 + $0x920] sm:$0xff]  ;;  %v7599_v31 = vpack.c.bf16 %v1555_v41, %v1515_v40  ;;  %v1359_v41 = vld [vmem:[%s11742_s4 + $0xa90] sm:$0xff] }
 0x564   :  { %v1593_v47 = vld [vmem:[%s11742_s4 + $0x11e0] sm:$0xff] }
 0x565   :  { %7508 = vmatpush1.bf16.msra.mxu0 %v7507_v58  ;;  %v1276_v58 = vld [vmem:[%s11742_s4 + $0x7f8] sm:$0xff]  ;;  %v1397_v40 = vld [vmem:[%s11742_s4 + $0xbc0] sm:$0xff] }
 0x566   :  { %7510 = vmatprep.subr.bf16.mxu0 %v7509_v60  ;;  %7540 = vmatpush1.bf16.msra.mxu1 %v7539_v8  ;;  %v7555_v60 = vpack.c.bf16 %v1233_v52, %v1193_v51  ;;  %v7585_v3 = vpack.c.bf16 %v1316_v59, %v1276_v58  ;;  %v1396_v8 = vld [vmem:[%s11742_s4 + $0xbb8] sm:$0xff]  ;;  %v1037_v51 = vld [vmem:[%s11742_s4 + $0x80] sm:$0xff] }
 0x567   :  { %7542 = vmatprep.subr.bf16.mxu1 %v7541_v12  ;;  %v1353_v12 = vld [vmem:[%s11742_s4 + $0xa60] sm:$0xff] }
 0x568   :  { %v7563_v21 = vpack.c.bf16 %v1393_v13, %v1353_v12  ;;  %v1077_v52 = vld [vmem:[%s11742_s4 + $0x1c0] sm:$0xff]  ;;  %v7635_v12 = vpack.c.bf16 %v1159_v6, %v1119_v4  ;;  %v1559_v4 = vld [vmem:[%s11742_s4 + $0x10d0] sm:$0xff] }
 0x569   :  { %7512 = vmatpush1.bf16.msra.mxu0 %v7511_v7  ;;  %v1356_v7 = vld [vmem:[%s11742_s4 + $0xa78] sm:$0xff] }
 0x56a   :  { %7514 = vmatprep.subr.bf16.mxu0 %v7513_v9  ;;  %7544 = vmatpush1.bf16.msra.mxu1 %v7543_v16  ;;  %v7559_v9 = vpack.c.bf16 %v1313_v1, %v1273_v63  ;;  %v1395_v16 = vld [vmem:[%s11742_s4 + $0xbb0] sm:$0xff]  ;;  %v7605_v1 = vpack.c.bf16 %v1158_v56, %v1118_v55  ;;  %v1518_v56 = vld [vmem:[%s11742_s4 + $0xf88] sm:$0xff] }
 0x56b   :  { %2008 = vmatprep.subr.mxu1 %v1592_v18  ;;  %v1474_v18 = vld [vmem:[%s11742_s4 + $0xe28] sm:$0xff]  ;;  %v7591_v22 = vpack.c.bf16 %v1395_v16, %v1355_v14  ;;  %v1197_v14 = vld [vmem:[%s11742_s4 + $0x580] sm:$0xff]  ;;  %v1199_v16 = vld [vmem:[%s11742_s4 + $0x590] sm:$0xff] }
 0x56c   :  { %v1479_v55 = vld [vmem:[%s11742_s4 + $0xe50] sm:$0xff] }
 0x56d   :  { %7516 = vmatpush1.bf16.msra.mxu0 %v7515_v15  ;;  %v7589_v15 = vpack.c.bf16 %v1396_v8, %v1356_v7  ;;  %v1198_v7 = vld [vmem:[%s11742_s4 + $0x588] sm:$0xff] }
 0x56e   :  { %1937 = vmatprep.subr.mxu0 %v1590_v17  ;;  %2009 = vmatpush1.msra.mxu1 %v1591_v30  ;;  %v1434_v17 = vld [vmem:[%s11742_s4 + $0xce8] sm:$0xff] }
 0x56f   :  { %7574 = vmatprep.subr.bf16.mxu1 %v7573_v33  ;;  %6559 = vmatmul.mubr.msk.f32.vlgmr.msra.gmra.mrb[4].mxu1 %vm1621_vm3, %v8901_v42  ;;  %v7565_v23 = vpack.c.bf16 %v1474_v18, %v1434_v17  ;;  %v1554_v30 = vld [vmem:[%s11742_s4 + $0x10a8] sm:$0xff]  ;;  %v1556_v33 = vld [vmem:[%s11742_s4 + $0x10b8] sm:$0xff]  ;;  %v1239_v18 = vld [vmem:[%s11742_s4 + $0x6d0] sm:$0xff] }
 0x570   :  { %7576 = vmatpush1.bf16.msra.mxu1 %v7575_v37  ;;  %2186 = vmatprep.mubr.f32.mxu1 %v8364_v0  ;;  %v1513_v37 = vld [vmem:[%s11742_s4 + $0xf60] sm:$0xff]  ;;  %v1238_v8 = vld [vmem:[%s11742_s4 + $0x6c8] sm:$0xff]  ;;  %v7639_v24 = vpack.c.bf16 %v1239_v18, %v1199_v16  ;;  %v1043_v16 = vld [vmem:[%s11742_s4 + $0xb0] sm:$0xff] }
 0x571   :  { %1938 = vmatpush1.msra.mxu0 %v1589_v20  ;;  %7578 = vmatprep.subr.bf16.mxu1 %v7577_v43  ;;  %v1476_v20 = vld [vmem:[%s11742_s4 + $0xe38] sm:$0xff]  ;;  %v7609_v13 = vpack.c.bf16 %v1238_v8, %v1198_v7  ;;  %v1598_v7 = vld [vmem:[%s11742_s4 + $0x1208] sm:$0xff] }
 0x572   :  { %6558 = vmatmul.mubr.msk.f32.vlgmr.msra.gmra.mrb[4].mxu0 %vm1621_vm3, %v8901_v42  ;;  %7546 = vmatprep.subr.bf16.mxu0 %v7545_v32  ;;  %v7593_v27 = vpack.c.bf16 %v1476_v20, %v1436_v19  ;;  %v1516_v32 = vld [vmem:[%s11742_s4 + $0xf78] sm:$0xff]  ;;  %v1278_v19 = vld [vmem:[%s11742_s4 + $0x808] sm:$0xff] }
 0x573   :  { %7548 = vmatpush1.bf16.msra.mxu0 %v7547_v36  ;;  %2115 = vmatprep.mubr.f32.mxu0 %v8364_v0  ;;  %v7569_v36 = vpack.c.bf16 %v1554_v30, %v1514_v29  ;;  %v7597_v39 = vpack.c.bf16 %v1556_v33, %v1516_v32  ;;  %v1318_v20 = vld [vmem:[%s11742_s4 + $0x948] sm:$0xff]  ;;  %v1319_v30 = vld [vmem:[%s11742_s4 + $0x950] sm:$0xff]  ;;  %v1600_v8 = vld [vmem:[%s11742_s4 + $0x1218] sm:$0xff] }
 0x574   :  { %7550 = vmatprep.subr.bf16.mxu0 %v7549_v38  ;;  %7580 = vmatpush1.bf16.msra.mxu1 %v7579_v49  ;;  %v1553_v38 = vld [vmem:[%s11742_s4 + $0x10a0] sm:$0xff]  ;;  %v1040_v49 = vld [vmem:[%s11742_s4 + $0x98] sm:$0xff]  ;;  %v7613_v25 = vpack.c.bf16 %v1318_v20, %v1278_v19  ;;  %v1358_v32 = vld [vmem:[%s11742_s4 + $0xa88] sm:$0xff] }
 0x575   :  { %7582 = vmatprep.subr.bf16.mxu1 %v7581_v54  ;;  %v7571_v43 = vpack.c.bf16 %v1553_v38, %v1513_v37  ;;  %v1079_v54 = vld [vmem:[%s11742_s4 + $0x1d0] sm:$0xff]  ;;  %v1398_v33 = vld [vmem:[%s11742_s4 + $0xbc8] sm:$0xff]  ;;  %v7643_v37 = vpack.c.bf16 %v1319_v30, %v1279_v28  ;;  %v1121_v28 = vld [vmem:[%s11742_s4 + $0x320] sm:$0xff] }
 0x576   :  { %v7631_v63 = vpack.c.bf16 %v1079_v54, %v1039_v53  ;;  %v7617_v38 = vpack.c.bf16 %v1398_v33, %v1358_v32  ;;  %v1439_v53 = vld [vmem:[%s11742_s4 + $0xd10] sm:$0xff]  ;;  %v1122_v18 = vld [vmem:[%s11742_s4 + $0x328] sm:$0xff] }
 0x577   :  { %7552 = vmatpush1.bf16.msra.mxu0 %v7551_v48  ;;  %v1078_v48 = vld [vmem:[%s11742_s4 + $0x1c8] sm:$0xff]  ;;  %v1599_v20 = vld [vmem:[%s11742_s4 + $0x1210] sm:$0xff] }
 0x578   :  { %7554 = vmatprep.subr.bf16.mxu0 %v7553_v50  ;;  %7584 = vmatpush1.bf16.msra.mxu1 %v7583_v61  ;;  %v1080_v50 = vld [vmem:[%s11742_s4 + $0x1d8] sm:$0xff]  ;;  %v7601_v58 = vpack.c.bf16 %v1078_v48, %v1038_v46  ;;  %v1162_v19 = vld [vmem:[%s11742_s4 + $0x468] sm:$0xff]  ;;  %v1123_v30 = vld [vmem:[%s11742_s4 + $0x330] sm:$0xff] }
 0x579   :  { %7586 = vmatprep.subr.bf16.mxu1 %v7585_v3  ;;  %v7629_v59 = vpack.c.bf16 %v1080_v50, %v1040_v49  ;;  %v1160_v61 = vld [vmem:[%s11742_s4 + $0x458] sm:$0xff]  ;;  %v1157_v3 = vld [vmem:[%s11742_s4 + $0x440] sm:$0xff]  ;;  %v1163_v33 = vld [vmem:[%s11742_s4 + $0x470] sm:$0xff] }
 0x57a   :  { %v1440_v46 = vld [vmem:[%s11742_s4 + $0xd18] sm:$0xff] }
 0x57b   :  { %7556 = vmatpush1.bf16.msra.mxu0 %v7555_v60  ;;  %v1120_v60 = vld [vmem:[%s11742_s4 + $0x318] sm:$0xff] }
 0x57c   :  { %7558 = vmatprep.subr.bf16.mxu0 %v7557_v62  ;;  %7588 = vmatpush1.bf16.msra.mxu1 %v7587_v10  ;;  %v7603_v62 = vpack.c.bf16 %v1077_v52, %v1037_v51  ;;  %v7633_v5 = vpack.c.bf16 %v1160_v61, %v1120_v60  ;;  %v1240_v10 = vld [vmem:[%s11742_s4 + $0x6d8] sm:$0xff]  ;;  %v1437_v51 = vld [vmem:[%s11742_s4 + $0xd00] sm:$0xff]  ;;  %v7651_v61 = vpack.c.bf16 %v1479_v55, %v1439_v53  ;;  %v1283_v55 = vld [vmem:[%s11742_s4 + $0x830] sm:$0xff] }
 0x57d   :  { %7590 = vmatprep.subr.bf16.mxu1 %v7589_v15  ;;  %v1237_v15 = vld [vmem:[%s11742_s4 + $0x6c0] sm:$0xff] }
 0x57e   :  { %v1477_v52 = vld [vmem:[%s11742_s4 + $0xe40] sm:$0xff] }
 0x57f   :  { %7560 = vmatpush1.bf16.msra.mxu0 %v7559_v9  ;;  %v1200_v9 = vld [vmem:[%s11742_s4 + $0x598] sm:$0xff]  ;;  %v7623_v60 = vpack.c.bf16 %v1477_v52, %v1437_v51  ;;  %v1281_v53 = vld [vmem:[%s11742_s4 + $0x820] sm:$0xff] }
 0x580   :  { %7562 = vmatprep.subr.bf16.mxu0 %v7561_v11  ;;  %7592 = vmatpush1.bf16.msra.mxu1 %v7591_v22  ;;  %v7607_v11 = vpack.c.bf16 %v1157_v3, %v1117_v2  ;;  %v7637_v17 = vpack.c.bf16 %v1240_v10, %v1200_v9  ;;  %v1320_v22 = vld [vmem:[%s11742_s4 + $0x958] sm:$0xff]  ;;  %v1519_v3 = vld [vmem:[%s11742_s4 + $0xf90] sm:$0xff]  ;;  %v1042_v9 = vld [vmem:[%s11742_s4 + $0xa8] sm:$0xff] }
 0x581   :  { %7594 = vmatprep.subr.bf16.mxu1 %v7593_v27  ;;  %v1317_v27 = vld [vmem:[%s11742_s4 + $0x940] sm:$0xff]  ;;  %v7655_v6 = vpack.c.bf16 %v1559_v4, %v1519_v3  ;;  %v1363_v4 = vld [vmem:[%s11742_s4 + $0xab0] sm:$0xff] }
 0x582   :  { %v1597_v10 = vld [vmem:[%s11742_s4 + $0x1200] sm:$0xff] }
 0x583   :  { %7564 = vmatpush1.bf16.msra.mxu0 %v7563_v21  ;;  %v1280_v21 = vld [vmem:[%s11742_s4 + $0x818] sm:$0xff]  ;;  %v1401_v3 = vld [vmem:[%s11742_s4 + $0xbe0] sm:$0xff] }
 0x584   :  { %7566 = vmatprep.subr.bf16.mxu0 %v7565_v23  ;;  %7596 = vmatpush1.bf16.msra.mxu1 %v7595_v35  ;;  %v7611_v23 = vpack.c.bf16 %v1237_v15, %v1197_v14  ;;  %v7641_v29 = vpack.c.bf16 %v1320_v22, %v1280_v21  ;;  %v1400_v35 = vld [vmem:[%s11742_s4 + $0xbd8] sm:$0xff]  ;;  %v1041_v14 = vld [vmem:[%s11742_s4 + $0xa0] sm:$0xff] }
 0x585   :  { %7598 = vmatprep.subr.bf16.mxu1 %v7597_v39  ;;  %v1357_v39 = vld [vmem:[%s11742_s4 + $0xa80] sm:$0xff] }
 0x586   :  { %v7619_v48 = vpack.c.bf16 %v1397_v40, %v1357_v39  ;;  %v1081_v15 = vld [vmem:[%s11742_s4 + $0x1e0] sm:$0xff]  ;;  %v7691_v39 = vpack.c.bf16 %v1163_v33, %v1123_v30  ;;  %v1563_v30 = vld [vmem:[%s11742_s4 + $0x10f0] sm:$0xff] }
 0x587   :  { %7568 = vmatpush1.bf16.msra.mxu0 %v7567_v34  ;;  %v1360_v34 = vld [vmem:[%s11742_s4 + $0xa98] sm:$0xff] }
 0x588   :  { %7570 = vmatprep.subr.bf16.mxu0 %v7569_v36  ;;  %7600 = vmatpush1.bf16.msra.mxu1 %v7599_v31  ;;  %v7615_v36 = vpack.c.bf16 %v1317_v27, %v1277_v26  ;;  %v1399_v31 = vld [vmem:[%s11742_s4 + $0xbd0] sm:$0xff]  ;;  %v7661_v27 = vpack.c.bf16 %v1162_v19, %v1122_v18  ;;  %v1522_v19 = vld [vmem:[%s11742_s4 + $0xfa8] sm:$0xff] }
 0x589   :  { %2150 = vmatprep.subr.mxu1 %v1596_v45  ;;  %v1478_v45 = vld [vmem:[%s11742_s4 + $0xe48] sm:$0xff]  ;;  %v7647_v49 = vpack.c.bf16 %v1399_v31, %v1359_v41  ;;  %v1201_v41 = vld [vmem:[%s11742_s4 + $0x5a0] sm:$0xff]  ;;  %v1203_v31 = vld [vmem:[%s11742_s4 + $0x5b0] sm:$0xff] }
 0x58a   :  { %v1483_v18 = vld [vmem:[%s11742_s4 + $0xe70] sm:$0xff] }
 0x58b   :  { %7572 = vmatpush1.bf16.msra.mxu0 %v7571_v43  ;;  %v7645_v43 = vpack.c.bf16 %v1400_v35, %v1360_v34  ;;  %v1202_v34 = vld [vmem:[%s11742_s4 + $0x5a8] sm:$0xff] }
 0x58c   :  { %2079 = vmatprep.subr.mxu0 %v1594_v44  ;;  %2151 = vmatpush1.msra.mxu1 %v1595_v57  ;;  %v1438_v44 = vld [vmem:[%s11742_s4 + $0xd08] sm:$0xff] }
 0x58d   :  { %7630 = vmatprep.subr.bf16.mxu1 %v7629_v59  ;;  %6561 = vmatmul.mubr.msk.f32.vlgmr.msra.gmra.mrb[6].mxu1 %vm1621_vm3, %v8901_v42  ;;  %v7621_v50 = vpack.c.bf16 %v1478_v45, %v1438_v44  ;;  %v1558_v57 = vld [vmem:[%s11742_s4 + $0x10c8] sm:$0xff]  ;;  %v1560_v59 = vld [vmem:[%s11742_s4 + $0x10d8] sm:$0xff]  ;;  %v1243_v45 = vld [vmem:[%s11742_s4 + $0x6f0] sm:$0xff] }
 0x58e   :  { %7632 = vmatpush1.bf16.msra.mxu1 %v7631_v63  ;;  %2328 = vmatprep.mubr.f32.mxu1 %v8364_v0  ;;  %v1517_v63 = vld [vmem:[%s11742_s4 + $0xf80] sm:$0xff]  ;;  %v1242_v35 = vld [vmem:[%s11742_s4 + $0x6e8] sm:$0xff]  ;;  %v7695_v51 = vpack.c.bf16 %v1243_v45, %v1203_v31  ;;  %v1047_v31 = vld [vmem:[%s11742_s4 + $0xd0] sm:$0xff] }
 0x58f   :  { %2080 = vmatpush1.msra.mxu0 %v1593_v47  ;;  %7634 = vmatprep.subr.bf16.mxu1 %v7633_v5  ;;  %v1480_v47 = vld [vmem:[%s11742_s4 + $0xe58] sm:$0xff]  ;;  %v7665_v40 = vpack.c.bf16 %v1242_v35, %v1202_v34  ;;  %v1602_v34 = vld [vmem:[%s11742_s4 + $0x1228] sm:$0xff] }
 0x590   :  { %6560 = vmatmul.mubr.msk.f32.vlgmr.msra.gmra.mrb[6].mxu0 %vm1621_vm3, %v8901_v42  ;;  %7602 = vmatprep.subr.bf16.mxu0 %v7601_v58  ;;  %v7649_v54 = vpack.c.bf16 %v1480_v47, %v1440_v46  ;;  %v1520_v58 = vld [vmem:[%s11742_s4 + $0xf98] sm:$0xff]  ;;  %v1282_v46 = vld [vmem:[%s11742_s4 + $0x828] sm:$0xff] }
 0x591   :  { %7604 = vmatpush1.bf16.msra.mxu0 %v7603_v62  ;;  %2257 = vmatprep.mubr.f32.mxu0 %v8364_v0  ;;  %v7625_v62 = vpack.c.bf16 %v1558_v57, %v1518_v56  ;;  %v7653_v2 = vpack.c.bf16 %v1560_v59, %v1520_v58  ;;  %v1322_v47 = vld [vmem:[%s11742_s4 + $0x968] sm:$0xff]  ;;  %v1323_v57 = vld [vmem:[%s11742_s4 + $0x970] sm:$0xff]  ;;  %v1604_v35 = vld [vmem:[%s11742_s4 + $0x1238] sm:$0xff] }
 0x592   :  { %7606 = vmatprep.subr.bf16.mxu0 %v7605_v1  ;;  %7636 = vmatpush1.bf16.msra.mxu1 %v7635_v12  ;;  %v1557_v1 = vld [vmem:[%s11742_s4 + $0x10c0] sm:$0xff]  ;;  %v1044_v12 = vld [vmem:[%s11742_s4 + $0xb8] sm:$0xff]  ;;  %v7669_v52 = vpack.c.bf16 %v1322_v47, %v1282_v46  ;;  %v1362_v58 = vld [vmem:[%s11742_s4 + $0xaa8] sm:$0xff] }
 0x593   :  { %7638 = vmatprep.subr.bf16.mxu1 %v7637_v17  ;;  %v7627_v5 = vpack.c.bf16 %v1557_v1, %v1517_v63  ;;  %v1083_v17 = vld [vmem:[%s11742_s4 + $0x1f0] sm:$0xff]  ;;  %v1402_v59 = vld [vmem:[%s11742_s4 + $0xbe8] sm:$0xff]  ;;  %v7699_v63 = vpack.c.bf16 %v1323_v57, %v1283_v55  ;;  %v1125_v55 = vld [vmem:[%s11742_s4 + $0x340] sm:$0xff] }
 0x594   :  { %v7687_v26 = vpack.c.bf16 %v1083_v17, %v1043_v16  ;;  %v7673_v1 = vpack.c.bf16 %v1402_v59, %v1362_v58  ;;  %v1443_v16 = vld [vmem:[%s11742_s4 + $0xd30] sm:$0xff]  ;;  %v1126_v45 = vld [vmem:[%s11742_s4 + $0x348] sm:$0xff] }
 0x595   :  { %7608 = vmatpush1.bf16.msra.mxu0 %v7607_v11  ;;  %v1082_v11 = vld [vmem:[%s11742_s4 + $0x1e8] sm:$0xff]  ;;  %v1603_v47 = vld [vmem:[%s11742_s4 + $0x1230] sm:$0xff] }
 0x596   :  { %7610 = vmatprep.subr.bf16.mxu0 %v7609_v13  ;;  %7640 = vmatpush1.bf16.msra.mxu1 %v7639_v24  ;;  %v1084_v13 = vld [vmem:[%s11742_s4 + $0x1f8] sm:$0xff]  ;;  %v7657_v21 = vpack.c.bf16 %v1082_v11, %v1042_v9  ;;  %v1166_v46 = vld [vmem:[%s11742_s4 + $0x488] sm:$0xff]  ;;  %v1127_v57 = vld [vmem:[%s11742_s4 + $0x350] sm:$0xff] }
 0x597   :  { %7642 = vmatprep.subr.bf16.mxu1 %v7641_v29  ;;  %v7685_v22 = vpack.c.bf16 %v1084_v13, %v1044_v12  ;;  %v1164_v24 = vld [vmem:[%s11742_s4 + $0x478] sm:$0xff]  ;;  %v1161_v29 = vld [vmem:[%s11742_s4 + $0x460] sm:$0xff]  ;;  %v1167_v59 = vld [vmem:[%s11742_s4 + $0x490] sm:$0xff] }
 0x598   :  { %v1444_v9 = vld [vmem:[%s11742_s4 + $0xd38] sm:$0xff] }
 0x599   :  { %7612 = vmatpush1.bf16.msra.mxu0 %v7611_v23  ;;  %v1124_v23 = vld [vmem:[%s11742_s4 + $0x338] sm:$0xff] }
 0x59a   :  { %7614 = vmatprep.subr.bf16.mxu0 %v7613_v25  ;;  %7644 = vmatpush1.bf16.msra.mxu1 %v7643_v37  ;;  %v7659_v25 = vpack.c.bf16 %v1081_v15, %v1041_v14  ;;  %v7689_v32 = vpack.c.bf16 %v1164_v24, %v1124_v23  ;;  %v9679_v37 = vld [vmem:[#allocation11] sm:$0xff]  ;;  %v1441_v14 = vld [vmem:[%s11742_s4 + $0xd20] sm:$0xff]  ;;  %v7707_v24 = vpack.c.bf16 %v1483_v18, %v1443_v16 }
 0x59b   :  { %7646 = vmatprep.subr.bf16.mxu1 %v7645_v43  ;;  %v1241_v43 = vld [vmem:[%s11742_s4 + $0x6e0] sm:$0xff]  ;;  %v1287_v18 = vld [vmem:[%s11742_s4 + $0x850] sm:$0xff] }
 0x59c   :  { %v1481_v15 = vld [vmem:[%s11742_s4 + $0xe60] sm:$0xff] }
 0x59d   :  { %7616 = vmatpush1.bf16.msra.mxu0 %v7615_v36  ;;  %v1204_v36 = vld [vmem:[%s11742_s4 + $0x5b8] sm:$0xff]  ;;  %v7679_v23 = vpack.c.bf16 %v1481_v15, %v1441_v14  ;;  %v1285_v16 = vld [vmem:[%s11742_s4 + $0x840] sm:$0xff] }
 0x59e   :  { %7618 = vmatprep.subr.bf16.mxu0 %v7617_v38  ;;  %7648 = vmatpush1.bf16.msra.mxu1 %v7647_v49  ;;  %v7663_v38 = vpack.c.bf16 %v1161_v29, %v1121_v28  ;;  %v1324_v49 = vld [vmem:[%s11742_s4 + $0x978] sm:$0xff]  ;;  %v1523_v29 = vld [vmem:[%s11742_s4 + $0xfb0] sm:$0xff] }
 0x59f   :  { %7650 = vmatprep.subr.bf16.mxu1 %v7649_v54  ;;  %v1321_v54 = vld [vmem:[%s11742_s4 + $0x960] sm:$0xff]  ;;  %v7711_v33 = vpack.c.bf16 %v1563_v30, %v1523_v29  ;;  %v1407_v29 = vld [vmem:[%s11742_s4 + $0xc10] sm:$0xff] }
 0x5a1   :  { %7620 = vmatpush1.bf16.msra.mxu0 %v7619_v48  ;;  %v1284_v48 = vld [vmem:[%s11742_s4 + $0x838] sm:$0xff] }
 0x5a2   :  { %7622 = vmatprep.subr.bf16.mxu0 %v7621_v50  ;;  %7652 = vmatpush1.bf16.msra.mxu1 %v7651_v61  ;;  %v7667_v50 = vpack.c.bf16 %v1241_v43, %v1201_v41  ;;  %v7697_v56 = vpack.c.bf16 %v1324_v49, %v1284_v48  ;;  %v1404_v61 = vld [vmem:[%s11742_s4 + $0xbf8] sm:$0xff]  ;;  %v1045_v41 = vld [vmem:[%s11742_s4 + $0xc0] sm:$0xff] }
 0x5a3   :  { %7654 = vmatprep.subr.bf16.mxu1 %v7653_v2  ;;  %v1361_v2 = vld [vmem:[%s11742_s4 + $0xaa0] sm:$0xff] }
 0x5a4   :  { %v7675_v11 = vpack.c.bf16 %v1401_v3, %v1361_v2  ;;  %v1085_v43 = vld [vmem:[%s11742_s4 + $0x200] sm:$0xff]  ;;  %v7747_v2 = vpack.c.bf16 %v1167_v59, %v1127_v57  ;;  %v1567_v57 = vld [vmem:[%s11742_s4 + $0x1110] sm:$0xff]  ;;  %v1606_v59 = vld [vmem:[%s11742_s4 + $0x1248] sm:$0xff] }
 0x5a5   :  { %7624 = vmatpush1.bf16.msra.mxu0 %v7623_v60  ;;  %v1364_v60 = vld [vmem:[%s11742_s4 + $0xab8] sm:$0xff] }
 0x5a6   :  { %7626 = vmatprep.subr.bf16.mxu0 %v7625_v62  ;;  %7656 = vmatpush1.bf16.msra.mxu1 %v7655_v6  ;;  %v7671_v62 = vpack.c.bf16 %v1321_v54, %v1281_v53  ;;  %v1403_v6 = vld [vmem:[%s11742_s4 + $0xbf0] sm:$0xff]  ;;  %v7717_v54 = vpack.c.bf16 %v1166_v46, %v1126_v45 }
 0x5a7   :  { %2292 = vmatprep.subr.mxu1 %v1600_v8  ;;  %v1482_v8 = vld [vmem:[%s11742_s4 + $0xe68] sm:$0xff]  ;;  %v7703_v12 = vpack.c.bf16 %v1403_v6, %v1363_v4  ;;  %v1205_v4 = vld [vmem:[%s11742_s4 + $0x5c0] sm:$0xff]  ;;  %v1207_v6 = vld [vmem:[%s11742_s4 + $0x5d0] sm:$0xff] }
 0x5a9   :  { %7628 = vmatpush1.bf16.msra.mxu0 %v7627_v5  ;;  %v7701_v5 = vpack.c.bf16 %v1404_v61, %v1364_v60  ;;  %v1206_v60 = vld [vmem:[%s11742_s4 + $0x5c8] sm:$0xff] }
 0x5aa   :  { %2221 = vmatprep.subr.mxu0 %v1598_v7  ;;  %2293 = vmatpush1.msra.mxu1 %v1599_v20  ;;  %v1442_v7 = vld [vmem:[%s11742_s4 + $0xd28] sm:$0xff] }
 0x5ab   :  { %7686 = vmatprep.subr.bf16.mxu1 %v7685_v22  ;;  %6563 = vmatmul.mubr.msk.f32.vlgmr.msra.gmra.mrb[8].mxu1 %vm1621_vm3, %v9679_v37  ;;  %v7677_v13 = vpack.c.bf16 %v1482_v8, %v1442_v7  ;;  %v1562_v20 = vld [vmem:[%s11742_s4 + $0x10e8] sm:$0xff]  ;;  %v1564_v22 = vld [vmem:[%s11742_s4 + $0x10f8] sm:$0xff]  ;;  %v1247_v8 = vld [vmem:[%s11742_s4 + $0x710] sm:$0xff] }
 0x5ac   :  { %7688 = vmatpush1.bf16.msra.mxu1 %v7687_v26  ;;  %2470 = vmatprep.mubr.f32.mxu1 %v8364_v0  ;;  %v1521_v26 = vld [vmem:[%s11742_s4 + $0xfa0] sm:$0xff]  ;;  %v1246_v61 = vld [vmem:[%s11742_s4 + $0x708] sm:$0xff]  ;;  %v7751_v14 = vpack.c.bf16 %v1247_v8, %v1207_v6  ;;  %v1051_v6 = vld [vmem:[%s11742_s4 + $0xf0] sm:$0xff] }
 0x5ad   :  { %2222 = vmatpush1.msra.mxu0 %v1597_v10  ;;  %7690 = vmatprep.subr.bf16.mxu1 %v7689_v32  ;;  %v1484_v10 = vld [vmem:[%s11742_s4 + $0xe78] sm:$0xff]  ;;  %v7721_v3 = vpack.c.bf16 %v1246_v61, %v1206_v60  ;;  %v1130_v8 = vld [vmem:[%s11742_s4 + $0x368] sm:$0xff] }
 0x5ae   :  { %6562 = vmatmul.mubr.msk.f32.vlgmr.msra.gmra.mrb[8].mxu0 %vm1621_vm3, %v8901_v42  ;;  %7658 = vmatprep.subr.bf16.mxu0 %v7657_v21  ;;  %v1244_v42 = vld [vmem:[%s11742_s4 + $0x6f8] sm:$0xff]  ;;  %v7705_v17 = vpack.c.bf16 %v1484_v10, %v1444_v9  ;;  %v1286_v9 = vld [vmem:[%s11742_s4 + $0x848] sm:$0xff] }
 0x5af   :  { %7660 = vmatpush1.bf16.msra.mxu0 %v7659_v25  ;;  %v7693_v44 = vpack.c.bf16 %v1244_v42, %v1204_v36  ;;  %2399 = vmatprep.mubr.f32.mxu0 %v8364_v0  ;;  %v1524_v21 = vld [vmem:[%s11742_s4 + $0xfb8] sm:$0xff]  ;;  %v7681_v25 = vpack.c.bf16 %v1562_v20, %v1522_v19  ;;  %v1046_v36 = vld [vmem:[%s11742_s4 + $0xc8] sm:$0xff]  ;;  %v1601_v42 = vld [vmem:[%s11742_s4 + $0x1220] sm:$0xff] }
 0x5b0   :  { %7662 = vmatprep.subr.bf16.mxu0 %v7661_v27  ;;  %7692 = vmatpush1.bf16.msra.mxu1 %v7691_v39  ;;  %v1561_v27 = vld [vmem:[%s11742_s4 + $0x10e0] sm:$0xff]  ;;  %v7709_v28 = vpack.c.bf16 %v1564_v22, %v1524_v21  ;;  %v1048_v39 = vld [vmem:[%s11742_s4 + $0xd8] sm:$0xff]  ;;  %v1326_v10 = vld [vmem:[%s11742_s4 + $0x988] sm:$0xff] }
 0x5b1   :  { %7694 = vmatprep.subr.bf16.mxu1 %v7693_v44  ;;  %v7683_v32 = vpack.c.bf16 %v1561_v27, %v1521_v26  ;;  %v1087_v44 = vld [vmem:[%s11742_s4 + $0x210] sm:$0xff]  ;;  %v7725_v15 = vpack.c.bf16 %v1326_v10, %v1286_v9  ;;  %v1366_v21 = vld [vmem:[%s11742_s4 + $0xac8] sm:$0xff]  ;;  %v1405_v27 = vld [vmem:[%s11742_s4 + $0xc00] sm:$0xff] }
 0x5b2   :  { %v7743_v53 = vpack.c.bf16 %v1087_v44, %v1047_v31  ;;  %v1327_v20 = vld [vmem:[%s11742_s4 + $0x990] sm:$0xff]  ;;  %v1406_v22 = vld [vmem:[%s11742_s4 + $0xc08] sm:$0xff]  ;;  %v1608_v61 = vld [vmem:[%s11742_s4 + $0x1258] sm:$0xff] }
 0x5b3   :  { %7664 = vmatpush1.bf16.msra.mxu0 %v7663_v38  ;;  %v1086_v38 = vld [vmem:[%s11742_s4 + $0x208] sm:$0xff]  ;;  %v7755_v30 = vpack.c.bf16 %v1327_v20, %v1287_v18  ;;  %v1607_v10 = vld [vmem:[%s11742_s4 + $0x1250] sm:$0xff] }
 0x5b4   :  { %7666 = vmatprep.subr.bf16.mxu0 %v7665_v40  ;;  %7696 = vmatpush1.bf16.msra.mxu1 %v7695_v51  ;;  %v1088_v40 = vld [vmem:[%s11742_s4 + $0x218] sm:$0xff]  ;;  %v7713_v48 = vpack.c.bf16 %v1086_v38, %v1046_v36  ;;  %v1445_v38 = vld [vmem:[%s11742_s4 + $0xd40] sm:$0xff]  ;;  %v1526_v31 = vld [vmem:[%s11742_s4 + $0xfc8] sm:$0xff] }
 0x5b5   :  { %7698 = vmatprep.subr.bf16.mxu1 %v7697_v56  ;;  %v7741_v49 = vpack.c.bf16 %v1088_v40, %v1048_v39  ;;  %v1168_v51 = vld [vmem:[%s11742_s4 + $0x498] sm:$0xff]  ;;  %v1165_v56 = vld [vmem:[%s11742_s4 + $0x480] sm:$0xff]  ;;  %v1566_v44 = vld [vmem:[%s11742_s4 + $0x1108] sm:$0xff] }
 0x5b6   :  { %v1485_v39 = vld [vmem:[%s11742_s4 + $0xe80] sm:$0xff]  ;;  %v1170_v9 = vld [vmem:[%s11742_s4 + $0x4a8] sm:$0xff]  ;;  %v1131_v18 = vld [vmem:[%s11742_s4 + $0x370] sm:$0xff] }
 0x5b7   :  { %7668 = vmatpush1.bf16.msra.mxu0 %v7667_v50  ;;  %v1128_v50 = vld [vmem:[%s11742_s4 + $0x358] sm:$0xff]  ;;  %v1210_v20 = vld [vmem:[%s11742_s4 + $0x5e8] sm:$0xff] }
 0x5b8   :  { %7670 = vmatprep.subr.bf16.mxu0 %v7669_v52  ;;  %7700 = vmatpush1.bf16.msra.mxu1 %v7699_v63  ;;  %v7715_v52 = vpack.c.bf16 %v1085_v43, %v1045_v41  ;;  %v7745_v58 = vpack.c.bf16 %v1168_v51, %v1128_v50  ;;  %v1248_v63 = vld [vmem:[%s11742_s4 + $0x718] sm:$0xff]  ;;  %v1447_v41 = vld [vmem:[%s11742_s4 + $0xd50] sm:$0xff]  ;;  %v1525_v50 = vld [vmem:[%s11742_s4 + $0xfc0] sm:$0xff]  ;;  %v7735_v51 = vpack.c.bf16 %v1485_v39, %v1445_v38 }
 0x5b9   :  { %7702 = vmatprep.subr.bf16.mxu1 %v7701_v5  ;;  %v1245_v5 = vld [vmem:[%s11742_s4 + $0x700] sm:$0xff]  ;;  %v1487_v43 = vld [vmem:[%s11742_s4 + $0xe90] sm:$0xff]  ;;  %v1332_v39 = vld [vmem:[%s11742_s4 + $0x9b8] sm:$0xff] }
 0x5bb   :  { %7672 = vmatpush1.bf16.msra.mxu0 %v7671_v62  ;;  %v1208_v62 = vld [vmem:[%s11742_s4 + $0x5d8] sm:$0xff] }
 0x5bc   :  { %7674 = vmatprep.subr.bf16.mxu0 %v7673_v1  ;;  %7704 = vmatpush1.bf16.msra.mxu1 %v7703_v12  ;;  %v7719_v1 = vpack.c.bf16 %v1165_v56, %v1125_v55  ;;  %v7749_v7 = vpack.c.bf16 %v1248_v63, %v1208_v62  ;;  %v1328_v12 = vld [vmem:[%s11742_s4 + $0x998] sm:$0xff]  ;;  %v1527_v55 = vld [vmem:[%s11742_s4 + $0xfd0] sm:$0xff]  ;;  %v1050_v62 = vld [vmem:[%s11742_s4 + $0xe8] sm:$0xff] }
 0x5bd   :  { %7706 = vmatprep.subr.bf16.mxu1 %v7705_v17  ;;  %v1325_v17 = vld [vmem:[%s11742_s4 + $0x980] sm:$0xff]  ;;  %v7767_v60 = vpack.c.bf16 %v1567_v57, %v1527_v55  ;;  %v1090_v63 = vld [vmem:[%s11742_s4 + $0x228] sm:$0xff]  ;;  %v1371_v55 = vld [vmem:[%s11742_s4 + $0xaf0] sm:$0xff] }
 0x5be   :  { %v7727_v26 = vpack.c.bf16 %v1325_v17, %v1285_v16  ;;  %v1169_v16 = vld [vmem:[%s11742_s4 + $0x4a0] sm:$0xff]  ;;  %v1450_v57 = vld [vmem:[%s11742_s4 + $0xd68] sm:$0xff] }
 0x5bf   :  { %7676 = vmatpush1.bf16.msra.mxu0 %v7675_v11  ;;  %v1288_v11 = vld [vmem:[%s11742_s4 + $0x858] sm:$0xff] }
 0x5c0   :  { %7678 = vmatprep.subr.bf16.mxu0 %v7677_v13  ;;  %7708 = vmatpush1.bf16.msra.mxu1 %v7707_v24  ;;  %v7723_v13 = vpack.c.bf16 %v1245_v5, %v1205_v4  ;;  %v7753_v19 = vpack.c.bf16 %v1328_v12, %v1288_v11  ;;  %v1408_v24 = vld [vmem:[%s11742_s4 + $0xc18] sm:$0xff]  ;;  %v1089_v4 = vld [vmem:[%s11742_s4 + $0x220] sm:$0xff] }
 0x5c1   :  { %7710 = vmatprep.subr.bf16.mxu1 %v7709_v28  ;;  %v1367_v28 = vld [vmem:[%s11742_s4 + $0xad0] sm:$0xff]  ;;  %v1605_v5 = vld [vmem:[%s11742_s4 + $0x1240] sm:$0xff]  ;;  %v1132_v11 = vld [vmem:[%s11742_s4 + $0x378] sm:$0xff] }
 0x5c2   :  { %v7759_v45 = vpack.c.bf16 %v1407_v29, %v1367_v28  ;;  %v1172_v12 = vld [vmem:[%s11742_s4 + $0x4b8] sm:$0xff]  ;;  %v1249_v28 = vld [vmem:[%s11742_s4 + $0x720] sm:$0xff] }
 0x5c3   :  { %7680 = vmatpush1.bf16.msra.mxu0 %v7679_v23  ;;  %v1368_v23 = vld [vmem:[%s11742_s4 + $0xad8] sm:$0xff] }
 0x5c4   :  { %7682 = vmatprep.subr.bf16.mxu0 %v7681_v25  ;;  %7712 = vmatpush1.bf16.msra.mxu1 %v7711_v33  ;;  %v1365_v25 = vld [vmem:[%s11742_s4 + $0xac0] sm:$0xff]  ;;  %v1446_v33 = vld [vmem:[%s11742_s4 + $0xd48] sm:$0xff]  ;;  %v7757_v36 = vpack.c.bf16 %v1408_v24, %v1368_v23  ;;  %v7773_v23 = vpack.c.bf16 %v1170_v9, %v1130_v8  ;;  %v1212_v24 = vld [vmem:[%s11742_s4 + $0x5f8] sm:$0xff] }
 0x5c5   :  { %2434 = vmatprep.subr.mxu1 %v1604_v35  ;;  %v1448_v35 = vld [vmem:[%s11742_s4 + $0xd58] sm:$0xff]  ;;  %v7731_v40 = vpack.c.bf16 %v1405_v27, %v1365_v25  ;;  %v7801_v25 = vpack.c.bf16 %v1172_v12, %v1132_v11  ;;  %v1209_v27 = vld [vmem:[%s11742_s4 + $0x5e0] sm:$0xff] }
 0x5c6   :  { %v1572_v12 = vld [vmem:[%s11742_s4 + $0x1138] sm:$0xff] }
 0x5c7   :  { %7684 = vmatpush1.bf16.msra.mxu0 %v7683_v32  ;;  %v7729_v32 = vpack.c.bf16 %v1406_v22, %v1366_v21  ;;  %v1250_v21 = vld [vmem:[%s11742_s4 + $0x728] sm:$0xff] }
 0x5c8   :  { %2363 = vmatprep.subr.mxu0 %v1602_v34  ;;  %2435 = vmatpush1.msra.mxu1 %v1603_v47  ;;  %v1486_v34 = vld [vmem:[%s11742_s4 + $0xe88] sm:$0xff]  ;;  %v1528_v47 = vld [vmem:[%s11742_s4 + $0xfd8] sm:$0xff] }
 0x5c9   :  { %7742 = vmatprep.subr.bf16.mxu1 %v7741_v49  ;;  %6565 = vmatmul.mubr.msk.f32.vlgmr.msra.gmra.mrb[10].mxu1 %vm1621_vm3, %v9679_v37  ;;  %v7733_v46 = vpack.c.bf16 %v1486_v34, %v1446_v33  ;;  %v1568_v49 = vld [vmem:[%s11742_s4 + $0x1118] sm:$0xff]  ;;  %v1290_v33 = vld [vmem:[%s11742_s4 + $0x868] sm:$0xff] }
 0x5ca   :  { %7744 = vmatpush1.bf16.msra.mxu1 %v7743_v53  ;;  %2612 = vmatprep.mubr.f32.mxu1 %v8364_v0  ;;  %v7763_v53 = vpack.c.bf16 %v1487_v43, %v1447_v41  ;;  %v7765_v56 = vpack.c.bf16 %v1568_v49, %v1528_v47  ;;  %v1330_v34 = vld [vmem:[%s11742_s4 + $0x9a8] sm:$0xff]  ;;  %v1329_v41 = vld [vmem:[%s11742_s4 + $0x9a0] sm:$0xff]  ;;  %v7779_v43 = vpack.c.bf16 %v1249_v28, %v1209_v27  ;;  %v1372_v49 = vld [vmem:[%s11742_s4 + $0xaf8] sm:$0xff] }
 0x5cb   :  { %2364 = vmatpush1.msra.mxu0 %v1601_v42  ;;  %7746 = vmatprep.subr.bf16.mxu1 %v7745_v58  ;;  %v1488_v42 = vld [vmem:[%s11742_s4 + $0xe98] sm:$0xff] }
 0x5cc   :  { %6564 = vmatmul.mubr.msk.f32.vlgmr.msra.gmra.mrb[10].mxu0 %vm1621_vm3, %v9679_v37  ;;  %7714 = vmatprep.subr.bf16.mxu0 %v7713_v48  ;;  %v7761_v48 = vpack.c.bf16 %v1488_v42, %v1448_v35  ;;  %v1292_v42 = vld [vmem:[%s11742_s4 + $0x878] sm:$0xff] }
 0x5cd   :  { %7716 = vmatpush1.bf16.msra.mxu0 %v7715_v52  ;;  %2541 = vmatprep.mubr.f32.mxu0 %v8364_v0  ;;  %v1565_v52 = vld [vmem:[%s11742_s4 + $0x1100] sm:$0xff]  ;;  %v1056_v27 = vld [vmem:[%s11742_s4 + $0x118] sm:$0xff] }
 0x5ce   :  { %7718 = vmatprep.subr.bf16.mxu0 %v7717_v54  ;;  %7748 = vmatpush1.bf16.msra.mxu1 %v7747_v2  ;;  %v7737_v54 = vpack.c.bf16 %v1566_v44, %v1526_v31  ;;  %v7739_v58 = vpack.c.bf16 %v1565_v52, %v1525_v50  ;;  %v1092_v2 = vld [vmem:[%s11742_s4 + $0x238] sm:$0xff]  ;;  %v1291_v31 = vld [vmem:[%s11742_s4 + $0x870] sm:$0xff]  ;;  %v7809_v50 = vpack.c.bf16 %v1332_v39, %v1292_v42  ;;  %v1369_v52 = vld [vmem:[%s11742_s4 + $0xae0] sm:$0xff] }
 0x5cf   :  { %7750 = vmatprep.subr.bf16.mxu1 %v7749_v7  ;;  %v1091_v7 = vld [vmem:[%s11742_s4 + $0x230] sm:$0xff]  ;;  %v1096_v28 = vld [vmem:[%s11742_s4 + $0x258] sm:$0xff]  ;;  %v1174_v42 = vld [vmem:[%s11742_s4 + $0x4c8] sm:$0xff] }
 0x5d0   :  { %v7799_v22 = vpack.c.bf16 %v1091_v7, %v1051_v6  ;;  %v1331_v44 = vld [vmem:[%s11742_s4 + $0x9b0] sm:$0xff]  ;;  %v1530_v6 = vld [vmem:[%s11742_s4 + $0xfe8] sm:$0xff] }
 0x5d1   :  { %7720 = vmatpush1.bf16.msra.mxu0 %v7719_v1  ;;  %v1052_v1 = vld [vmem:[%s11742_s4 + $0xf8] sm:$0xff]  ;;  %v1570_v7 = vld [vmem:[%s11742_s4 + $0x1128] sm:$0xff] }
 0x5d2   :  { %7722 = vmatprep.subr.bf16.mxu0 %v7721_v3  ;;  %7752 = vmatpush1.bf16.msra.mxu1 %v7751_v14  ;;  %v1049_v3 = vld [vmem:[%s11742_s4 + $0xe0] sm:$0xff]  ;;  %v7797_v14 = vpack.c.bf16 %v1092_v2, %v1052_v1 }
 0x5d3   :  { %7754 = vmatprep.subr.bf16.mxu1 %v7753_v19  ;;  %v7771_v17 = vpack.c.bf16 %v1089_v4, %v1049_v3  ;;  %v1171_v19 = vld [vmem:[%s11742_s4 + $0x4b0] sm:$0xff]  ;;  %v1449_v1 = vld [vmem:[%s11742_s4 + $0xd60] sm:$0xff] }
 0x5d4   :  { %v7803_v35 = vpack.c.bf16 %v1171_v19, %v1131_v18  ;;  %v1489_v2 = vld [vmem:[%s11742_s4 + $0xea0] sm:$0xff]  ;;  %v1451_v4 = vld [vmem:[%s11742_s4 + $0xd70] sm:$0xff] }
 0x5d5   :  { %7724 = vmatpush1.bf16.msra.mxu0 %v7723_v13  ;;  %v7769_v13 = vpack.c.bf16 %v1090_v63, %v1050_v62  ;;  %v1492_v63 = vld [vmem:[%s11742_s4 + $0xeb8] sm:$0xff]  ;;  %v1531_v18 = vld [vmem:[%s11742_s4 + $0xff0] sm:$0xff] }
 0x5d6   :  { %7726 = vmatprep.subr.bf16.mxu0 %v7725_v15  ;;  %7756 = vmatpush1.bf16.msra.mxu1 %v7755_v30  ;;  %v1129_v15 = vld [vmem:[%s11742_s4 + $0x360] sm:$0xff]  ;;  %v1211_v30 = vld [vmem:[%s11742_s4 + $0x5f0] sm:$0xff] }
 0x5d7   :  { %7758 = vmatprep.subr.bf16.mxu1 %v7757_v36  ;;  %v7775_v29 = vpack.c.bf16 %v1169_v16, %v1129_v15  ;;  %v7777_v36 = vpack.c.bf16 %v1250_v21, %v1210_v20  ;;  %v1569_v15 = vld [vmem:[%s11742_s4 + $0x1120] sm:$0xff]  ;;  %v1571_v20 = vld [vmem:[%s11742_s4 + $0x1130] sm:$0xff] }
 0x5d9   :  { %7728 = vmatpush1.bf16.msra.mxu0 %v7727_v26  ;;  %v1252_v26 = vld [vmem:[%s11742_s4 + $0x738] sm:$0xff] }
 0x5da   :  { %7730 = vmatprep.subr.bf16.mxu0 %v7729_v32  ;;  %7760 = vmatpush1.bf16.msra.mxu1 %v7759_v45  ;;  %v1251_v32 = vld [vmem:[%s11742_s4 + $0x730] sm:$0xff]  ;;  %v7805_v38 = vpack.c.bf16 %v1252_v26, %v1212_v24  ;;  %v1370_v45 = vld [vmem:[%s11742_s4 + $0xae8] sm:$0xff]  ;;  %v1612_v24 = vld [vmem:[%s11742_s4 + $0x1278] sm:$0xff] }
 0x5db   :  { %7762 = vmatprep.subr.bf16.mxu1 %v7761_v48  ;;  %v7807_v47 = vpack.c.bf16 %v1251_v32, %v1211_v30  ;;  %v7781_v48 = vpack.c.bf16 %v1330_v34, %v1290_v33  ;;  %v1094_v26 = vld [vmem:[%s11742_s4 + $0x248] sm:$0xff]  ;;  %v1093_v30 = vld [vmem:[%s11742_s4 + $0x240] sm:$0xff]  ;;  %v1055_v34 = vld [vmem:[%s11742_s4 + $0x110] sm:$0xff] }
 0x5dc   :  { %v1609_v32 = vld [vmem:[%s11742_s4 + $0x1260] sm:$0xff] }
 0x5dd   :  { %7732 = vmatpush1.bf16.msra.mxu0 %v7731_v40  ;;  %v1289_v40 = vld [vmem:[%s11742_s4 + $0x860] sm:$0xff] }
 0x5de   :  { %7734 = vmatprep.subr.bf16.mxu0 %v7733_v46  ;;  %7764 = vmatpush1.bf16.msra.mxu1 %v7763_v53  ;;  %v1410_v46 = vld [vmem:[%s11742_s4 + $0xc28] sm:$0xff]  ;;  %v1409_v53 = vld [vmem:[%s11742_s4 + $0xc20] sm:$0xff] }
 0x5df   :  { %7766 = vmatprep.subr.bf16.mxu1 %v7765_v56  ;;  %v1411_v56 = vld [vmem:[%s11742_s4 + $0xc30] sm:$0xff]  ;;  %v7787_v3 = vpack.c.bf16 %v1409_v53, %v1369_v52  ;;  %v1254_v52 = vld [vmem:[%s11742_s4 + $0x748] sm:$0xff] }
 0x5e0   :  { %v7815_v8 = vpack.c.bf16 %v1411_v56, %v1371_v55  ;;  %v1216_v55 = vld [vmem:[%s11742_s4 + $0x618] sm:$0xff] }
 0x5e1   :  { %7736 = vmatpush1.bf16.msra.mxu0 %v7735_v51  ;;  %v1412_v51 = vld [vmem:[%s11742_s4 + $0xc38] sm:$0xff] }
 0x5e2   :  { %7738 = vmatprep.subr.bf16.mxu0 %v7737_v54  ;;  %7768 = vmatpush1.bf16.msra.mxu1 %v7767_v60  ;;  %v7783_v54 = vpack.c.bf16 %v1329_v41, %v1289_v40  ;;  %v7785_v60 = vpack.c.bf16 %v1410_v46, %v1370_v45  ;;  %v7813_v62 = vpack.c.bf16 %v1412_v51, %v1372_v49  ;;  %v1136_v40 = vld [vmem:[%s11742_s4 + $0x398] sm:$0xff]  ;;  %v1133_v46 = vld [vmem:[%s11742_s4 + $0x380] sm:$0xff]  ;;  %v1135_v49 = vld [vmem:[%s11742_s4 + $0x390] sm:$0xff] }
 0x5e3   :  { %2576 = vmatprep.subr.mxu1 %v1608_v61  ;;  %v1452_v61 = vld [vmem:[%s11742_s4 + $0xd78] sm:$0xff]  ;;  %v1214_v51 = vld [vmem:[%s11742_s4 + $0x608] sm:$0xff] }
 0x5e4   :  { %v7817_v11 = vpack.c.bf16 %v1492_v63, %v1452_v61  ;;  %v1215_v61 = vld [vmem:[%s11742_s4 + $0x610] sm:$0xff]  ;;  %v1294_v63 = vld [vmem:[%s11742_s4 + $0x888] sm:$0xff] }
 0x5e5   :  { %7740 = vmatpush1.bf16.msra.mxu0 %v7739_v58  ;;  %v1490_v58 = vld [vmem:[%s11742_s4 + $0xea8] sm:$0xff] }
 0x5e6   :  { %2505 = vmatprep.subr.mxu0 %v1606_v59  ;;  %2577 = vmatpush1.msra.mxu1 %v1607_v10  ;;  %v7811_v59 = vpack.c.bf16 %v1331_v44, %v1291_v31  ;;  %v7789_v9 = vpack.c.bf16 %v1490_v58, %v1450_v57  ;;  %v1532_v10 = vld [vmem:[%s11742_s4 + $0xff8] sm:$0xff]  ;;  %v7853_v44 = vpack.c.bf16 %v1096_v28, %v1056_v27  ;;  %v1213_v58 = vld [vmem:[%s11742_s4 + $0x600] sm:$0xff] }
 0x5e7   :  { %7798 = vmatprep.subr.bf16.mxu1 %v7797_v14  ;;  %6567 = vmatmul.mubr.msk.f32.vlgmr.msra.gmra.mrb[12].mxu1 %vm1621_vm3, %v9679_v37  ;;  %v7791_v14 = vpack.c.bf16 %v1489_v2, %v1449_v1  ;;  %v7821_v19 = vpack.c.bf16 %v1572_v12, %v1532_v10  ;;  %v1256_v57 = vld [vmem:[%s11742_s4 + $0x758] sm:$0xff]  ;;  %v1334_v1 = vld [vmem:[%s11742_s4 + $0x9c8] sm:$0xff]  ;;  %v7833_v2 = vpack.c.bf16 %v1254_v52, %v1214_v51  ;;  %v1335_v10 = vld [vmem:[%s11742_s4 + $0x9d0] sm:$0xff] }
 0x5e8   :  { %7800 = vmatpush1.bf16.msra.mxu1 %v7799_v22  ;;  %2754 = vmatprep.mubr.f32.mxu1 %v8364_v0  ;;  %v1610_v22 = vld [vmem:[%s11742_s4 + $0x1268] sm:$0xff]  ;;  %v1456_v27 = vld [vmem:[%s11742_s4 + $0xd98] sm:$0xff]  ;;  %v1575_v52 = vld [vmem:[%s11742_s4 + $0x1150] sm:$0xff] }
 0x5e9   :  { %2506 = vmatpush1.msra.mxu0 %v1605_v5  ;;  %7802 = vmatprep.subr.bf16.mxu1 %v7801_v25  ;;  %v1491_v5 = vld [vmem:[%s11742_s4 + $0xeb0] sm:$0xff]  ;;  %v1054_v25 = vld [vmem:[%s11742_s4 + $0x108] sm:$0xff] }
 0x5ea   :  { %6566 = vmatmul.mubr.msk.f32.vlgmr.msra.gmra.mrb[12].mxu0 %vm1621_vm3, %v9679_v37  ;;  %7770 = vmatprep.subr.bf16.mxu0 %v7769_v13  ;;  %v1529_v13 = vld [vmem:[%s11742_s4 + $0xfe0] sm:$0xff]  ;;  %v7819_v16 = vpack.c.bf16 %v1491_v5, %v1451_v4  ;;  %v7825_v31 = vpack.c.bf16 %v1094_v26, %v1054_v25  ;;  %v7861_v4 = vpack.c.bf16 %v1256_v57, %v1216_v55  ;;  %v1336_v5 = vld [vmem:[%s11742_s4 + $0x9d8] sm:$0xff]  ;;  %v1414_v12 = vld [vmem:[%s11742_s4 + $0xc48] sm:$0xff] }
 0x5eb   :  { %7772 = vmatpush1.bf16.msra.mxu0 %v7771_v17  ;;  %2683 = vmatprep.mubr.f32.mxu0 %v8364_v0  ;;  %v7793_v17 = vpack.c.bf16 %v1570_v7, %v1530_v6  ;;  %v7795_v21 = vpack.c.bf16 %v1569_v15, %v1529_v13  ;;  %v1293_v6 = vld [vmem:[%s11742_s4 + $0x880] sm:$0xff]  ;;  %v1376_v15 = vld [vmem:[%s11742_s4 + $0xb18] sm:$0xff]  ;;  %v1058_v57 = vld [vmem:[%s11742_s4 + $0x128] sm:$0xff] }
 0x5ec   :  { %7774 = vmatprep.subr.bf16.mxu0 %v7773_v23  ;;  %7804 = vmatpush1.bf16.msra.mxu1 %v7803_v35  ;;  %v7823_v23 = vpack.c.bf16 %v1571_v20, %v1531_v18  ;;  %v1095_v35 = vld [vmem:[%s11742_s4 + $0x250] sm:$0xff]  ;;  %v1333_v7 = vld [vmem:[%s11742_s4 + $0x9c0] sm:$0xff] }
 0x5ed   :  { %7806 = vmatprep.subr.bf16.mxu1 %v7805_v38  ;;  %v1611_v38 = vld [vmem:[%s11742_s4 + $0x1270] sm:$0xff]  ;;  %v7855_v53 = vpack.c.bf16 %v1095_v35, %v1055_v34  ;;  %v1373_v18 = vld [vmem:[%s11742_s4 + $0xb00] sm:$0xff]  ;;  %v7839_v20 = vpack.c.bf16 %v1333_v7, %v1293_v6  ;;  %v1140_v7 = vld [vmem:[%s11742_s4 + $0x3b8] sm:$0xff] }
 0x5ee   :  { %v1455_v34 = vld [vmem:[%s11742_s4 + $0xd90] sm:$0xff] }
 0x5ef   :  { %7776 = vmatpush1.bf16.msra.mxu0 %v7775_v29  ;;  %v1053_v29 = vld [vmem:[%s11742_s4 + $0x100] sm:$0xff]  ;;  %v1495_v35 = vld [vmem:[%s11742_s4 + $0xed0] sm:$0xff] }
 0x5f0   :  { %7778 = vmatprep.subr.bf16.mxu0 %v7777_v36  ;;  %7808 = vmatpush1.bf16.msra.mxu1 %v7807_v47  ;;  %v1134_v36 = vld [vmem:[%s11742_s4 + $0x388] sm:$0xff]  ;;  %v1173_v47 = vld [vmem:[%s11742_s4 + $0x4c0] sm:$0xff] }
 0x5f1   :  { %7810 = vmatprep.subr.bf16.mxu1 %v7809_v50  ;;  %v1175_v50 = vld [vmem:[%s11742_s4 + $0x4d0] sm:$0xff] }
 0x5f3   :  { %7780 = vmatpush1.bf16.msra.mxu0 %v7779_v43  ;;  %v1176_v43 = vld [vmem:[%s11742_s4 + $0x4d8] sm:$0xff] }
 0x5f4   :  { %7782 = vmatprep.subr.bf16.mxu0 %v7781_v48  ;;  %7812 = vmatpush1.bf16.msra.mxu1 %v7811_v59  ;;  %v7827_v48 = vpack.c.bf16 %v1093_v30, %v1053_v29  ;;  %v7857_v56 = vpack.c.bf16 %v1176_v43, %v1136_v40  ;;  %v1253_v59 = vld [vmem:[%s11742_s4 + $0x740] sm:$0xff]  ;;  %v1496_v29 = vld [vmem:[%s11742_s4 + $0xed8] sm:$0xff] }
 0x5f5   :  { %7814 = vmatprep.subr.bf16.mxu1 %v7813_v62  ;;  %v1255_v62 = vld [vmem:[%s11742_s4 + $0x750] sm:$0xff]  ;;  %v1453_v30 = vld [vmem:[%s11742_s4 + $0xd80] sm:$0xff]  ;;  %v7873_v43 = vpack.c.bf16 %v1496_v29, %v1456_v27 }
 0x5f6   :  { %v7863_v13 = vpack.c.bf16 %v1255_v62, %v1215_v61  ;;  %v1057_v61 = vld [vmem:[%s11742_s4 + $0x120] sm:$0xff]  ;;  %v1219_v29 = vld [vmem:[%s11742_s4 + $0x630] sm:$0xff] }
 0x5f7   :  { %7784 = vmatpush1.bf16.msra.mxu0 %v7783_v54  ;;  %v7829_v54 = vpack.c.bf16 %v1174_v42, %v1134_v36  ;;  %v1534_v36 = vld [vmem:[%s11742_s4 + $0x1008] sm:$0xff]  ;;  %v1097_v62 = vld [vmem:[%s11742_s4 + $0x260] sm:$0xff] }
 0x5f8   :  { %7786 = vmatprep.subr.bf16.mxu0 %v7785_v60  ;;  %7816 = vmatpush1.bf16.msra.mxu1 %v7815_v8  ;;  %v7831_v60 = vpack.c.bf16 %v1173_v47, %v1133_v46  ;;  %v7835_v8 = vpack.c.bf16 %v1253_v59, %v1213_v58  ;;  %v1574_v42 = vld [vmem:[%s11742_s4 + $0x1148] sm:$0xff]  ;;  %v1573_v47 = vld [vmem:[%s11742_s4 + $0x1140] sm:$0xff]  ;;  %v1060_v59 = vld [vmem:[%s11742_s4 + $0x138] sm:$0xff] }
 0x5f9   :  { %7818 = vmatprep.subr.bf16.mxu1 %v7817_v11  ;;  %v1374_v11 = vld [vmem:[%s11742_s4 + $0xb08] sm:$0xff]  ;;  %v1257_v27 = vld [vmem:[%s11742_s4 + $0x760] sm:$0xff] }
 0x5fa   :  { %v7841_v26 = vpack.c.bf16 %v1414_v12, %v1374_v11  ;;  %v1098_v58 = vld [vmem:[%s11742_s4 + $0x268] sm:$0xff] }
 0x5fb   :  { %7788 = vmatpush1.bf16.msra.mxu0 %v7787_v3  ;;  %v1296_v3 = vld [vmem:[%s11742_s4 + $0x898] sm:$0xff] }
 0x5fc   :  { %7790 = vmatprep.subr.bf16.mxu0 %v7789_v9  ;;  %7820 = vmatpush1.bf16.msra.mxu1 %v7819_v16  ;;  %v1295_v9 = vld [vmem:[%s11742_s4 + $0x890] sm:$0xff]  ;;  %v7865_v16 = vpack.c.bf16 %v1336_v5, %v1296_v3  ;;  %v1138_v3 = vld [vmem:[%s11742_s4 + $0x3a8] sm:$0xff] }
 0x5fd   :  { %7822 = vmatprep.subr.bf16.mxu1 %v7821_v19  ;;  %v1413_v19 = vld [vmem:[%s11742_s4 + $0xc40] sm:$0xff]  ;;  %v7867_v25 = vpack.c.bf16 %v1335_v10, %v1295_v9  ;;  %v1615_v5 = vld [vmem:[%s11742_s4 + $0x1290] sm:$0xff]  ;;  %v1180_v9 = vld [vmem:[%s11742_s4 + $0x4f8] sm:$0xff]  ;;  %v7881_v10 = vpack.c.bf16 %v1098_v58, %v1058_v57 }
 0x5fe   :  { %v1458_v57 = vld [vmem:[%s11742_s4 + $0xda8] sm:$0xff] }
 0x5ff   :  { %7792 = vmatpush1.bf16.msra.mxu0 %v7791_v14  ;;  %v7837_v14 = vpack.c.bf16 %v1334_v1, %v1294_v63  ;;  %v1613_v63 = vld [vmem:[%s11742_s4 + $0x1280] sm:$0xff]  ;;  %v1498_v58 = vld [vmem:[%s11742_s4 + $0xee8] sm:$0xff] }
 0x600   :  { %7794 = vmatprep.subr.bf16.mxu0 %v7793_v17  ;;  %7824 = vmatpush1.bf16.msra.mxu1 %v7823_v23  ;;  %v1416_v17 = vld [vmem:[%s11742_s4 + $0xc58] sm:$0xff]  ;;  %v1454_v23 = vld [vmem:[%s11742_s4 + $0xd88] sm:$0xff] }
 0x601   :  { %2718 = vmatprep.subr.mxu1 %v1612_v24  ;;  %v1494_v24 = vld [vmem:[%s11742_s4 + $0xec8] sm:$0xff]  ;;  %v7869_v28 = vpack.c.bf16 %v1416_v17, %v1376_v15  ;;  %v7883_v15 = vpack.c.bf16 %v1097_v62, %v1057_v61  ;;  %v1179_v17 = vld [vmem:[%s11742_s4 + $0x4f0] sm:$0xff]  ;;  %v1460_v61 = vld [vmem:[%s11742_s4 + $0xdb8] sm:$0xff] }
 0x602   :  { %v7845_v40 = vpack.c.bf16 %v1494_v24, %v1454_v23  ;;  %v10438_v23 = vld [vmem:[#allocation11] sm:$0xff]  ;;  %v7913_v24 = vpack.c.bf16 %v1180_v9, %v1140_v7  ;;  %v1538_v7 = vld [vmem:[%s11742_s4 + $0x1028] sm:$0xff] }
 0x603   :  { %7796 = vmatpush1.bf16.msra.mxu0 %v7795_v21  ;;  %v1375_v21 = vld [vmem:[%s11742_s4 + $0xb10] sm:$0xff]  ;;  %v1578_v9 = vld [vmem:[%s11742_s4 + $0x1168] sm:$0xff] }
 0x604   :  { %2647 = vmatprep.subr.mxu0 %v1610_v22  ;;  %2719 = vmatpush1.msra.mxu1 %v1611_v38  ;;  %v1415_v22 = vld [vmem:[%s11742_s4 + $0xc50] sm:$0xff] }
 0x605   :  { %v1762_v41 = vpop.f32.mrb[0].mxu1  ;;  %7854 = vmatprep.subr.bf16.mxu1 %v7853_v44  ;;  %6569 = vmatmul.mubr.msk.f32.vlgmr.msra.gmra.mrb[14].mxu1 %vm1621_vm3, %v9679_v37  ;;  %v7871_v38 = vpack.c.bf16 %v1415_v22, %v1375_v21  ;;  %v1533_v44 = vld [vmem:[%s11742_s4 + $0x1000] sm:$0xff]  ;;  %v1220_v22 = vld [vmem:[%s11742_s4 + $0x638] sm:$0xff] }
 0x606   :  { %3047 = vst [vmem:[#allocation14 + $0x10] sm:$0xff] %v1762_v41  ;;  %v10216_v45 = vpop.f32.mrb[1].mxu1  ;;  %7856 = vmatpush1.bf16.msra.mxu1 %v7855_v53  ;;  %2896 = vmatprep.mubr.f32.mxu1 %v8364_v0  ;;  %v1536_v41 = vld [vmem:[%s11742_s4 + $0x1018] sm:$0xff]  ;;  %v7851_v53 = vpack.c.bf16 %v1573_v47, %v1533_v44  ;;  %v1339_v44 = vld [vmem:[%s11742_s4 + $0x9f0] sm:$0xff]  ;;  %v1418_v47 = vld [vmem:[%s11742_s4 + $0xc68] sm:$0xff] }
 0x607   :  { %3048 = vst [vmem:[#allocation14 + $0x18] sm:$0xff] %v10216_v45  ;;  %2648 = vmatpush1.msra.mxu0 %v1609_v32  ;;  %7858 = vmatprep.subr.bf16.mxu1 %v7857_v56  ;;  %v1493_v32 = vld [vmem:[%s11742_s4 + $0xec0] sm:$0xff]  ;;  %v1616_v56 = vld [vmem:[%s11742_s4 + $0x1298] sm:$0xff] }
 0x608   :  { %6568 = vmatmul.mubr.msk.f32.vlgmr.msra.gmra.mrb[14].mxu0 %vm1621_vm3, %v9679_v37  ;;  %7826 = vmatprep.subr.bf16.mxu0 %v7825_v31  ;;  %v7859_v37 = vpack.c.bf16 %v1175_v50, %v1135_v49  ;;  %v1576_v31 = vld [vmem:[%s11742_s4 + $0x1158] sm:$0xff]  ;;  %v7847_v46 = vpack.c.bf16 %v1493_v32, %v1453_v30  ;;  %v7849_v49 = vpack.c.bf16 %v1574_v42, %v1534_v36  ;;  %v1535_v50 = vld [vmem:[%s11742_s4 + $0x1010] sm:$0xff]  ;;  %v1298_v32 = vld [vmem:[%s11742_s4 + $0x8a8] sm:$0xff] }
 0x609   :  { %v1691_v33 = vpop.f32.mrb[0].mxu0  ;;  %7828 = vmatpush1.bf16.msra.mxu0 %v7827_v48  ;;  %2825 = vmatprep.mubr.f32.mxu0 %v8364_v0  ;;  %v7875_v48 = vpack.c.bf16 %v1495_v35, %v1455_v34  ;;  %v7877_v51 = vpack.c.bf16 %v1576_v31, %v1536_v41  ;;  %v7879_v55 = vpack.c.bf16 %v1575_v52, %v1535_v50  ;;  %v1259_v30 = vld [vmem:[%s11742_s4 + $0x770] sm:$0xff]  ;;  %v1300_v36 = vld [vmem:[%s11742_s4 + $0x8b8] sm:$0xff]  ;;  %v1337_v41 = vld [vmem:[%s11742_s4 + $0x9e0] sm:$0xff] }
 0x60a   :  { %3045 = vst [vmem:[#allocation14] sm:$0xff] %v1691_v33  ;;  %v10207_v39 = vpop.f32.mrb[1].mxu0  ;;  %7830 = vmatprep.subr.bf16.mxu0 %v7829_v54  ;;  %7860 = vmatpush1.bf16.msra.mxu1 %v7859_v37  ;;  %v7843_v33 = vpack.c.bf16 %v1413_v19, %v1373_v18  ;;  %v1614_v54 = vld [vmem:[%s11742_s4 + $0x1288] sm:$0xff]  ;;  %v1059_v37 = vld [vmem:[%s11742_s4 + $0x130] sm:$0xff]  ;;  %v1377_v52 = vld [vmem:[%s11742_s4 + $0xb20] sm:$0xff] }
 0x60b   :  { %3046 = vst [vmem:[#allocation14 + $0x8] sm:$0xff] %v10207_v39  ;;  %7862 = vmatprep.subr.bf16.mxu1 %v7861_v4  ;;  %v1178_v4 = vld [vmem:[%s11742_s4 + $0x4e8] sm:$0xff]  ;;  %v1299_v31 = vld [vmem:[%s11742_s4 + $0x8b0] sm:$0xff] }
 0x60c   :  { %v1218_v18 = vld [vmem:[%s11742_s4 + $0x628] sm:$0xff]  ;;  %v7885_v21 = vpack.c.bf16 %v1178_v4, %v1138_v3  ;;  %v1459_v4 = vld [vmem:[%s11742_s4 + $0xdb0] sm:$0xff] }
 0x60d   :  { %7832 = vmatpush1.bf16.msra.mxu0 %v7831_v60  ;;  %v1100_v60 = vld [vmem:[%s11742_s4 + $0x278] sm:$0xff]  ;;  %v1258_v19 = vld [vmem:[%s11742_s4 + $0x768] sm:$0xff] }
 0x60e   :  { %7834 = vmatprep.subr.bf16.mxu0 %v7833_v2  ;;  %7864 = vmatpush1.bf16.msra.mxu1 %v7863_v13  ;;  %v1099_v2 = vld [vmem:[%s11742_s4 + $0x270] sm:$0xff]  ;;  %v7909_v11 = vpack.c.bf16 %v1100_v60, %v1060_v59  ;;  %v1137_v13 = vld [vmem:[%s11742_s4 + $0x3a0] sm:$0xff]  ;;  %v7889_v35 = vpack.c.bf16 %v1258_v19, %v1218_v18  ;;  %v7923_v59 = vpack.c.bf16 %v1339_v44, %v1299_v31  ;;  %v7990_v44 = vld [vmem:[%s11743_s5 + $0x8] sm:$0xff]  }
 0x60f   :  { %7866 = vmatprep.subr.bf16.mxu1 %v7865_v16  ;;  %v1139_v16 = vld [vmem:[%s11742_s4 + $0x3b0] sm:$0xff]  ;;  %v1577_v18 = vld [vmem:[%s11742_s4 + $0x1160] sm:$0xff]  ;;  %v3086_v31 = vpack.c.bf16 %v10207_v39, %v10207_v39 }
 0x610   :  { %v7915_v34 = vpack.c.bf16 %v1179_v17, %v1139_v16  ;;  %v1537_v16 = vld [vmem:[%s11742_s4 + $0x1020] sm:$0xff]  ;;  %v7992_v39 = vld [vmem:[%s11743_s5 + $0x50] sm:$0xff]  }
 0x611   :  { %7836 = vmatpush1.bf16.msra.mxu0 %v7835_v8 }
 0x612   :  { %7838 = vmatprep.subr.bf16.mxu0 %v7837_v14  ;;  %7868 = vmatpush1.bf16.msra.mxu1 %v7867_v25  ;;  %v1177_v14 = vld [vmem:[%s11742_s4 + $0x4e0] sm:$0xff]  ;;  %v1260_v25 = vld [vmem:[%s11742_s4 + $0x778] sm:$0xff] }
 0x613   :  { %7870 = vmatprep.subr.bf16.mxu1 %v7869_v28  ;;  %v7887_v28 = vpack.c.bf16 %v1177_v14, %v1137_v13  ;;  %v7917_v42 = vpack.c.bf16 %v1260_v25, %v1220_v22  ;;  %v1540_v13 = vld [vmem:[%s11742_s4 + $0x1038] sm:$0xff]  ;;  %v7907_v25 = vpack.c.bf16 %v1577_v18, %v1537_v16  ;;  %v8306_v16 = vld [vmem:[#allocation14] sm:$0xff]  ;;  %v8020_v18 = vld [vmem:[%s11743_s5 + $0x148] sm:$0xff]  }
 0x615   :  { %7840 = vmatpush1.bf16.msra.mxu0 %v7839_v20  ;;  %v7911_v20 = vpack.c.bf16 %v1099_v2, %v1059_v37  ;;  %v1457_v37 = vld [vmem:[%s11742_s4 + $0xda0] sm:$0xff] }
 0x616   :  { %7842 = vmatprep.subr.bf16.mxu0 %v7841_v26  ;;  %7872 = vmatpush1.bf16.msra.mxu1 %v7871_v38  ;;  %v1217_v26 = vld [vmem:[%s11742_s4 + $0x620] sm:$0xff]  ;;  %v1340_v38 = vld [vmem:[%s11742_s4 + $0x9f8] sm:$0xff] }
 0x617   :  { %7874 = vmatprep.subr.bf16.mxu1 %v7873_v43  ;;  %v7891_v43 = vpack.c.bf16 %v1257_v27, %v1217_v26  ;;  %v7921_v50 = vpack.c.bf16 %v1340_v38, %v1300_v36  ;;  %v1497_v2 = vld [vmem:[%s11742_s4 + $0xee0] sm:$0xff]  ;;  %v1618_v27 = vld [vmem:[%s11742_s4 + $0x12a8] sm:$0xff] }
 0x618   :  { %v7903_v17 = vpack.c.bf16 %v1497_v2, %v1457_v37  ;;  %v8012_v37 = vld [vmem:[%s11743_s5 + $0x78] sm:$0xff]  }
 0x619   :  { %7844 = vmatpush1.bf16.msra.mxu0 %v7843_v33  ;;  %v1338_v33 = vld [vmem:[%s11742_s4 + $0x9e8] sm:$0xff]  ;;  %v8013_v2 = vld [vmem:[%s11743_s5 + $0xf8] sm:$0xff]  }
 0x61a   :  { %7846 = vmatprep.subr.bf16.mxu0 %v7845_v40  ;;  %7876 = vmatpush1.bf16.msra.mxu1 %v7875_v48  ;;  %v1297_v40 = vld [vmem:[%s11742_s4 + $0x8a0] sm:$0xff]  ;;  %v7893_v48 = vpack.c.bf16 %v1338_v33, %v1298_v32  ;;  %v1619_v32 = vld [vmem:[%s11742_s4 + $0x12b0] sm:$0xff] }
 0x61b   :  { %7878 = vmatprep.subr.bf16.mxu1 %v7877_v51  ;;  %v1420_v51 = vld [vmem:[%s11742_s4 + $0xc78] sm:$0xff]  ;;  %v7984_v33 = vld [vmem:[%s11743_s5 + $0x40] sm:$0xff]  }
 0x61d   :  { %7848 = vmatpush1.bf16.msra.mxu0 %v7847_v46  ;;  %v1378_v46 = vld [vmem:[%s11742_s4 + $0xb28] sm:$0xff] }
 0x61e   :  { %7850 = vmatprep.subr.bf16.mxu0 %v7849_v49  ;;  %7880 = vmatpush1.bf16.msra.mxu1 %v7879_v55  ;;  %v1380_v49 = vld [vmem:[%s11742_s4 + $0xb38] sm:$0xff]  ;;  %v1379_v55 = vld [vmem:[%s11742_s4 + $0xb30] sm:$0xff]  ;;  %v7897_v60 = vpack.c.bf16 %v1418_v47, %v1378_v46  ;;  %v3088_v46 = vpack.c.bf16 %v10216_v45, %v10216_v45  ;;  %v7991_v47 = vld [vmem:[%s11743_s5 + $0x88] sm:$0xff]  }
 0x61f   :  { %2860 = vmatprep.subr.mxu1 %v1616_v56  ;;  %v1419_v56 = vld [vmem:[%s11742_s4 + $0xc70] sm:$0xff]  ;;  %v7925_v62 = vpack.c.bf16 %v1420_v51, %v1380_v49  ;;  %v7997_v49 = vld [vmem:[%s11743_s5 + $0xd8] sm:$0xff]  }
 0x620   :  { %v7994_v45 = vld [vmem:[%s11743_s5 + $0x10] sm:$0xff]   ;;  %v7999_v51 = vld [vmem:[%s11743_s5 + $0x98] sm:$0xff]  }
 0x621   :  { %7852 = vmatpush1.bf16.msra.mxu0 %v7851_v53  ;;  %v1417_v53 = vld [vmem:[%s11742_s4 + $0xc60] sm:$0xff] }
 0x622   :  { %2789 = vmatprep.subr.mxu0 %v1614_v54  ;;  %2861 = vmatpush1.msra.mxu1 %v1615_v5  ;;  %v7895_v54 = vpack.c.bf16 %v1337_v41, %v1297_v40  ;;  %v7899_v3 = vpack.c.bf16 %v1417_v53, %v1377_v52  ;;  %v1499_v5 = vld [vmem:[%s11742_s4 + $0xef0] sm:$0xff]  ;;  %v7987_v40 = vld [vmem:[%s11743_s5 + $0x80] sm:$0xff]   ;;  %v7988_v41 = vld [vmem:[%s11743_s5 + $0x48] sm:$0xff]  }
 0x623   :  { %7910 = vmatprep.subr.bf16.mxu1 %v7909_v11  ;;  %6571 = vmatmul.mubr.msk.f32.vlgmr.msra.gmra.mrb[16].mxu1 %vm1621_vm3, %v10438_v23  ;;  %v7901_v11 = vpack.c.bf16 %v1498_v58, %v1458_v57  ;;  %v7931_v19 = vpack.c.bf16 %v1499_v5, %v1459_v4  ;;  %v8000_v52 = vld [vmem:[%s11743_s5 + $0x60] sm:$0xff]   ;;  %v8005_v57 = vld [vmem:[%s11743_s5 + $0xe8] sm:$0xff]   ;;  %v8015_v5 = vld [vmem:[%s11743_s5 + $0xb8] sm:$0xff]  }
 0x624   :  { %v10408_v8 = vpop.f32.mrb[2].mxu1  ;;  %7912 = vmatpush1.bf16.msra.mxu1 %v7911_v20  ;;  %3038 = vmatprep.mubr.f32.mxu1 %v8364_v0  ;;  %v7905_v20 = vpack.c.bf16 %v1578_v9, %v1538_v7  ;;  %v8001_v53 = vld [vmem:[%s11743_s5 + $0xe0] sm:$0xff]   ;;  %v8006_v58 = vld [vmem:[%s11743_s5 + $0x28] sm:$0xff]  }
 0x625   :  { %3051 = vst [vmem:[#allocation14 + $0x30] sm:$0xff] %v10408_v8  ;;  %v10414_v12 = vpop.f32.mrb[3].mxu1  ;;  %2790 = vmatpush1.msra.mxu0 %v1613_v63  ;;  %7914 = vmatprep.subr.bf16.mxu1 %v7913_v24  ;;  %v1500_v63 = vld [vmem:[%s11742_s4 + $0xef8] sm:$0xff]  ;;  %v1579_v24 = vld [vmem:[%s11742_s4 + $0x1170] sm:$0xff]  ;;  %v8016_v9 = vld [vmem:[%s11743_s5 + $0x140] sm:$0xff]  }
 0x626   :  { %3052 = vst [vmem:[#allocation14 + $0x38] sm:$0xff] %v10414_v12  ;;  %6570 = vmatmul.mubr.msk.f32.vlgmr.msra.gmra.mrb[16].mxu0 %vm1621_vm3, %v10438_v23  ;;  %7882 = vmatprep.subr.bf16.mxu0 %v7881_v10  ;;  %v7927_v10 = vpack.c.bf16 %v1419_v56, %v1379_v55  ;;  %v7929_v14 = vpack.c.bf16 %v1500_v63, %v1460_v61  ;;  %v8003_v55 = vld [vmem:[%s11743_s5 + $0xa0] sm:$0xff]   ;;  %v8004_v56 = vld [vmem:[%s11743_s5 + $0x68] sm:$0xff]   ;;  %v8009_v61 = vld [vmem:[%s11743_s5 + $0xf0] sm:$0xff]  }
 0x627   :  { %v10384_v1 = vpop.f32.mrb[2].mxu0  ;;  %7884 = vmatpush1.bf16.msra.mxu0 %v7883_v15  ;;  %2967 = vmatprep.mubr.f32.mxu0 %v8364_v0  ;;  %v7919_v0 = vpack.c.bf16 %v1259_v30, %v1219_v29  ;;  %v1580_v15 = vld [vmem:[%s11742_s4 + $0x1178] sm:$0xff]  ;;  %v1617_v29 = vld [vmem:[%s11742_s4 + $0x12a0] sm:$0xff]  ;;  %v8011_v63 = vld [vmem:[%s11743_s5 + $0xb0] sm:$0xff]  }
 0x628   :  { %3049 = vst [vmem:[#allocation14 + $0x20] sm:$0xff] %v10384_v1  ;;  %v10402_v6 = vpop.f32.mrb[3].mxu0  ;;  %7886 = vmatprep.subr.bf16.mxu0 %v7885_v21  ;;  %7916 = vmatpush1.bf16.msra.mxu1 %v7915_v34  ;;  %v1539_v21 = vld [vmem:[%s11742_s4 + $0x1030] sm:$0xff]  ;;  %v7933_v22 = vpack.c.bf16 %v1580_v15, %v1540_v13  ;;  %v8019_v15 = vld [vmem:[%s11743_s5 + $0x180] sm:$0xff]  }
 0x629   :  { %3050 = vst [vmem:[#allocation14 + $0x28] sm:$0xff] %v10402_v6  ;;  %7918 = vmatprep.subr.bf16.mxu1 %v7917_v42  ;;  %v7935_v26 = vpack.c.bf16 %v1579_v24, %v1539_v21  ;;  %v7986_v42 = vld [vmem:[%s11743_s5] sm:$0xff]   ;;  %v8021_v21 = vld [vmem:[%s11743_s5 + $0x1c8] sm:$0xff]  }
 0x62a   :  { %v8022_v24 = vld [vmem:[%s11743_s5 + $0x108] sm:$0xff]  }
 0x62b   :  { %7888 = vmatpush1.bf16.msra.mxu0 %v7887_v28  ;;  %v1620_v28 = vld [vmem:[%s11742_s4 + $0x12b8] sm:$0xff] }
 0x62c   :  { %7890 = vmatprep.subr.bf16.mxu0 %v7889_v35  ;;  %7920 = vmatpush1.bf16.msra.mxu1 %v7919_v0  ;;  %v7985_v35 = vld [vmem:[%s11743_s5 + $0xc0] sm:$0xff]   ;;  %v7995_v0 = vld [vmem:[%s11743_s5 + $0x90] sm:$0xff]  }
 0x62d   :  { %7922 = vmatprep.subr.bf16.mxu1 %v7921_v50  ;;  %v7998_v50 = vld [vmem:[%s11743_s5 + $0x18] sm:$0xff]  }
 0x62f   :  { %7892 = vmatpush1.bf16.msra.mxu0 %v7891_v43  ;;  %v7989_v43 = vld [vmem:[%s11743_s5 + $0xc8] sm:$0xff]  }
 0x630   :  { %7894 = vmatprep.subr.bf16.mxu0 %v7893_v48  ;;  %7924 = vmatpush1.bf16.msra.mxu1 %v7923_v59  ;;  %v7996_v48 = vld [vmem:[%s11743_s5 + $0x58] sm:$0xff]   ;;  %v8007_v59 = vld [vmem:[%s11743_s5 + $0xa8] sm:$0xff]  }
 0x631   :  { %7926 = vmatprep.subr.bf16.mxu1 %v7925_v62  ;;  %v8010_v62 = vld [vmem:[%s11743_s5 + $0x30] sm:$0xff]  }
 0x633   :  { %7896 = vmatpush1.bf16.msra.mxu0 %v7895_v54  ;;  %v8002_v54 = vld [vmem:[%s11743_s5 + $0x20] sm:$0xff]  }
 0x634   :  { %7898 = vmatprep.subr.bf16.mxu0 %v7897_v60  ;;  %7928 = vmatpush1.bf16.msra.mxu1 %v7927_v10  ;;  %v8008_v60 = vld [vmem:[%s11743_s5 + $0x70] sm:$0xff]  }
 0x635   :  { %7930 = vmatprep.subr.bf16.mxu1 %v7929_v14  ;;  %v8018_v14 = vld [vmem:[%s11743_s5 + $0x100] sm:$0xff]  }
 0x637   :  { %7900 = vmatpush1.bf16.msra.mxu0 %v7899_v3  ;;  %v8014_v3 = vld [vmem:[%s11743_s5 + $0x38] sm:$0xff]  }
 0x638   :  { %7902 = vmatprep.subr.bf16.mxu0 %v7901_v11  ;;  %7932 = vmatpush1.bf16.msra.mxu1 %v7931_v19  ;;  %v8017_v11 = vld [vmem:[%s11743_s5 + $0x1c0] sm:$0xff]   ;;  %v8307_v19 = vld [vmem:[#allocation14 + $0x10] sm:$0xff] }
 0x639   :  { %7934 = vmatprep.subr.bf16.mxu1 %v7933_v22  ;;  %v3090_v22 = vpack.c.bf16 %v10402_v6, %v10402_v6  ;;  %v8024_v6 = vld [vmem:[%s11743_s5 + $0x150] sm:$0xff]  }
 0x63b   :  { %7904 = vmatpush1.bf16.msra.mxu0 %v7903_v17  ;;  %v3085_v17 = vpack.c.bf16 %v8306_v16, %v8306_v16  ;;  %v8064_v16 = vld [vmem:[%s11743_s5 + $0x260] sm:$0xff]  }
 0x63c   :  { %7906 = vmatprep.subr.bf16.mxu0 %v7905_v20  ;;  %7936 = vmatpush1.bf16.msra.mxu1 %v7935_v26  ;;  %v3087_v20 = vpack.c.bf16 %v8307_v19, %v8307_v19  ;;  %v8023_v26 = vld [vmem:[%s11743_s5 + $0x188] sm:$0xff]   ;;  %v8067_v19 = vld [vmem:[%s11743_s5 + $0x2a0] sm:$0xff]  }
 0x63d   :  { %3002 = vmatprep.subr.mxu1 %v1620_v28  ;;  %v8027_v28 = vld [vmem:[%s11743_s5 + $0x190] sm:$0xff]  }
 0x63f   :  { %7908 = vmatpush1.bf16.msra.mxu0 %v7907_v25  ;;  %v3092_v25 = vpack.c.bf16 %v10414_v12, %v10414_v12  ;;  %v8026_v12 = vld [vmem:[%s11743_s5 + $0x110] sm:$0xff]  }
 0x640   :  { %2931 = vmatprep.subr.mxu0 %v1618_v27  ;;  %3003 = vmatpush1.msra.mxu1 %v1619_v32  ;;  %v8025_v27 = vld [vmem:[%s11743_s5 + $0x1d0] sm:$0xff]   ;;  %v8029_v32 = vld [vmem:[%s11743_s5 + $0x1d8] sm:$0xff]  }
 0x641   :  { %6573 = vmatmul.mubr.msk.f32.vlgmr.msra.gmra.mrb[18].mxu1 %vm1621_vm3, %v10438_v23  ;;  %6929 = vmatprep.subr.bf16.mxu1 %v7985_v35  ;;  %v8031_v35 = vld [vmem:[%s11743_s5 + $0x198] sm:$0xff]  }
 0x642   :  { %v10581_v36 = vpop.f32.mrb[4].mxu1  ;;  %6930 = vmatpush3.bf16.msra.mxu1 %v7987_v40  ;;  %5764 = vmatprep.mubr.bf16.mxu1 %v3088_v46  ;;  %v8033_v40 = vld [vmem:[%s11743_s5 + $0x1e0] sm:$0xff]   ;;  %v8038_v46 = vld [vmem:[%s11743_s5 + $0x128] sm:$0xff]  }
 0x643   :  { %3055 = vst [vmem:[#allocation14 + $0x50] sm:$0xff] %v10581_v36  ;;  %v10587_v38 = vpop.f32.mrb[5].mxu1  ;;  %2932 = vmatpush1.msra.mxu0 %v1617_v29  ;;  %6931 = vmatprep.subr.bf16.mxu1 %v7989_v43  ;;  %v8028_v29 = vld [vmem:[%s11743_s5 + $0x158] sm:$0xff]   ;;  %v8035_v43 = vld [vmem:[%s11743_s5 + $0x1a0] sm:$0xff]  }
 0x644   :  { %3056 = vst [vmem:[#allocation14 + $0x58] sm:$0xff] %v10587_v38  ;;  %6572 = vmatmul.mubr.msk.f32.vlgmr.msra.gmra.mrb[18].mxu0 %vm1621_vm3, %v10438_v23  ;;  %6907 = vmatprep.subr.bf16.mxu0 %v7984_v33  ;;  %v7993_v23 = vld [vmem:[%s11743_s5 + $0xd0] sm:$0xff]   ;;  %v8030_v33 = vld [vmem:[%s11743_s5 + $0x118] sm:$0xff]  }
 0x645   :  { %v10566_v30 = vpop.f32.mrb[4].mxu0  ;;  %6908 = vmatpush3.bf16.msra.mxu0 %v7986_v42  ;;  %5724 = vmatprep.mubr.bf16.mxu0 %v3086_v31  ;;  %v8032_v42 = vld [vmem:[%s11743_s5 + $0x160] sm:$0xff]   ;;  %v8036_v31 = vld [vmem:[%s11743_s5 + $0x168] sm:$0xff]  }
 0x646   :  { %3053 = vst [vmem:[#allocation14 + $0x40] sm:$0xff] %v10566_v30  ;;  %v10575_v34 = vpop.f32.mrb[5].mxu0  ;;  %6909 = vmatprep.subr.bf16.mxu0 %v7988_v41  ;;  %6932 = vmatpush3.bf16.msra.mxu1 %v7991_v47  ;;  %v8034_v41 = vld [vmem:[%s11743_s5 + $0x120] sm:$0xff]   ;;  %v8039_v47 = vld [vmem:[%s11743_s5 + $0x1a8] sm:$0xff]  }
 0x647   :  { %3054 = vst [vmem:[#allocation14 + $0x48] sm:$0xff] %v10575_v34  ;;  %6933 = vmatprep.subr.bf16.mxu1 %v7993_v23  ;;  %v8041_v23 = vld [vmem:[%s11743_s5 + $0x1f0] sm:$0xff]  }
 0x649   :  { %6910 = vmatpush3.bf16.msra.mxu0 %v7990_v44  ;;  %v8037_v44 = vld [vmem:[%s11743_s5 + $0x1e8] sm:$0xff]  }
 0x64a   :  { %6911 = vmatprep.subr.bf16.mxu0 %v7992_v39  ;;  %6934 = vmatpush3.bf16.msra.mxu1 %v7995_v0  ;;  %v8040_v39 = vld [vmem:[%s11743_s5 + $0x170] sm:$0xff]  }
 0x64b   :  { %6935 = vmatprep.subr.bf16.mxu1 %v7997_v49  ;;  %v8043_v0 = vld [vmem:[%s11743_s5 + $0x1b0] sm:$0xff]   ;;  %v8045_v49 = vld [vmem:[%s11743_s5 + $0x1f8] sm:$0xff]  }
 0x64d   :  { %6912 = vmatpush3.bf16.msra.mxu0 %v7994_v45  ;;  %v8042_v45 = vld [vmem:[%s11743_s5 + $0x130] sm:$0xff]  }
 0x64e   :  { %6913 = vmatprep.subr.bf16.mxu0 %v7996_v48  ;;  %6936 = vmatpush3.bf16.msra.mxu1 %v7999_v51  ;;  %v8044_v48 = vld [vmem:[%s11743_s5 + $0x178] sm:$0xff]  }
 0x64f   :  { %6937 = vmatprep.subr.bf16.mxu1 %v8001_v53  ;;  %v8046_v51 = vld [vmem:[%s11743_s5 + $0x138] sm:$0xff]  }
 0x650   :  { %v8047_v53 = vld [vmem:[%s11743_s5 + $0x1b8] sm:$0xff]  }
 0x651   :  { %6914 = vmatpush3.bf16.msra.mxu0 %v7998_v50 }
 0x652   :  { %6915 = vmatprep.subr.bf16.mxu0 %v8000_v52  ;;  %6938 = vmatpush3.bf16.msra.mxu1 %v8003_v55 }
 0x653   :  { %6939 = vmatprep.subr.bf16.mxu1 %v8005_v57  ;;  %v8049_v57 = vld [vmem:[%s11743_s5 + $0x2c0] sm:$0xff]  }
 0x655   :  { %6916 = vmatpush3.bf16.msra.mxu0 %v8002_v54 }
 0x656   :  { %6917 = vmatprep.subr.bf16.mxu0 %v8004_v56  ;;  %6940 = vmatpush3.bf16.msra.mxu1 %v8007_v59  ;;  %v8048_v56 = vld [vmem:[%s11743_s5 + $0x240] sm:$0xff]  }
 0x657   :  { %6941 = vmatprep.subr.bf16.mxu1 %v8009_v61  ;;  %v8051_v59 = vld [vmem:[%s11743_s5 + $0x280] sm:$0xff]   ;;  %v8052_v61 = vld [vmem:[%s11743_s5 + $0x248] sm:$0xff]  }
 0x659   :  { %6918 = vmatpush3.bf16.msra.mxu0 %v8006_v58  ;;  %v8050_v58 = vld [vmem:[%s11743_s5 + $0x200] sm:$0xff]  }
 0x65a   :  { %6919 = vmatprep.subr.bf16.mxu0 %v8008_v60  ;;  %6942 = vmatpush3.bf16.msra.mxu1 %v8011_v63  ;;  %v3089_v60 = vpack.c.bf16 %v10384_v1, %v10384_v1  ;;  %v8053_v63 = vld [vmem:[%s11743_s5 + $0x2c8] sm:$0xff]  }
 0x65b   :  { %6943 = vmatprep.subr.bf16.mxu1 %v8013_v2  ;;  %v8054_v1 = vld [vmem:[%s11743_s5 + $0x208] sm:$0xff]   ;;  %v3096_v2 = vpack.c.bf16 %v10587_v38, %v10587_v38  ;;  %v8058_v38 = vld [vmem:[%s11743_s5 + $0x210] sm:$0xff]  }
 0x65d   :  { %6920 = vmatpush3.bf16.msra.mxu0 %v8010_v62  ;;  %v3091_v62 = vpack.c.bf16 %v10408_v8, %v10408_v8  ;;  %v8055_v8 = vld [vmem:[%s11743_s5 + $0x288] sm:$0xff]  }
 0x65e   :  { %6921 = vmatprep.subr.bf16.mxu0 %v8012_v37  ;;  %6944 = vmatpush3.bf16.msra.mxu1 %v8015_v5  ;;  %v3094_v37 = vpack.c.bf16 %v10575_v34, %v10575_v34  ;;  %v8056_v34 = vld [vmem:[%s11743_s5 + $0x250] sm:$0xff]  }
 0x65f   :  { %6973 = vmatprep.subr.bf16.mxu1 %v8017_v11  ;;  %v8059_v5 = vld [vmem:[%s11743_s5 + $0x290] sm:$0xff]   ;;  %v8061_v11 = vld [vmem:[%s11743_s5 + $0x2d8] sm:$0xff]  }
 0x660   :  { %v10694_v10 = vpop.f32.mrb[6].mxu1 }
 0x661   :  { %3059 = vst [vmem:[#allocation14 + $0x70] sm:$0xff] %v10694_v10  ;;  %v10700_v13 = vpop.f32.mrb[7].mxu1  ;;  %6922 = vmatpush3.bf16.msra.mxu0 %v8014_v3  ;;  %5765 = vmatmul.mubr.bf16.vlgmr.msra.gmra.mrb[20].mxu1 %v3087_v20  ;;  %v8057_v3 = vld [vmem:[%s11743_s5 + $0x2d0] sm:$0xff]   ;;  %v8068_v20 = vld [vmem:[%s11743_s5 + $0x268] sm:$0xff]  }
 0x662   :  { %3060 = vst [vmem:[#allocation14 + $0x78] sm:$0xff] %v10700_v13  ;;  %6951 = vmatprep.subr.bf16.mxu0 %v8016_v9  ;;  %6974 = vmatpush3.bf16.msra.mxu1 %v8019_v15  ;;  %v8060_v9 = vld [vmem:[%s11743_s5 + $0x258] sm:$0xff]  }
 0x663   :  { %v10682_v4 = vpop.f32.mrb[6].mxu0  ;;  %5844 = vmatprep.mubr.bf16.mxu1 %v3092_v25  ;;  %6975 = vmatprep.subr.bf16.mxu1 %v8021_v21  ;;  %v8063_v15 = vld [vmem:[%s11743_s5 + $0x298] sm:$0xff]   ;;  %v8069_v21 = vld [vmem:[%s11743_s5 + $0x2e8] sm:$0xff]   ;;  %v8072_v25 = vld [vmem:[%s11743_s5 + $0x270] sm:$0xff]  }
 0x664   :  { %3057 = vst [vmem:[#allocation14 + $0x60] sm:$0xff] %v10682_v4  ;;  %v10688_v7 = vpop.f32.mrb[7].mxu0  ;;  %5725 = vmatmul.mubr.bf16.vlgmr.msra.gmra.mrb[20].mxu0 %v3085_v17  ;;  %v8065_v17 = vld [vmem:[%s11743_s5 + $0x2e0] sm:$0xff]  }
 0x665   :  { %3058 = vst [vmem:[#allocation14 + $0x68] sm:$0xff] %v10688_v7  ;;  %6952 = vmatpush3.bf16.msra.mxu0 %v8018_v14  ;;  %5804 = vmatprep.mubr.bf16.mxu0 %v3090_v22  ;;  %v8062_v14 = vld [vmem:[%s11743_s5 + $0x218] sm:$0xff]   ;;  %v8070_v22 = vld [vmem:[%s11743_s5 + $0x228] sm:$0xff]  }
 0x666   :  { %6953 = vmatprep.subr.bf16.mxu0 %v8020_v18  ;;  %6976 = vmatpush3.bf16.msra.mxu1 %v8023_v26  ;;  %v8066_v18 = vld [vmem:[%s11743_s5 + $0x220] sm:$0xff]   ;;  %v8073_v26 = vld [vmem:[%s11743_s5 + $0x2f0] sm:$0xff]  }
 0x667   :  { %6977 = vmatprep.subr.bf16.mxu1 %v8025_v27  ;;  %v8075_v27 = vld [vmem:[%s11743_s5 + $0x2b0] sm:$0xff]  }
 0x669   :  { %6954 = vmatpush3.bf16.msra.mxu0 %v8022_v24  ;;  %v8071_v24 = vld [vmem:[%s11743_s5 + $0x2a8] sm:$0xff]  }
 0x66a   :  { %6955 = vmatprep.subr.bf16.mxu0 %v8024_v6  ;;  %6978 = vmatpush3.bf16.msra.mxu1 %v8027_v28  ;;  %v8074_v6 = vld [vmem:[%s11743_s5 + $0x230] sm:$0xff]   ;;  %v8076_v28 = vld [vmem:[%s11743_s5 + $0x278] sm:$0xff]  }
 0x66b   :  { %6979 = vmatprep.subr.bf16.mxu1 %v8029_v32  ;;  %v8077_v32 = vld [vmem:[%s11743_s5 + $0x2f8] sm:$0xff]  }
 0x66d   :  { %6956 = vmatpush3.bf16.msra.mxu0 %v8026_v12 }
 0x66e   :  { %6957 = vmatprep.subr.bf16.mxu0 %v8028_v29  ;;  %6980 = vmatpush3.bf16.msra.mxu1 %v8031_v35  ;;  %v8078_v35 = vld [vmem:[%s11743_s5 + $0x238] sm:$0xff]  }
 0x66f   :  { %6981 = vmatprep.subr.bf16.mxu1 %v8033_v40 }
 0x671   :  { %6958 = vmatpush3.bf16.msra.mxu0 %v8030_v33 }
 0x672   :  { %6959 = vmatprep.subr.bf16.mxu0 %v8032_v42  ;;  %6982 = vmatpush3.bf16.msra.mxu1 %v8035_v43  ;;  %v8079_v42 = vld [vmem:[%s11743_s5 + $0x2b8] sm:$0xff]   ;;  %v8081_v43 = vld [vmem:[%s11743_s5 + $0x3c0] sm:$0xff]  }
 0x673   :  { %6983 = vmatprep.subr.bf16.mxu1 %v8037_v44  ;;  %v8083_v44 = vld [vmem:[%s11743_s5 + $0x380] sm:$0xff]  }
 0x675   :  { %6960 = vmatpush3.bf16.msra.mxu0 %v8034_v41  ;;  %v8080_v41 = vld [vmem:[%s11743_s5 + $0x340] sm:$0xff]  }
 0x676   :  { %6961 = vmatprep.subr.bf16.mxu0 %v8036_v31  ;;  %6984 = vmatpush3.bf16.msra.mxu1 %v8039_v47  ;;  %v8082_v31 = vld [vmem:[%s11743_s5 + $0x300] sm:$0xff]   ;;  %v8084_v47 = vld [vmem:[%s11743_s5 + $0x348] sm:$0xff]  }
 0x677   :  { %6985 = vmatprep.subr.bf16.mxu1 %v8041_v23  ;;  %v8085_v23 = vld [vmem:[%s11743_s5 + $0x3c8] sm:$0xff]  }
 0x679   :  { %6962 = vmatpush3.bf16.msra.mxu0 %v8038_v46  ;;  %v3093_v46 = vpack.c.bf16 %v10566_v30, %v10566_v30  ;;  %v8086_v30 = vld [vmem:[%s11743_s5 + $0x308] sm:$0xff]  }
 0x67a   :  { %6963 = vmatprep.subr.bf16.mxu0 %v8040_v39  ;;  %6986 = vmatpush3.bf16.msra.mxu1 %v8043_v0  ;;  %v3095_v39 = vpack.c.bf16 %v10581_v36, %v10581_v36  ;;  %v3100_v0 = vpack.c.bf16 %v10700_v13, %v10700_v13  ;;  %v8087_v36 = vld [vmem:[%s11743_s5 + $0x388] sm:$0xff]   ;;  %v8090_v13 = vld [vmem:[%s11743_s5 + $0x310] sm:$0xff]  }
 0x67b   :  { %6987 = vmatprep.subr.bf16.mxu1 %v8045_v49  ;;  %v8091_v49 = vld [vmem:[%s11743_s5 + $0x390] sm:$0xff]  }
 0x67d   :  { %6964 = vmatpush3.bf16.msra.mxu0 %v8042_v45  ;;  %v3098_v45 = vpack.c.bf16 %v10688_v7, %v10688_v7  ;;  %v8088_v7 = vld [vmem:[%s11743_s5 + $0x350] sm:$0xff]  }
 0x67e   :  { %v10803_v54 = vpop.f32.mrb[8].mxu1  ;;  %6965 = vmatprep.subr.bf16.mxu0 %v8044_v48  ;;  %6988 = vmatpush3.bf16.msra.mxu1 %v8047_v53  ;;  %v8089_v48 = vld [vmem:[%s11743_s5 + $0x3d0] sm:$0xff]   ;;  %v8093_v53 = vld [vmem:[%s11743_s5 + $0x3d8] sm:$0xff]  }
 0x67f   :  { %3063 = vst [vmem:[#allocation14 + $0x90] sm:$0xff] %v10803_v54  ;;  %v10806_v55 = vpop.f32.mrb[9].mxu1  ;;  %7017 = vmatprep.subr.bf16.mxu1 %v8049_v57  ;;  %v8095_v57 = vld [vmem:[%s11743_s5 + $0x398] sm:$0xff]  }
 0x680   :  { %3064 = vst [vmem:[#allocation14 + $0x98] sm:$0xff] %v10806_v55 }
 0x681   :  { %v10791_v50 = vpop.f32.mrb[8].mxu0  ;;  %6966 = vmatpush3.bf16.msra.mxu0 %v8046_v51  ;;  %5845 = vmatmul.mubr.bf16.vlgmr.msra.gmra.mrb[24].mxu1 %v3091_v62  ;;  %v8092_v51 = vld [vmem:[%s11743_s5 + $0x358] sm:$0xff]   ;;  %v8100_v62 = vld [vmem:[%s11743_s5 + $0x368] sm:$0xff]  }
 0x682   :  { %3061 = vst [vmem:[#allocation14 + $0x80] sm:$0xff] %v10791_v50  ;;  %v10797_v52 = vpop.f32.mrb[9].mxu0  ;;  %6995 = vmatprep.subr.bf16.mxu0 %v8048_v56  ;;  %7018 = vmatpush3.bf16.msra.mxu1 %v8051_v59  ;;  %v8094_v56 = vld [vmem:[%s11743_s5 + $0x318] sm:$0xff]   ;;  %v8097_v59 = vld [vmem:[%s11743_s5 + $0x3e0] sm:$0xff]  }
 0x683   :  { %3062 = vst [vmem:[#allocation14 + $0x88] sm:$0xff] %v10797_v52  ;;  %5924 = vmatprep.mubr.bf16.mxu1 %v3096_v2  ;;  %7019 = vmatprep.subr.bf16.mxu1 %v8053_v63  ;;  %v8101_v63 = vld [vmem:[%s11743_s5 + $0x3e8] sm:$0xff]   ;;  %v8104_v2 = vld [vmem:[%s11743_s5 + $0x370] sm:$0xff]  }
 0x684   :  { %5805 = vmatmul.mubr.bf16.vlgmr.msra.gmra.mrb[24].mxu0 %v3089_v60  ;;  %v8098_v60 = vld [vmem:[%s11743_s5 + $0x320] sm:$0xff]  }
 0x685   :  { %6996 = vmatpush3.bf16.msra.mxu0 %v8050_v58  ;;  %5884 = vmatprep.mubr.bf16.mxu0 %v3094_v37  ;;  %v8096_v58 = vld [vmem:[%s11743_s5 + $0x360] sm:$0xff]   ;;  %v8102_v37 = vld [vmem:[%s11743_s5 + $0x328] sm:$0xff]  }
 0x686   :  { %6997 = vmatprep.subr.bf16.mxu0 %v8052_v61  ;;  %7020 = vmatpush3.bf16.msra.mxu1 %v8055_v8  ;;  %v8099_v61 = vld [vmem:[%s11743_s5 + $0x3a0] sm:$0xff]   ;;  %v8105_v8 = vld [vmem:[%s11743_s5 + $0x3f0] sm:$0xff]  }
 0x687   :  { %7021 = vmatprep.subr.bf16.mxu1 %v8057_v3 }
 0x689   :  { %6998 = vmatpush3.bf16.msra.mxu0 %v8054_v1  ;;  %v8103_v1 = vld [vmem:[%s11743_s5 + $0x3a8] sm:$0xff]  }
 0x68a   :  { %6999 = vmatprep.subr.bf16.mxu0 %v8056_v34  ;;  %7022 = vmatpush3.bf16.msra.mxu1 %v8059_v5  ;;  %v8106_v34 = vld [vmem:[%s11743_s5 + $0x330] sm:$0xff]  }
 0x68b   :  { %7023 = vmatprep.subr.bf16.mxu1 %v8061_v11 }
 0x68d   :  { %7000 = vmatpush3.bf16.msra.mxu0 %v8058_v38  ;;  %v8107_v38 = vld [vmem:[%s11743_s5 + $0x3b0] sm:$0xff]  }
 0x68e   :  { %7001 = vmatprep.subr.bf16.mxu0 %v8060_v9  ;;  %7024 = vmatpush3.bf16.msra.mxu1 %v8063_v15  ;;  %v8108_v9 = vld [vmem:[%s11743_s5 + $0x378] sm:$0xff]  }
 0x68f   :  { %7025 = vmatprep.subr.bf16.mxu1 %v8065_v17  ;;  %v8111_v17 = vld [vmem:[%s11743_s5 + $0x3b8] sm:$0xff]  }
 0x691   :  { %7002 = vmatpush3.bf16.msra.mxu0 %v8062_v14  ;;  %v8109_v14 = vld [vmem:[%s11743_s5 + $0x3f8] sm:$0xff]  }
 0x692   :  { %7003 = vmatprep.subr.bf16.mxu0 %v8064_v16  ;;  %7026 = vmatpush3.bf16.msra.mxu1 %v8067_v19  ;;  %v8110_v16 = vld [vmem:[%s11743_s5 + $0x338] sm:$0xff]   ;;  %v8113_v19 = vld [vmem:[%s11743_s5 + $0x4c0] sm:$0xff]  }
 0x693   :  { %7027 = vmatprep.subr.bf16.mxu1 %v8069_v21  ;;  %v8115_v21 = vld [vmem:[%s11743_s5 + $0x480] sm:$0xff]  }
 0x695   :  { %7004 = vmatpush3.bf16.msra.mxu0 %v8066_v18  ;;  %v8112_v18 = vld [vmem:[%s11743_s5 + $0x440] sm:$0xff]  }
 0x696   :  { %7005 = vmatprep.subr.bf16.mxu0 %v8068_v20  ;;  %7028 = vmatpush3.bf16.msra.mxu1 %v8071_v24  ;;  %v8114_v20 = vld [vmem:[%s11743_s5 + $0x400] sm:$0xff]   ;;  %v8116_v24 = vld [vmem:[%s11743_s5 + $0x448] sm:$0xff]  }
 0x697   :  { %7029 = vmatprep.subr.bf16.mxu1 %v8073_v26  ;;  %v8117_v26 = vld [vmem:[%s11743_s5 + $0x4c8] sm:$0xff]  }
 0x699   :  { %7006 = vmatpush3.bf16.msra.mxu0 %v8070_v22  ;;  %v3097_v22 = vpack.c.bf16 %v10682_v4, %v10682_v4  ;;  %v8118_v4 = vld [vmem:[%s11743_s5 + $0x408] sm:$0xff]  }
 0x69a   :  { %7007 = vmatprep.subr.bf16.mxu0 %v8072_v25  ;;  %7030 = vmatpush3.bf16.msra.mxu1 %v8075_v27  ;;  %v3099_v25 = vpack.c.bf16 %v10694_v10, %v10694_v10  ;;  %v3104_v27 = vpack.c.bf16 %v10806_v55, %v10806_v55  ;;  %v8119_v10 = vld [vmem:[%s11743_s5 + $0x488] sm:$0xff]   ;;  %v8122_v55 = vld [vmem:[%s11743_s5 + $0x410] sm:$0xff]  }
 0x69b   :  { %7031 = vmatprep.subr.bf16.mxu1 %v8077_v32  ;;  %v8123_v32 = vld [vmem:[%s11743_s5 + $0x490] sm:$0xff]  }
 0x69c   :  { %v10913_v33 = vpop.f32.mrb[10].mxu1 }
 0x69d   :  { %7008 = vmatpush3.bf16.msra.mxu0 %v8074_v6  ;;  %3067 = vst [vmem:[#allocation14 + $0xb0] sm:$0xff] %v10913_v33  ;;  %v10922_v40 = vpop.f32.mrb[11].mxu1  ;;  %v3102_v6 = vpack.c.bf16 %v10797_v52, %v10797_v52  ;;  %v8120_v52 = vld [vmem:[%s11743_s5 + $0x450] sm:$0xff]  }
 0x69e   :  { %7009 = vmatprep.subr.bf16.mxu0 %v8076_v28  ;;  %3068 = vst [vmem:[#allocation14 + $0xb8] sm:$0xff] %v10922_v40  ;;  %7032 = vmatpush3.bf16.msra.mxu1 %v8079_v42  ;;  %v8121_v28 = vld [vmem:[%s11743_s5 + $0x4d0] sm:$0xff]   ;;  %v8125_v42 = vld [vmem:[%s11743_s5 + $0x4d8] sm:$0xff]  }
 0x69f   :  { %v10901_v12 = vpop.f32.mrb[10].mxu0  ;;  %7061 = vmatprep.subr.bf16.mxu1 %v8081_v43  ;;  %v8127_v43 = vld [vmem:[%s11743_s5 + $0x498] sm:$0xff]  }
 0x6a0   :  { %3065 = vst [vmem:[#allocation14 + $0xa0] sm:$0xff] %v10901_v12  ;;  %v10907_v29 = vpop.f32.mrb[11].mxu0 }
 0x6a1   :  { %3066 = vst [vmem:[#allocation14 + $0xa8] sm:$0xff] %v10907_v29  ;;  %7010 = vmatpush3.bf16.msra.mxu0 %v8078_v35  ;;  %5925 = vmatmul.mubr.bf16.vlgmr.msra.gmra.mrb[28].mxu1 %v3095_v39  ;;  %v8124_v35 = vld [vmem:[%s11743_s5 + $0x458] sm:$0xff]   ;;  %v8132_v39 = vld [vmem:[%s11743_s5 + $0x468] sm:$0xff]  }
 0x6a2   :  { %7039 = vmatprep.subr.bf16.mxu0 %v8080_v41  ;;  %7062 = vmatpush3.bf16.msra.mxu1 %v8083_v44  ;;  %v8126_v41 = vld [vmem:[%s11743_s5 + $0x418] sm:$0xff]   ;;  %v8129_v44 = vld [vmem:[%s11743_s5 + $0x4e0] sm:$0xff]  }
 0x6a3   :  { %6004 = vmatprep.mubr.bf16.mxu1 %v3100_v0  ;;  %7063 = vmatprep.subr.bf16.mxu1 %v8085_v23  ;;  %v8133_v23 = vld [vmem:[%s11743_s5 + $0x4e8] sm:$0xff]   ;;  %v8136_v0 = vld [vmem:[%s11743_s5 + $0x470] sm:$0xff]  }
 0x6a4   :  { %5885 = vmatmul.mubr.bf16.vlgmr.msra.gmra.mrb[28].mxu0 %v3093_v46  ;;  %v8130_v46 = vld [vmem:[%s11743_s5 + $0x420] sm:$0xff]  }
 0x6a5   :  { %7040 = vmatpush3.bf16.msra.mxu0 %v8082_v31  ;;  %5964 = vmatprep.mubr.bf16.mxu0 %v3098_v45  ;;  %v8128_v31 = vld [vmem:[%s11743_s5 + $0x460] sm:$0xff]   ;;  %v8134_v45 = vld [vmem:[%s11743_s5 + $0x428] sm:$0xff]  }
 0x6a6   :  { %7041 = vmatprep.subr.bf16.mxu0 %v8084_v47  ;;  %7064 = vmatpush3.bf16.msra.mxu1 %v8087_v36  ;;  %v8131_v47 = vld [vmem:[%s11743_s5 + $0x4a0] sm:$0xff]   ;;  %v8137_v36 = vld [vmem:[%s11743_s5 + $0x4f0] sm:$0xff]  }
 0x6a7   :  { %7065 = vmatprep.subr.bf16.mxu1 %v8089_v48  ;;  %v8138_v48 = vld [vmem:[%s11743_s5 + $0x430] sm:$0xff]  }
 0x6a9   :  { %7042 = vmatpush3.bf16.msra.mxu0 %v8086_v30  ;;  %v8135_v30 = vld [vmem:[%s11743_s5 + $0x4a8] sm:$0xff]  }
 0x6aa   :  { %7043 = vmatprep.subr.bf16.mxu0 %v8088_v7  ;;  %7066 = vmatpush3.bf16.msra.mxu1 %v8091_v49  ;;  %v8139_v49 = vld [vmem:[%s11743_s5 + $0x4b0] sm:$0xff]  }
 0x6ab   :  { %7067 = vmatprep.subr.bf16.mxu1 %v8093_v53  ;;  %v8140_v53 = vld [vmem:[%s11743_s5 + $0x478] sm:$0xff]  }
 0x6ad   :  { %7044 = vmatpush3.bf16.msra.mxu0 %v8090_v13 }
 0x6ae   :  { %7045 = vmatprep.subr.bf16.mxu0 %v8092_v51  ;;  %7068 = vmatpush3.bf16.msra.mxu1 %v8095_v57  ;;  %v8141_v57 = vld [vmem:[%s11743_s5 + $0x4f8] sm:$0xff]  }
 0x6af   :  { %7069 = vmatprep.subr.bf16.mxu1 %v8097_v59  ;;  %v8143_v59 = vld [vmem:[%s11743_s5 + $0x4b8] sm:$0xff]  }
 0x6b1   :  { %7046 = vmatpush3.bf16.msra.mxu0 %v8094_v56 }
 0x6b2   :  { %7047 = vmatprep.subr.bf16.mxu0 %v8096_v58  ;;  %7070 = vmatpush3.bf16.msra.mxu1 %v8099_v61  ;;  %v8142_v58 = vld [vmem:[%s11743_s5 + $0x438] sm:$0xff]   ;;  %v8145_v61 = vld [vmem:[%s11743_s5 + $0x5c0] sm:$0xff]  }
 0x6b3   :  { %7071 = vmatprep.subr.bf16.mxu1 %v8101_v63  ;;  %v8147_v63 = vld [vmem:[%s11743_s5 + $0x580] sm:$0xff]  }
 0x6b5   :  { %7048 = vmatpush3.bf16.msra.mxu0 %v8098_v60  ;;  %v8144_v60 = vld [vmem:[%s11743_s5 + $0x540] sm:$0xff]  }
 0x6b6   :  { %7049 = vmatprep.subr.bf16.mxu0 %v8100_v62  ;;  %7072 = vmatpush3.bf16.msra.mxu1 %v8103_v1  ;;  %v8146_v62 = vld [vmem:[%s11743_s5 + $0x500] sm:$0xff]   ;;  %v8148_v1 = vld [vmem:[%s11743_s5 + $0x548] sm:$0xff]  }
 0x6b7   :  { %7073 = vmatprep.subr.bf16.mxu1 %v8105_v8  ;;  %v8149_v8 = vld [vmem:[%s11743_s5 + $0x5c8] sm:$0xff]  }
 0x6b9   :  { %7050 = vmatpush3.bf16.msra.mxu0 %v8102_v37  ;;  %v3101_v37 = vpack.c.bf16 %v10791_v50, %v10791_v50  ;;  %v8150_v50 = vld [vmem:[%s11743_s5 + $0x508] sm:$0xff]  }
 0x6ba   :  { %7051 = vmatprep.subr.bf16.mxu0 %v8104_v2  ;;  %v11026_v11 = vpop.f32.mrb[12].mxu1  ;;  %7074 = vmatpush3.bf16.msra.mxu1 %v8107_v38  ;;  %v3103_v2 = vpack.c.bf16 %v10803_v54, %v10803_v54  ;;  %v3108_v38 = vpack.c.bf16 %v10922_v40, %v10922_v40  ;;  %v8151_v54 = vld [vmem:[%s11743_s5 + $0x588] sm:$0xff]   ;;  %v8154_v40 = vld [vmem:[%s11743_s5 + $0x510] sm:$0xff]  }
 0x6bb   :  { %3071 = vst [vmem:[#allocation14 + $0xd0] sm:$0xff] %v11026_v11  ;;  %v11032_v15 = vpop.f32.mrb[13].mxu1  ;;  %7075 = vmatprep.subr.bf16.mxu1 %v8109_v14  ;;  %v8155_v14 = vld [vmem:[%s11743_s5 + $0x590] sm:$0xff]  }
 0x6bc   :  { %3072 = vst [vmem:[#allocation14 + $0xd8] sm:$0xff] %v11032_v15 }
 0x6bd   :  { %v11014_v3 = vpop.f32.mrb[12].mxu0  ;;  %7052 = vmatpush3.bf16.msra.mxu0 %v8106_v34  ;;  %v3106_v34 = vpack.c.bf16 %v10907_v29, %v10907_v29  ;;  %v8152_v29 = vld [vmem:[%s11743_s5 + $0x550] sm:$0xff]  }
 0x6be   :  { %3069 = vst [vmem:[#allocation14 + $0xc0] sm:$0xff] %v11014_v3  ;;  %v11020_v5 = vpop.f32.mrb[13].mxu0  ;;  %7053 = vmatprep.subr.bf16.mxu0 %v8108_v9  ;;  %7076 = vmatpush3.bf16.msra.mxu1 %v8111_v17  ;;  %v8153_v9 = vld [vmem:[%s11743_s5 + $0x5d0] sm:$0xff]   ;;  %v8157_v17 = vld [vmem:[%s11743_s5 + $0x5d8] sm:$0xff]  }
 0x6bf   :  { %3070 = vst [vmem:[#allocation14 + $0xc8] sm:$0xff] %v11020_v5  ;;  %7105 = vmatprep.subr.bf16.mxu1 %v8113_v19  ;;  %v8159_v19 = vld [vmem:[%s11743_s5 + $0x598] sm:$0xff]  }
 0x6c1   :  { %7054 = vmatpush3.bf16.msra.mxu0 %v8110_v16  ;;  %6005 = vmatmul.mubr.bf16.vlgmr.msra.gmra.mrb[32].mxu1 %v3099_v25  ;;  %v8156_v16 = vld [vmem:[%s11743_s5 + $0x558] sm:$0xff]   ;;  %v8164_v25 = vld [vmem:[%s11743_s5 + $0x568] sm:$0xff]  }
 0x6c2   :  { %7083 = vmatprep.subr.bf16.mxu0 %v8112_v18  ;;  %7106 = vmatpush3.bf16.msra.mxu1 %v8115_v21  ;;  %v8158_v18 = vld [vmem:[%s11743_s5 + $0x518] sm:$0xff]   ;;  %v8161_v21 = vld [vmem:[%s11743_s5 + $0x5e0] sm:$0xff]  }
 0x6c3   :  { %6084 = vmatprep.mubr.bf16.mxu1 %v3104_v27  ;;  %7107 = vmatprep.subr.bf16.mxu1 %v8117_v26  ;;  %v8165_v26 = vld [vmem:[%s11743_s5 + $0x5e8] sm:$0xff]   ;;  %v8168_v27 = vld [vmem:[%s11743_s5 + $0x570] sm:$0xff]  }
 0x6c4   :  { %5965 = vmatmul.mubr.bf16.vlgmr.msra.gmra.mrb[32].mxu0 %v3097_v22  ;;  %v8162_v22 = vld [vmem:[%s11743_s5 + $0x520] sm:$0xff]  }
 0x6c5   :  { %7084 = vmatpush3.bf16.msra.mxu0 %v8114_v20  ;;  %6044 = vmatprep.mubr.bf16.mxu0 %v3102_v6  ;;  %v8160_v20 = vld [vmem:[%s11743_s5 + $0x560] sm:$0xff]   ;;  %v8166_v6 = vld [vmem:[%s11743_s5 + $0x528] sm:$0xff]  }
 0x6c6   :  { %7085 = vmatprep.subr.bf16.mxu0 %v8116_v24  ;;  %7108 = vmatpush3.bf16.msra.mxu1 %v8119_v10  ;;  %v8163_v24 = vld [vmem:[%s11743_s5 + $0x5a0] sm:$0xff]  }
 0x6c7   :  { %7109 = vmatprep.subr.bf16.mxu1 %v8121_v28 }
 0x6c9   :  { %7086 = vmatpush3.bf16.msra.mxu0 %v8118_v4  ;;  %v8167_v4 = vld [vmem:[%s11743_s5 + $0x5a8] sm:$0xff]  }
 0x6ca   :  { %7087 = vmatprep.subr.bf16.mxu0 %v8120_v52  ;;  %7110 = vmatpush3.bf16.msra.mxu1 %v8123_v32  ;;  %v8169_v52 = vld [vmem:[%s11743_s5 + $0x5f0] sm:$0xff]  }
 0x6cb   :  { %7111 = vmatprep.subr.bf16.mxu1 %v8125_v42 }
 0x6cd   :  { %7088 = vmatpush3.bf16.msra.mxu0 %v8122_v55  ;;  %v8170_v55 = vld [vmem:[%s11743_s5 + $0x530] sm:$0xff]  }
 0x6ce   :  { %7089 = vmatprep.subr.bf16.mxu0 %v8124_v35  ;;  %7112 = vmatpush3.bf16.msra.mxu1 %v8127_v43  ;;  %v8171_v35 = vld [vmem:[%s11743_s5 + $0x5b0] sm:$0xff]   ;;  %v8173_v43 = vld [vmem:[%s11743_s5 + $0x5f8] sm:$0xff]  }
 0x6cf   :  { %7113 = vmatprep.subr.bf16.mxu1 %v8129_v44  ;;  %v8175_v44 = vld [vmem:[%s11743_s5 + $0x5b8] sm:$0xff]  }
 0x6d1   :  { %7090 = vmatpush3.bf16.msra.mxu0 %v8126_v41  ;;  %v8172_v41 = vld [vmem:[%s11743_s5 + $0x578] sm:$0xff]  }
 0x6d2   :  { %7091 = vmatprep.subr.bf16.mxu0 %v8128_v31  ;;  %7114 = vmatpush3.bf16.msra.mxu1 %v8131_v47  ;;  %v8174_v31 = vld [vmem:[%s11743_s5 + $0x538] sm:$0xff]   ;;  %v8177_v47 = vld [vmem:[%s11743_s5 + $0x6c0] sm:$0xff]  }
 0x6d3   :  { %7115 = vmatprep.subr.bf16.mxu1 %v8133_v23  ;;  %v8179_v23 = vld [vmem:[%s11743_s5 + $0x680] sm:$0xff]  }
 0x6d5   :  { %7092 = vmatpush3.bf16.msra.mxu0 %v8130_v46  ;;  %v8176_v46 = vld [vmem:[%s11743_s5 + $0x640] sm:$0xff]  }
 0x6d6   :  { %7093 = vmatprep.subr.bf16.mxu0 %v8132_v39  ;;  %7116 = vmatpush3.bf16.msra.mxu1 %v8135_v30  ;;  %v8178_v39 = vld [vmem:[%s11743_s5 + $0x600] sm:$0xff]   ;;  %v8180_v30 = vld [vmem:[%s11743_s5 + $0x648] sm:$0xff]  }
 0x6d7   :  { %7117 = vmatprep.subr.bf16.mxu1 %v8137_v36  ;;  %v8181_v36 = vld [vmem:[%s11743_s5 + $0x6c8] sm:$0xff]  }
 0x6d8   :  { %v11139_v51 = vpop.f32.mrb[14].mxu1 }
 0x6d9   :  { %7094 = vmatpush3.bf16.msra.mxu0 %v8134_v45  ;;  %3075 = vst [vmem:[#allocation14 + $0xf0] sm:$0xff] %v11139_v51  ;;  %v11145_v56 = vpop.f32.mrb[15].mxu1  ;;  %v3105_v45 = vpack.c.bf16 %v10901_v12, %v10901_v12  ;;  %v8182_v12 = vld [vmem:[%s11743_s5 + $0x608] sm:$0xff]  }
 0x6da   :  { %7095 = vmatprep.subr.bf16.mxu0 %v8136_v0  ;;  %3076 = vst [vmem:[#allocation14 + $0xf8] sm:$0xff] %v11145_v56  ;;  %7118 = vmatpush3.bf16.msra.mxu1 %v8139_v49  ;;  %v3107_v0 = vpack.c.bf16 %v10913_v33, %v10913_v33  ;;  %v3112_v49 = vpack.c.bf16 %v11032_v15, %v11032_v15  ;;  %v8183_v33 = vld [vmem:[%s11743_s5 + $0x688] sm:$0xff]   ;;  %v8186_v15 = vld [vmem:[%s11743_s5 + $0x610] sm:$0xff]  }
 0x6db   :  { %v11127_v7 = vpop.f32.mrb[14].mxu0  ;;  %7119 = vmatprep.subr.bf16.mxu1 %v8141_v57  ;;  %v8187_v57 = vld [vmem:[%s11743_s5 + $0x690] sm:$0xff]  }
 0x6dc   :  { %3073 = vst [vmem:[#allocation14 + $0xe0] sm:$0xff] %v11127_v7  ;;  %v11133_v13 = vpop.f32.mrb[15].mxu0 }
 0x6dd   :  { %3074 = vst [vmem:[#allocation14 + $0xe8] sm:$0xff] %v11133_v13  ;;  %7096 = vmatpush3.bf16.msra.mxu0 %v8138_v48  ;;  %v3110_v48 = vpack.c.bf16 %v11020_v5, %v11020_v5  ;;  %v8184_v5 = vld [vmem:[%s11743_s5 + $0x650] sm:$0xff]  }
 0x6de   :  { %7097 = vmatprep.subr.bf16.mxu0 %v8140_v53  ;;  %7120 = vmatpush3.bf16.msra.mxu1 %v8143_v59  ;;  %v8185_v53 = vld [vmem:[%s11743_s5 + $0x6d0] sm:$0xff]   ;;  %v8189_v59 = vld [vmem:[%s11743_s5 + $0x6d8] sm:$0xff]  }
 0x6df   :  { %7149 = vmatprep.subr.bf16.mxu1 %v8145_v61  ;;  %v8191_v61 = vld [vmem:[%s11743_s5 + $0x698] sm:$0xff]  }
 0x6e1   :  { %7098 = vmatpush3.bf16.msra.mxu0 %v8142_v58  ;;  %6085 = vmatmul.mubr.bf16.vlgmr.msra.gmra.mrb[36].mxu1 %v3103_v2  ;;  %v8188_v58 = vld [vmem:[%s11743_s5 + $0x658] sm:$0xff]   ;;  %v8196_v2 = vld [vmem:[%s11743_s5 + $0x668] sm:$0xff]  }
 0x6e2   :  { %7127 = vmatprep.subr.bf16.mxu0 %v8144_v60  ;;  %7150 = vmatpush3.bf16.msra.mxu1 %v8147_v63  ;;  %v8190_v60 = vld [vmem:[%s11743_s5 + $0x618] sm:$0xff]   ;;  %v8193_v63 = vld [vmem:[%s11743_s5 + $0x6e0] sm:$0xff]  }
 0x6e3   :  { %6164 = vmatprep.mubr.bf16.mxu1 %v3108_v38  ;;  %7151 = vmatprep.subr.bf16.mxu1 %v8149_v8  ;;  %v8197_v8 = vld [vmem:[%s11743_s5 + $0x6e8] sm:$0xff]  }
 0x6e4   :  { %6045 = vmatmul.mubr.bf16.vlgmr.msra.gmra.mrb[36].mxu0 %v3101_v37  ;;  %v8194_v37 = vld [vmem:[%s11743_s5 + $0x620] sm:$0xff]   ;;  %v8199_v38 = vld [vmem:[%s11743_s5 + $0x6a8] sm:$0xff]  }
 0x6e5   :  { %7128 = vmatpush3.bf16.msra.mxu0 %v8146_v62  ;;  %6124 = vmatprep.mubr.bf16.mxu0 %v3106_v34  ;;  %v8192_v62 = vld [vmem:[%s11743_s5 + $0x660] sm:$0xff]   ;;  %v8198_v34 = vld [vmem:[%s11743_s5 + $0x628] sm:$0xff]  }
 0x6e6   :  { %7129 = vmatprep.subr.bf16.mxu0 %v8148_v1  ;;  %7152 = vmatpush3.bf16.msra.mxu1 %v8151_v54  ;;  %v8195_v1 = vld [vmem:[%s11743_s5 + $0x6a0] sm:$0xff]   ;;  %v8200_v54 = vld [vmem:[%s11743_s5 + $0x670] sm:$0xff]  }
 0x6e7   :  { %7153 = vmatprep.subr.bf16.mxu1 %v8153_v9 }
 0x6e9   :  { %7130 = vmatpush3.bf16.msra.mxu0 %v8150_v50 }
 0x6ea   :  { %7131 = vmatprep.subr.bf16.mxu0 %v8152_v29  ;;  %7154 = vmatpush3.bf16.msra.mxu1 %v8155_v14 }
 0x6eb   :  { %7155 = vmatprep.subr.bf16.mxu1 %v8157_v17  ;;  %v8203_v17 = vld [vmem:[%s11743_s5 + $0x6b0] sm:$0xff]  }
 0x6ed   :  { %7132 = vmatpush3.bf16.msra.mxu0 %v8154_v40  ;;  %v8201_v40 = vld [vmem:[%s11743_s5 + $0x6f0] sm:$0xff]  }
 0x6ee   :  { %7133 = vmatprep.subr.bf16.mxu0 %v8156_v16  ;;  %7156 = vmatpush3.bf16.msra.mxu1 %v8159_v19  ;;  %v8202_v16 = vld [vmem:[%s11743_s5 + $0x630] sm:$0xff]   ;;  %v8205_v19 = vld [vmem:[%s11743_s5 + $0x6f8] sm:$0xff]  }
 0x6ef   :  { %7157 = vmatprep.subr.bf16.mxu1 %v8161_v21  ;;  %v8207_v21 = vld [vmem:[%s11743_s5 + $0x6b8] sm:$0xff]  }
 0x6f1   :  { %7134 = vmatpush3.bf16.msra.mxu0 %v8158_v18  ;;  %v8204_v18 = vld [vmem:[%s11743_s5 + $0x678] sm:$0xff]  }
 0x6f2   :  { %7135 = vmatprep.subr.bf16.mxu0 %v8160_v20  ;;  %7158 = vmatpush3.bf16.msra.mxu1 %v8163_v24  ;;  %v8206_v20 = vld [vmem:[%s11743_s5 + $0x638] sm:$0xff]   ;;  %v8209_v24 = vld [vmem:[%s11743_s5 + $0x7c0] sm:$0xff]  }
 0x6f3   :  { %7159 = vmatprep.subr.bf16.mxu1 %v8165_v26  ;;  %v3109_v26 = vpack.c.bf16 %v11014_v3, %v11014_v3  ;;  %v8213_v3 = vld [vmem:[%s11743_s5 + $0x7c8] sm:$0xff]  }
 0x6f5   :  { %7136 = vmatpush3.bf16.msra.mxu0 %v8162_v22  ;;  %v8208_v22 = vld [vmem:[%s11743_s5 + $0x740] sm:$0xff]  }
 0x6f6   :  { %7137 = vmatprep.subr.bf16.mxu0 %v8164_v25  ;;  %v11252_v32 = vpop.f32.mrb[16].mxu1  ;;  %7160 = vmatpush3.bf16.msra.mxu1 %v8167_v4  ;;  %v8210_v25 = vld [vmem:[%s11743_s5 + $0x700] sm:$0xff]   ;;  %v3111_v4 = vpack.c.bf16 %v11026_v11, %v11026_v11  ;;  %v8214_v11 = vld [vmem:[%s11743_s5 + $0x708] sm:$0xff]  }
 0x6f7   :  { %3079 = vst [vmem:[#allocation14 + $0x110] sm:$0xff] %v11252_v32  ;;  %v11258_v42 = vpop.f32.mrb[17].mxu1  ;;  %7161 = vmatprep.subr.bf16.mxu1 %v8169_v52  ;;  %v3114_v52 = vpack.c.bf16 %v11133_v13, %v11133_v13  ;;  %v8215_v13 = vld [vmem:[%s11743_s5 + $0x788] sm:$0xff]  }
 0x6f8   :  { %3080 = vst [vmem:[#allocation14 + $0x118] sm:$0xff] %v11258_v42 }
 0x6f9   :  { %v11240_v10 = vpop.f32.mrb[16].mxu0  ;;  %7138 = vmatpush3.bf16.msra.mxu0 %v8166_v6  ;;  %v8211_v6 = vld [vmem:[%s11743_s5 + $0x780] sm:$0xff]  }
 0x6fa   :  { %3077 = vst [vmem:[#allocation14 + $0x100] sm:$0xff] %v11240_v10  ;;  %v11246_v28 = vpop.f32.mrb[17].mxu0  ;;  %7139 = vmatprep.subr.bf16.mxu0 %v8168_v27  ;;  %7162 = vmatpush3.bf16.msra.mxu1 %v8171_v35  ;;  %v8212_v27 = vld [vmem:[%s11743_s5 + $0x748] sm:$0xff]   ;;  %v8216_v35 = vld [vmem:[%s11743_s5 + $0x750] sm:$0xff]  }
 0x6fb   :  { %3078 = vst [vmem:[#allocation14 + $0x108] sm:$0xff] %v11246_v28  ;;  %7163 = vmatprep.subr.bf16.mxu1 %v8173_v43  ;;  %v8219_v43 = vld [vmem:[%s11743_s5 + $0x790] sm:$0xff]  }
 0x6fd   :  { %7140 = vmatpush3.bf16.msra.mxu0 %v8170_v55  ;;  %v3116_v55 = vpack.c.bf16 %v11145_v56, %v11145_v56  ;;  %v8217_v56 = vld [vmem:[%s11743_s5 + $0x7d0] sm:$0xff]  }
 0x6fe   :  { %7141 = vmatprep.subr.bf16.mxu0 %v8172_v41  ;;  %7164 = vmatpush3.bf16.msra.mxu1 %v8175_v44  ;;  %v8218_v41 = vld [vmem:[%s11743_s5 + $0x710] sm:$0xff]   ;;  %v8221_v44 = vld [vmem:[%s11743_s5 + $0x7d8] sm:$0xff]  }
 0x6ff   :  { %7193 = vmatprep.subr.bf16.mxu1 %v8177_v47  ;;  %v8223_v47 = vld [vmem:[%s11743_s5 + $0x798] sm:$0xff]  }
 0x701   :  { %7142 = vmatpush3.bf16.msra.mxu0 %v8174_v31  ;;  %6165 = vmatmul.mubr.bf16.vlgmr.msra.gmra.mrb[40].mxu1 %v3107_v0  ;;  %v8220_v31 = vld [vmem:[%s11743_s5 + $0x758] sm:$0xff]   ;;  %v8228_v0 = vld [vmem:[%s11743_s5 + $0x768] sm:$0xff]  }
 0x702   :  { %7171 = vmatprep.subr.bf16.mxu0 %v8176_v46  ;;  %7194 = vmatpush3.bf16.msra.mxu1 %v8179_v23  ;;  %v8222_v46 = vld [vmem:[%s11743_s5 + $0x718] sm:$0xff]   ;;  %v8225_v23 = vld [vmem:[%s11743_s5 + $0x7e0] sm:$0xff]  }
 0x703   :  { %6244 = vmatprep.mubr.bf16.mxu1 %v3112_v49  ;;  %7195 = vmatprep.subr.bf16.mxu1 %v8181_v36  ;;  %v8229_v36 = vld [vmem:[%s11743_s5 + $0x7e8] sm:$0xff]   ;;  %v8232_v49 = vld [vmem:[%s11743_s5 + $0x770] sm:$0xff]  }
 0x704   :  { %6125 = vmatmul.mubr.bf16.vlgmr.msra.gmra.mrb[40].mxu0 %v3105_v45  ;;  %v8226_v45 = vld [vmem:[%s11743_s5 + $0x720] sm:$0xff]  }
 0x705   :  { %7172 = vmatpush3.bf16.msra.mxu0 %v8178_v39  ;;  %6204 = vmatprep.mubr.bf16.mxu0 %v3110_v48  ;;  %v8224_v39 = vld [vmem:[%s11743_s5 + $0x760] sm:$0xff]   ;;  %v8230_v48 = vld [vmem:[%s11743_s5 + $0x728] sm:$0xff]  }
 0x706   :  { %7173 = vmatprep.subr.bf16.mxu0 %v8180_v30  ;;  %7196 = vmatpush3.bf16.msra.mxu1 %v8183_v33  ;;  %v8227_v30 = vld [vmem:[%s11743_s5 + $0x7a0] sm:$0xff]  }
 0x707   :  { %7197 = vmatprep.subr.bf16.mxu1 %v8185_v53 }
 0x709   :  { %7174 = vmatpush3.bf16.msra.mxu0 %v8182_v12  ;;  %v8231_v12 = vld [vmem:[%s11743_s5 + $0x7a8] sm:$0xff]  }
 0x70a   :  { %7175 = vmatprep.subr.bf16.mxu0 %v8184_v5  ;;  %7198 = vmatpush3.bf16.msra.mxu1 %v8187_v57  ;;  %v8233_v5 = vld [vmem:[%s11743_s5 + $0x7f0] sm:$0xff]  }
 0x70b   :  { %7199 = vmatprep.subr.bf16.mxu1 %v8189_v59 }
 0x70d   :  { %7176 = vmatpush3.bf16.msra.mxu0 %v8186_v15  ;;  %v6574_v15 = vld [vmem:[%s11744_s6] ss:$0 sm:$0xff] }
 0x70e   :  { %7177 = vmatprep.subr.bf16.mxu0 %v8188_v58  ;;  %7200 = vmatpush3.bf16.msra.mxu1 %v8191_v61  ;;  %v8234_v61 = vld [vmem:[%s11743_s5 + $0x730] sm:$0xff]  }
 0x70f   :  { %7201 = vmatprep.subr.bf16.mxu1 %v8193_v63 }
 0x711   :  { %7178 = vmatpush3.bf16.msra.mxu0 %v8190_v60 }
 0x712   :  { %7179 = vmatprep.subr.bf16.mxu0 %v8192_v62  ;;  %7202 = vmatpush3.bf16.msra.mxu1 %v8195_v1  ;;  %v8235_v1 = vld [vmem:[%s11743_s5 + $0x7b0] sm:$0xff]  }
 0x713   :  { %7203 = vmatprep.subr.bf16.mxu1 %v8197_v8 }
 0x714   :  { %v11361_v9 = vpop.f32.mrb[18].mxu1 }
 0x715   :  { %7180 = vmatpush3.bf16.msra.mxu0 %v8194_v37  ;;  %3083 = vst [vmem:[#allocation14 + $0x130] sm:$0xff] %v11361_v9  ;;  %v11368_v14 = vpop.f32.mrb[19].mxu1 }
 0x716   :  { %7181 = vmatprep.subr.bf16.mxu0 %v8196_v2  ;;  %3084 = vst [vmem:[#allocation14 + $0x138] sm:$0xff] %v11368_v14  ;;  %7204 = vmatpush3.bf16.msra.mxu1 %v8199_v38  ;;  %v8236_v2 = vld [vmem:[%s11743_s5 + $0x778] sm:$0xff]  }
 0x717   :  { %v11350_v50 = vpop.f32.mrb[18].mxu0  ;;  %7205 = vmatprep.subr.bf16.mxu1 %v8201_v40  ;;  %v8237_v38 = vld [vmem:[%s11743_s5 + $0x7f8] sm:$0xff]  }
 0x718   :  { %3081 = vst [vmem:[#allocation14 + $0x120] sm:$0xff] %v11350_v50  ;;  %v11359_v29 = vpop.f32.mrb[19].mxu0  ;;  %v8238_v40 = vld [vmem:[%s11743_s5 + $0x738] sm:$0xff]  }
 0x719   :  { %3082 = vst [vmem:[#allocation14 + $0x128] sm:$0xff] %v11359_v29  ;;  %7182 = vmatpush3.bf16.msra.mxu0 %v8198_v34 }
 0x71a   :  { %7183 = vmatprep.subr.bf16.mxu0 %v8200_v54  ;;  %7206 = vmatpush3.bf16.msra.mxu1 %v8203_v17  ;;  %v8240_v17 = vld [vmem:[%s11743_s5 + $0x840] sm:$0xff]  }
 0x71b   :  { %7207 = vmatprep.subr.bf16.mxu1 %v8205_v19  ;;  %v8242_v19 = vld [vmem:[%s11743_s5 + $0x800] sm:$0xff]  }
 0x71d   :  { %7184 = vmatpush3.bf16.msra.mxu0 %v8202_v16  ;;  %v8239_v16 = vld [vmem:[%s11743_s5 + $0x7b8] sm:$0xff]  }
 0x71e   :  { %7185 = vmatprep.subr.bf16.mxu0 %v8204_v18  ;;  %7208 = vmatpush3.bf16.msra.mxu1 %v8207_v21  ;;  %v8241_v18 = vld [vmem:[%s11743_s5 + $0x8c0] sm:$0xff]  }
 0x71f   :  { %7237 = vmatprep.subr.bf16.mxu1 %v8209_v24  ;;  %v8243_v21 = vld [vmem:[%s11743_s5 + $0x880] sm:$0xff]   ;;  %v8244_v24 = vld [vmem:[%s11743_s5 + $0x848] sm:$0xff]  }
 0x721   :  { %7186 = vmatpush3.bf16.msra.mxu0 %v8206_v20  ;;  %6245 = vmatmul.mubr.bf16.vlgmr.msra.gmra.mrb[44].mxu1 %v3111_v4  ;;  %v3113_v20 = vpack.c.bf16 %v11127_v7, %v11127_v7  ;;  %v8245_v7 = vld [vmem:[%s11743_s5 + $0x8c8] sm:$0xff]   ;;  %v8250_v4 = vld [vmem:[%s11743_s5 + $0x810] sm:$0xff]  }
 0x722   :  { %7215 = vmatprep.subr.bf16.mxu0 %v8208_v22  ;;  %7238 = vmatpush3.bf16.msra.mxu1 %v8211_v6  ;;  %v3115_v22 = vpack.c.bf16 %v11139_v51, %v11139_v51  ;;  %v8246_v51 = vld [vmem:[%s11743_s5 + $0x808] sm:$0xff]   ;;  %v8248_v6 = vld [vmem:[%s11743_s5 + $0x850] sm:$0xff]  }
 0x723   :  { %6324 = vmatprep.mubr.bf16.mxu1 %v3116_v55  ;;  %7239 = vmatprep.subr.bf16.mxu1 %v8213_v3  ;;  %v8253_v3 = vld [vmem:[%s11743_s5 + $0x8d8] sm:$0xff]  }
 0x724   :  { %6205 = vmatmul.mubr.bf16.vlgmr.msra.gmra.mrb[44].mxu0 %v3109_v26  ;;  %v3120_v26 = vpack.c.bf16 %v11258_v42, %v11258_v42  ;;  %v8249_v42 = vld [vmem:[%s11743_s5 + $0x8d0] sm:$0xff]   ;;  %v8254_v55 = vld [vmem:[%s11743_s5 + $0x818] sm:$0xff]  }
 0x725   :  { %7216 = vmatpush3.bf16.msra.mxu0 %v8210_v25  ;;  %6284 = vmatprep.mubr.bf16.mxu0 %v3114_v52  ;;  %v3118_v25 = vpack.c.bf16 %v11246_v28, %v11246_v28  ;;  %v8247_v28 = vld [vmem:[%s11743_s5 + $0x888] sm:$0xff]   ;;  %v8252_v52 = vld [vmem:[%s11743_s5 + $0x858] sm:$0xff]  }
 0x726   :  { %7217 = vmatprep.subr.bf16.mxu0 %v8212_v27  ;;  %7240 = vmatpush3.bf16.msra.mxu1 %v8215_v13  ;;  %v8251_v27 = vld [vmem:[%s11743_s5 + $0x890] sm:$0xff]   ;;  %v8256_v13 = vld [vmem:[%s11743_s5 + $0x860] sm:$0xff]  }
 0x727   :  { %7241 = vmatprep.subr.bf16.mxu1 %v8217_v56  ;;  %v8258_v56 = vld [vmem:[%s11743_s5 + $0x820] sm:$0xff]  }
 0x729   :  { %7218 = vmatpush3.bf16.msra.mxu0 %v8214_v11  ;;  %v8255_v11 = vld [vmem:[%s11743_s5 + $0x898] sm:$0xff]  }
 0x72a   :  { %7219 = vmatprep.subr.bf16.mxu0 %v8216_v35  ;;  %7242 = vmatpush3.bf16.msra.mxu1 %v8219_v43  ;;  %v8257_v35 = vld [vmem:[%s11743_s5 + $0x8e0] sm:$0xff]   ;;  %v8260_v43 = vld [vmem:[%s11743_s5 + $0x868] sm:$0xff]  }
 0x72b   :  { %7243 = vmatprep.subr.bf16.mxu1 %v8221_v44  ;;  %v8262_v44 = vld [vmem:[%s11743_s5 + $0x828] sm:$0xff]  }
 0x72d   :  { %7220 = vmatpush3.bf16.msra.mxu0 %v8218_v41  ;;  %v8259_v41 = vld [vmem:[%s11743_s5 + $0x8a0] sm:$0xff]  }
 0x72e   :  { %7221 = vmatprep.subr.bf16.mxu0 %v8220_v31  ;;  %7244 = vmatpush3.bf16.msra.mxu1 %v8223_v47  ;;  %v8261_v31 = vld [vmem:[%s11743_s5 + $0x8e8] sm:$0xff]   ;;  %v8264_v47 = vld [vmem:[%s11743_s5 + $0x870] sm:$0xff]  }
 0x72f   :  { %7245 = vmatprep.subr.bf16.mxu1 %v8225_v23  ;;  %v8265_v23 = vld [vmem:[%s11743_s5 + $0x8f0] sm:$0xff]  }
 0x731   :  { %7222 = vmatpush3.bf16.msra.mxu0 %v8222_v46  ;;  %v8263_v46 = vld [vmem:[%s11743_s5 + $0x8a8] sm:$0xff]  }
 0x732   :  { %7223 = vmatprep.subr.bf16.mxu0 %v8224_v39  ;;  %7246 = vmatpush3.bf16.msra.mxu1 %v8227_v30 }
 0x733   :  { %7247 = vmatprep.subr.bf16.mxu1 %v8229_v36 }
 0x734   :  { %v6945_v53 = vpop.f32.mrb[20].mxu1 }
 0x735   :  { %7224 = vmatpush3.bf16.msra.mxu0 %v8226_v45  ;;  %v6946_v59 = vpop.f32.mrb[21].mxu1 }
 0x736   :  { %7225 = vmatprep.subr.bf16.mxu0 %v8228_v0  ;;  %v6947_v62 = vadd.f32 %v6946_v59, %v6945_v53  ;;  %v6948_v63 = vpop.f32.mrb[22].mxu1  ;;  %7248 = vmatpush3.bf16.msra.mxu1 %v8231_v12  ;;  %v8266_v12 = vld [vmem:[%s11743_s5 + $0x830] sm:$0xff]   ;;  %v8269_v59 = vld [vmem:[%s11743_s5 + $0x8f8] sm:$0xff]  }
 0x737   :  { %v6923_v33 = vpop.f32.mrb[20].mxu0  ;;  %v6949_v34 = vpop.f32.mrb[23].mxu1  ;;  %7249 = vmatprep.subr.bf16.mxu1 %v8233_v5  ;;  %v8267_v53 = vld [vmem:[%s11743_s5 + $0x8b0] sm:$0xff]   ;;  %v8272_v63 = vld [vmem:[%s11743_s5 + $0x940] sm:$0xff]  }
 0x738   :  { %v6924_v57 = vpop.f32.mrb[21].mxu0  ;;  %v3119_v34 = vpack.c.bf16 %v11252_v32, %v11252_v32  ;;  %v8278_v32 = vld [vmem:[%s11743_s5 + $0x908] sm:$0xff]  }
 0x739   :  { %v6925_v58 = vadd.f32 %v6924_v57, %v6923_v33  ;;  %v6926_v60 = vpop.f32.mrb[22].mxu0  ;;  %7226 = vmatpush3.bf16.msra.mxu0 %v8230_v48 }
 0x73a   :  { %v6927_v37 = vpop.f32.mrb[23].mxu0  ;;  %7227 = vmatprep.subr.bf16.mxu0 %v8232_v49  ;;  %7250 = vmatpush3.bf16.msra.mxu1 %v8235_v1  ;;  %v8274_v1 = vld [vmem:[%s11743_s5 + $0x900] sm:$0xff]  }
 0x73b   :  { %v5727_v8 = vadd.f32 %v6925_v58, %v6574_v15  ;;  %7251 = vmatprep.subr.bf16.mxu1 %v8237_v38  ;;  %v8268_v15 = vld [vmem:[%s11743_s5 + $0x878] sm:$0xff]   ;;  %v8273_v37 = vld [vmem:[%s11743_s5 + $0x9c0] sm:$0xff]   ;;  %v8276_v38 = vld [vmem:[%s11743_s5 + $0x948] sm:$0xff]  }
 0x73d   :  { %v11490_v54 = vadd.f32 %v6947_v62, %v5727_v8  ;;  %7228 = vmatpush3.bf16.msra.mxu0 %v8234_v61  ;;  %v8270_v61 = vld [vmem:[%s11743_s5 + $0x838] sm:$0xff]   ;;  %v8275_v8 = vld [vmem:[%s11743_s5 + $0x980] sm:$0xff]  }
 0x73e   :  { %7229 = vmatprep.subr.bf16.mxu0 %v8236_v2  ;;  %7252 = vmatpush3.bf16.msra.mxu1 %v8239_v16  ;;  %v8271_v62 = vld [vmem:[%s11743_s5 + $0x8b8] sm:$0xff]   ;;  %v3117_v2 = vpack.c.bf16 %v11240_v10, %v11240_v10  ;;  %v8277_v10 = vld [vmem:[%s11743_s5 + $0x9c8] sm:$0xff]   ;;  %v8280_v16 = vld [vmem:[%s11743_s5 + $0x950] sm:$0xff]  }
 0x73f   :  { %7281 = vmatprep.subr.bf16.mxu1 %v8241_v18  ;;  %v8283_v18 = vld [vmem:[%s11743_s5 + $0x990] sm:$0xff]  }
 0x741   :  { %7230 = vmatpush3.bf16.msra.mxu0 %v8238_v40  ;;  %6325 = vmatmul.mubr.bf16.vlgmr.msra.gmra.mrb[48].mxu1 %v3115_v22  ;;  %v3124_v40 = vpack.c.bf16 %v11368_v14, %v11368_v14  ;;  %v8281_v14 = vld [vmem:[%s11743_s5 + $0x9d0] sm:$0xff]   ;;  %v8287_v22 = vld [vmem:[%s11743_s5 + $0x998] sm:$0xff]  }
 0x742   :  { %7259 = vmatprep.subr.bf16.mxu0 %v8240_v17  ;;  %7282 = vmatpush3.bf16.msra.mxu1 %v8243_v21  ;;  %v8282_v17 = vld [vmem:[%s11743_s5 + $0x910] sm:$0xff]   ;;  %v8286_v21 = vld [vmem:[%s11743_s5 + $0x918] sm:$0xff]  }
 0x743   :  { %6404 = vmatprep.mubr.bf16.mxu1 %v3120_v26  ;;  %7283 = vmatprep.subr.bf16.mxu1 %v8245_v7  ;;  %v8290_v7 = vld [vmem:[%s11743_s5 + $0x920] sm:$0xff]  }
 0x744   :  { %6285 = vmatmul.mubr.bf16.vlgmr.msra.gmra.mrb[48].mxu0 %v3113_v20  ;;  %v8285_v20 = vld [vmem:[%s11743_s5 + $0x9d8] sm:$0xff]   ;;  %v8291_v26 = vld [vmem:[%s11743_s5 + $0x9a0] sm:$0xff]  }
 0x745   :  { %7260 = vmatpush3.bf16.msra.mxu0 %v8242_v19  ;;  %6364 = vmatprep.mubr.bf16.mxu0 %v3118_v25  ;;  %v8284_v19 = vld [vmem:[%s11743_s5 + $0x958] sm:$0xff]   ;;  %v8289_v25 = vld [vmem:[%s11743_s5 + $0x9e0] sm:$0xff]  }
 0x746   :  { %7261 = vmatprep.subr.bf16.mxu0 %v8244_v24  ;;  %7284 = vmatpush3.bf16.msra.mxu1 %v8247_v28  ;;  %v8288_v24 = vld [vmem:[%s11743_s5 + $0x960] sm:$0xff]   ;;  %v8293_v28 = vld [vmem:[%s11743_s5 + $0x9e8] sm:$0xff]  }
 0x747   :  { %7285 = vmatprep.subr.bf16.mxu1 %v8249_v42  ;;  %v8295_v42 = vld [vmem:[%s11743_s5 + $0x9a8] sm:$0xff]  }
 0x749   :  { %7262 = vmatpush3.bf16.msra.mxu0 %v8246_v51  ;;  %v8292_v51 = vld [vmem:[%s11743_s5 + $0x968] sm:$0xff]  }
 0x74a   :  { %7263 = vmatprep.subr.bf16.mxu0 %v8248_v6  ;;  %7286 = vmatpush3.bf16.msra.mxu1 %v8251_v27  ;;  %v8294_v6 = vld [vmem:[%s11743_s5 + $0x928] sm:$0xff]  }
 0x74b   :  { %7287 = vmatprep.subr.bf16.mxu1 %v8253_v3 }
 0x74d   :  { %7264 = vmatpush3.bf16.msra.mxu0 %v8250_v4  ;;  %v8296_v4 = vld [vmem:[%s11743_s5 + $0x970] sm:$0xff]  }
 0x74e   :  { %7265 = vmatprep.subr.bf16.mxu0 %v8252_v52  ;;  %7288 = vmatpush3.bf16.msra.mxu1 %v8255_v11  ;;  %v8297_v52 = vld [vmem:[%s11743_s5 + $0x9f0] sm:$0xff]  }
 0x74f   :  { %7289 = vmatprep.subr.bf16.mxu1 %v8257_v35 }
 0x751   :  { %7266 = vmatpush3.bf16.msra.mxu0 %v8254_v55 }
 0x752   :  { %7267 = vmatprep.subr.bf16.mxu0 %v8256_v13  ;;  %7290 = vmatpush3.bf16.msra.mxu1 %v8259_v41 }
 0x753   :  { %7291 = vmatprep.subr.bf16.mxu1 %v8261_v31 }
 0x754   :  { %v6989_v45 = vpop.f32.mrb[24].mxu1 }
 0x755   :  { %7268 = vmatpush3.bf16.msra.mxu0 %v8258_v56  ;;  %v6990_v36 = vpop.f32.mrb[25].mxu1  ;;  %v8298_v56 = vld [vmem:[%s11743_s5 + $0x930] sm:$0xff]  }
 0x756   :  { %7269 = vmatprep.subr.bf16.mxu0 %v8260_v43  ;;  %v6991_v49 = vadd.f32 %v6990_v36, %v6989_v45  ;;  %v6992_v33 = vpop.f32.mrb[26].mxu1  ;;  %7292 = vmatpush3.bf16.msra.mxu1 %v8263_v46  ;;  %v8300_v46 = vld [vmem:[%s11743_s5 + $0x978] sm:$0xff]   ;;  %v3121_v36 = vpack.c.bf16 %v11350_v50, %v11350_v50 }
 0x757   :  { %v6967_v39 = vpop.f32.mrb[24].mxu0  ;;  %v6993_v58 = vpop.f32.mrb[27].mxu1  ;;  %7293 = vmatprep.subr.bf16.mxu1 %v8265_v23  ;;  %v8301_v23 = vld [vmem:[%s11743_s5 + $0x9f8] sm:$0xff]  }
 0x758   :  { %v6968_v30 = vpop.f32.mrb[25].mxu0 }
 0x759   :  { %v6969_v0 = vadd.f32 %v6968_v30, %v6967_v39  ;;  %v6970_v48 = vpop.f32.mrb[26].mxu0  ;;  %7270 = vmatpush3.bf16.msra.mxu0 %v8262_v44  ;;  %v8299_v44 = vld [vmem:[%s11743_s5 + $0x9b0] sm:$0xff]   ;;  %v8302_v30 = vld [vmem:[%s11743_s5 + $0x938] sm:$0xff]  }
 0x75a   :  { %v6971_v5 = vpop.f32.mrb[27].mxu0  ;;  %7271 = vmatprep.subr.bf16.mxu0 %v8264_v47  ;;  %7294 = vmatpush3.bf16.msra.mxu1 %v8267_v53  ;;  %v3123_v48 = vpack.c.bf16 %v11361_v9, %v11361_v9 }
 0x75b   :  { %v5807_v57 = vadd.f32 %v6969_v0, %v11490_v54  ;;  %7295 = vmatprep.subr.bf16.mxu1 %v8269_v59  ;;  %v3122_v54 = vpack.c.bf16 %v11359_v29, %v11359_v29  ;;  %v8279_v29 = vld [vmem:[%s11743_s5 + $0x988] sm:$0xff]   ;;  %v8303_v0 = vld [vmem:[%s11743_s5 + $0x9b8] sm:$0xff]   ;;  %s8384_s5 = smov [#allocation14]  }
 0x75c   :  { %s6510_s19 = sshll.u32 %s8384_s5, 4  ;;  %s6511_s19 = int_to_ptr.vmem [resolvable:$true] %s6510_s19 }
 0x75d   :  { %v11597_v60 = vadd.f32 %v6991_v49, %v5807_v57  ;;  %7272 = vmatpush3.bf16.msra.mxu0 %v8266_v12  ;;  %s8308_s20 = scalar_lea.vmem %s6511_s19, 5120  ;;  %p8313_p2 = scmp.lt.s32.totalorder %s6511_s19, %s6511_s19 }
 0x75e   :  { %7273 = vmatprep.subr.bf16.mxu0 %v8268_v15  ;;  %7296 = vmatpush3.bf16.msra.mxu1 %v8271_v62  ;;  %p8309_p1 = scmp.ne.s32.totalorder %s6511_s19, %s8308_s20  ;;  %p8314_p3 = scmp.lt.s32.totalorder %s8308_s20, %s8308_s20 }
 0x75f   :  { %7325 = vmatprep.subr.bf16.mxu1 %v8273_v37 }
 0x760   :  { %p8315_p4 = por %p8314_p3, %p8313_p2 }
 0x761   :  { %7274 = vmatpush3.bf16.msra.mxu0 %v8270_v61  ;;  %6405 = vmatmul.mubr.bf16.vlgmr.msra.gmra.mrb[52].mxu1 %v3119_v34 }
 0x762   :  { %7303 = vmatprep.subr.bf16.mxu0 %v8272_v63  ;;  %7326 = vmatpush3.bf16.msra.mxu1 %v8275_v8  ;;  %p8316_p5 = pnand %p8315_p4, %p8309_p1 }
 0x763   :  { %6484 = vmatprep.mubr.bf16.mxu1 %v3124_v40  ;;  %7327 = vmatprep.subr.bf16.mxu1 %v8277_v10 }
 0x764   :  { %6365 = vmatmul.mubr.bf16.vlgmr.msra.gmra.mrb[52].mxu0 %v3117_v2 }
 0x765   :  { %7304 = vmatpush3.bf16.msra.mxu0 %v8274_v1  ;;  %6444 = vmatprep.mubr.bf16.mxu0 %v3122_v54 }
 0x766   :  { %7305 = vmatprep.subr.bf16.mxu0 %v8276_v38  ;;  %7328 = vmatpush3.bf16.msra.mxu1 %v8279_v29 }
 0x767   :  { %7329 = vmatprep.subr.bf16.mxu1 %v8281_v14 }
 0x769   :  { %7306 = vmatpush3.bf16.msra.mxu0 %v8278_v32 }
 0x76a   :  { %7307 = vmatprep.subr.bf16.mxu0 %v8280_v16  ;;  %7330 = vmatpush3.bf16.msra.mxu1 %v8283_v18 }
 0x76b   :  { %7331 = vmatprep.subr.bf16.mxu1 %v8285_v20 }
 0x76d   :  { %7308 = vmatpush3.bf16.msra.mxu0 %v8282_v17 }
 0x76e   :  { %7309 = vmatprep.subr.bf16.mxu0 %v8284_v19  ;;  %7332 = vmatpush3.bf16.msra.mxu1 %v8287_v22 }
 0x76f   :  { %7333 = vmatprep.subr.bf16.mxu1 %v8289_v25 }
 0x771   :  { %7310 = vmatpush3.bf16.msra.mxu0 %v8286_v21 }
 0x772   :  { %7311 = vmatprep.subr.bf16.mxu0 %v8288_v24  ;;  %7334 = vmatpush3.bf16.msra.mxu1 %v8291_v26 }
 0x773   :  { %7335 = vmatprep.subr.bf16.mxu1 %v8293_v28 }
 0x774   :  { %v7033_v3 = vpop.f32.mrb[28].mxu1 }
 0x775   :  { %7312 = vmatpush3.bf16.msra.mxu0 %v8290_v7  ;;  %v7034_v13 = vpop.f32.mrb[29].mxu1 }
 0x776   :  { %7313 = vmatprep.subr.bf16.mxu0 %v8292_v51  ;;  %v7035_v41 = vadd.f32 %v7034_v13, %v7033_v3  ;;  %v7036_v43 = vpop.f32.mrb[30].mxu1  ;;  %7336 = vmatpush3.bf16.msra.mxu1 %v8295_v42 }
 0x777   :  { %v7011_v27 = vpop.f32.mrb[28].mxu0  ;;  %v7037_v39 = vpop.f32.mrb[31].mxu1  ;;  %7337 = vmatprep.subr.bf16.mxu1 %v8297_v52 }
 0x778   :  { %v7012_v55 = vpop.f32.mrb[29].mxu0 }
 0x779   :  { %v7013_v11 = vadd.f32 %v7012_v55, %v7011_v27  ;;  %v7014_v35 = vpop.f32.mrb[30].mxu0  ;;  %7314 = vmatpush3.bf16.msra.mxu0 %v8294_v6 }
 0x77a   :  { %v7015_v31 = vpop.f32.mrb[31].mxu0  ;;  %7315 = vmatprep.subr.bf16.mxu0 %v8296_v4  ;;  %7338 = vmatpush3.bf16.msra.mxu1 %v8299_v44 }
 0x77b   :  { %v5887_v47 = vadd.f32 %v7013_v11, %v11597_v60  ;;  %7339 = vmatprep.subr.bf16.mxu1 %v8301_v23 }
 0x77d   :  { %v5927_v45 = vadd.f32 %v7035_v41, %v5887_v47  ;;  %7316 = vmatpush3.bf16.msra.mxu0 %v8298_v56 }
 0x77e   :  { %7317 = vmatprep.subr.bf16.mxu0 %v8300_v46  ;;  %7340 = vmatpush3.bf16.msra.mxu1 %v8303_v0 }
 0x781   :  { %7318 = vmatpush3.bf16.msra.mxu0 %v8302_v30  ;;  %6485 = vmatmul.mubr.bf16.vlgmr.msra.gmra.mrb[56].mxu1 %v3123_v48 }
 0x784   :  { %6445 = vmatmul.mubr.bf16.vlgmr.msra.gmra.mrb[56].mxu0 %v3121_v36 }
 0x794   :  { %v7077_v49 = vpop.f32.mrb[32].mxu1 }
 0x795   :  { %v7078_v53 = vpop.f32.mrb[33].mxu1 }
 0x796   :  { %v7079_v57 = vadd.f32 %v7078_v53, %v7077_v49  ;;  %v7080_v58 = vpop.f32.mrb[34].mxu1 }
 0x797   :  { %v7055_v12 = vpop.f32.mrb[32].mxu0  ;;  %v7081_v61 = vpop.f32.mrb[35].mxu1 }
 0x798   :  { %v7056_v33 = vpop.f32.mrb[33].mxu0 }
 0x799   :  { %v7057_v5 = vadd.f32 %v7056_v33, %v7055_v12  ;;  %v7058_v15 = vpop.f32.mrb[34].mxu0 }
 0x79a   :  { %v7059_v59 = vpop.f32.mrb[35].mxu0 }
 0x79b   :  { %v5967_v60 = vadd.f32 %v7057_v5, %v5927_v45 }
 0x79d   :  { %v6007_v62 = vadd.f32 %v7079_v57, %v5967_v60 }
 0x7b4   :  { %v7121_v50 = vpop.f32.mrb[36].mxu1 }
 0x7b5   :  { %v7122_v2 = vpop.f32.mrb[37].mxu1 }
 0x7b6   :  { %v7123_v8 = vadd.f32 %v7122_v2, %v7121_v50  ;;  %v7124_v34 = vpop.f32.mrb[38].mxu1 }
 0x7b7   :  { %v7099_v63 = vpop.f32.mrb[36].mxu0  ;;  %v7125_v10 = vpop.f32.mrb[39].mxu1 }
 0x7b8   :  { %v7100_v37 = vpop.f32.mrb[37].mxu0 }
 0x7b9   :  { %v7101_v1 = vadd.f32 %v7100_v37, %v7099_v63  ;;  %v7102_v9 = vpop.f32.mrb[38].mxu0 }
 0x7ba   :  { %v7103_v38 = vpop.f32.mrb[39].mxu0 }
 0x7bb   :  { %v6047_v54 = vadd.f32 %v7101_v1, %v6007_v62 }
 0x7bd   :  { %v6087_v40 = vadd.f32 %v7123_v8, %v6047_v54 }
 0x7d4   :  { %v7165_v29 = vpop.f32.mrb[40].mxu1 }
 0x7d5   :  { %v7166_v17 = vpop.f32.mrb[41].mxu1 }
 0x7d6   :  { %v7167_v19 = vadd.f32 %v7166_v17, %v7165_v29  ;;  %v7168_v20 = vpop.f32.mrb[42].mxu1 }
 0x7d7   :  { %v7143_v32 = vpop.f32.mrb[40].mxu0  ;;  %v7169_v24 = vpop.f32.mrb[43].mxu1 }
 0x7d8   :  { %v7144_v16 = vpop.f32.mrb[41].mxu0 }
 0x7d9   :  { %v7145_v14 = vadd.f32 %v7144_v16, %v7143_v32  ;;  %v7146_v18 = vpop.f32.mrb[42].mxu0 }
 0x7da   :  { %v7147_v21 = vpop.f32.mrb[43].mxu0 }
 0x7db   :  { %v6127_v22 = vadd.f32 %v7145_v14, %v6087_v40 }
 0x7dd   :  { %v6167_v25 = vadd.f32 %v7167_v19, %v6127_v22 }
 0x7de   :  { %8319 = shalt.err (!%p8316_p5)
}
 0x7df   :  { %s8320_s25 = scalar_lea.hbm %s11746_s8, 5120 }
 0x7e0   :  { %p8321_p6 = scmp.ne.s32.totalorder %s11746_s8, %s8320_s25  ;;  %p8324_p7 = scmp.lt.u32.totalorder %s8320_s25, %s11746_s8 }
 0x7e2   :  { %p8326_p8 = pnand %p8324_p7, %p8321_p6 }
 0x7e4   :  { %8329 = shalt.err (!%p8326_p8)
}
 0x7e5   :  { %6513 = dma.vmem_to_hbm [thread:$0]  %s6511_s19, 5120, %s11746_s8, [#allocation15]   ;;  %vm6492_vm4 = vcmask 39936  }
 0x7e6   :  { %s8385_s8 = smov [#allocation12]  }
 0x7e7   :  { %s6500_s17 = sshll.u32 %s8385_s8, 4  ;;  %s6501_s17 = int_to_ptr.vmem [resolvable:$true] %s6500_s17 }
 0x7e8   :  { %s8330_s28 = scalar_lea.vmem %s6501_s17, 128  ;;  %p8335_p10 = scmp.lt.s32.totalorder %s6501_s17, %s6501_s17 }
 0x7e9   :  { %p8331_p9 = scmp.ne.s32.totalorder %s6501_s17, %s8330_s28  ;;  %p8336_p11 = scmp.lt.s32.totalorder %s8330_s28, %s8330_s28 }
 0x7eb   :  { %p8337_p12 = por %p8336_p11, %p8335_p10 }
 0x7ed   :  { %p8338_p13 = pnand %p8337_p12, %p8331_p9 }
 0x7f4   :  { %v7209_v26 = vpop.f32.mrb[44].mxu1 }
 0x7f5   :  { %v7210_v6 = vpop.f32.mrb[45].mxu1 }
 0x7f6   :  { %v7211_v4 = vadd.f32 %v7210_v6, %v7209_v26  ;;  %v7212_v27 = vpop.f32.mrb[46].mxu1 }
 0x7f7   :  { %v7187_v7 = vpop.f32.mrb[44].mxu0  ;;  %v7213_v55 = vpop.f32.mrb[47].mxu1 }
 0x7f8   :  { %v7188_v51 = vpop.f32.mrb[45].mxu0 }
 0x7f9   :  { %v7189_v28 = vadd.f32 %v7188_v51, %v7187_v7  ;;  %v7190_v42 = vpop.f32.mrb[46].mxu0 }
 0x7fa   :  { %v7191_v52 = vpop.f32.mrb[47].mxu0 }
 0x7fb   :  { %v6207_v3 = vadd.f32 %v7189_v28, %v6167_v25 }
 0x7fd   :  { %v6247_v11 = vadd.f32 %v7211_v4, %v6207_v3 }
 0x814   :  { %v7253_v35 = vpop.f32.mrb[48].mxu1 }
 0x815   :  { %v7254_v43 = vpop.f32.mrb[49].mxu1 }
 0x816   :  { %v7255_v44 = vadd.f32 %v7254_v43, %v7253_v35  ;;  %v7256_v46 = vpop.f32.mrb[50].mxu1 }
 0x817   :  { %v7231_v13 = vpop.f32.mrb[48].mxu0  ;;  %v7257_v23 = vpop.f32.mrb[51].mxu1 }
 0x818   :  { %v7232_v56 = vpop.f32.mrb[49].mxu0 }
 0x819   :  { %v7233_v41 = vadd.f32 %v7232_v56, %v7231_v13  ;;  %v7234_v31 = vpop.f32.mrb[50].mxu0 }
 0x81a   :  { %v7235_v47 = vpop.f32.mrb[51].mxu0 }
 0x81b   :  { %v6287_v39 = vadd.f32 %v7233_v41, %v6247_v11 }
 0x81d   :  { %v6327_v45 = vadd.f32 %v7255_v44, %v6287_v39 }
 0x834   :  { %v7297_v0 = vpop.f32.mrb[52].mxu1 }
 0x835   :  { %v7298_v12 = vpop.f32.mrb[53].mxu1 }
 0x836   :  { %v7299_v33 = vadd.f32 %v7298_v12, %v7297_v0  ;;  %v7300_v5 = vpop.f32.mrb[54].mxu1 }
 0x837   :  { %v7275_v30 = vpop.f32.mrb[52].mxu0  ;;  %v7301_v57 = vpop.f32.mrb[55].mxu1 }
 0x838   :  { %v7276_v36 = vpop.f32.mrb[53].mxu0 }
 0x839   :  { %v7277_v48 = vadd.f32 %v7276_v36, %v7275_v30  ;;  %v7278_v49 = vpop.f32.mrb[54].mxu0 }
 0x83a   :  { %v7279_v53 = vpop.f32.mrb[55].mxu0 }
 0x83b   :  { %v6367_v15 = vadd.f32 %v7277_v48, %v6327_v45 }
 0x83d   :  { %v6407_v58 = vadd.f32 %v7299_v33, %v6367_v15 }
 0x854   :  { %v7341_v60 = vpop.f32.mrb[56].mxu1 }
 0x855   :  { %v7342_v63 = vpop.f32.mrb[57].mxu1 }
 0x856   :  { %v7343_v37 = vadd.f32 %v7342_v63, %v7341_v60  ;;  %v7344_v1 = vpop.f32.mrb[58].mxu1 }
 0x857   :  { %v7319_v59 = vpop.f32.mrb[56].mxu0  ;;  %v7345_v8 = vpop.f32.mrb[59].mxu1 }
 0x858   :  { %v7320_v61 = vpop.f32.mrb[57].mxu0 }
 0x859   :  { %v7321_v62 = vadd.f32 %v7320_v61, %v7319_v59  ;;  %v7322_v50 = vpop.f32.mrb[58].mxu0 }
 0x85a   :  { %v7323_v2 = vpop.f32.mrb[59].mxu0 }
 0x85b   :  { %v6447_v9 = vadd.f32 %v7321_v62, %v6407_v58 }
 0x85d   :  { %v6487_v34 = vadd.f32 %v7343_v37, %v6447_v9 }
 0x85f   :  { %6493 = vst.msk [vmem:[#allocation12] sm:$0xff] %vm6492_vm4, %v6487_v34 }
 0x860   :  { %8341 = shalt.err (!%p8338_p13)
}
 0x861   :  { %s8342_s27 = scalar_lea.hbm %s11745_s7, 128 }
 0x862   :  { %p8343_p0 = scmp.ne.s32.totalorder %s11745_s7, %s8342_s27  ;;  %p8346_p1 = scmp.lt.u32.totalorder %s8342_s27, %s11745_s7 }
 0x864   :  { %p8348_p2 = pnand %p8346_p1, %p8343_p0 }
 0x866   :  { %8351 = shalt.err (!%p8348_p2)
}
 0x867   :  { %6503 = dma.vmem_to_hbm [thread:$0]  %s6501_s17, 128, %s11745_s7, [#allocation13]  }
 0x868   :  { %8356 = dma.done.wait [#allocation13], 128  }
 0x869   :  { %8357 = vsyncadd [#allocation13], 4294967168 }
 0x86a   :  { %8358 = dma.done.wait [#allocation15], 5120  }
 0x86b   :  { %8359 = vsyncadd [#allocation15], 4294962176 }
 0x86c   :  { %6520 = vsyncpa [#allocation13], 1 }
 0x86d   :  { %6521 = vsyncpa [#allocation15], 1 }

</bundles_post_ra>
